<compile_context>
chip_gen: v7x
topology: tpu7x:2x2x1
jax: 0.10.0
libtpu: 0.0.40
codegen_flags: <defaults>
</compile_context>

<pallas_src>
import functools

import jax
import jax.numpy as jnp
from jax import lax
from jax.experimental import pallas as pl
from jax.experimental.pallas import tpu as pltpu

ADAPTER_IDX = {'tp': [1, 1, 0, 0, 0, 0, 0, 0, 0, 0, 0, 0, 0, 0, 0, 0]}

# Below this many flattened tokens the pallas_call fixed overhead dominates; let
# XLA's fused dot handle it.
_MIN_PALLAS_ROWS = 256

_LANE = 128
_SUBLANE = 8
_VMEM_HEADROOM = 8 << 20      # leave room for compiler scratch / Mosaic internals


def _round_up(x, m):
    return (x + m - 1) // m * m


def _round_down(x, m):
    return max(m, (x // m) * m)


def _tpu_vmem_bytes():
    try:
        return int(pltpu.get_tpu_info().vmem_capacity_bytes)
    except Exception:
        return 64 << 20   # conservative fallback = v7x per-TC VMEM


def _padded_bytes(shape2d, dtype):
    """VMEM footprint of a 2-D buffer after (sublane, 128-lane) padding."""
    r, c = shape2d
    itemsize = jnp.dtype(dtype).itemsize
    sub = max(_SUBLANE, (_SUBLANE * 4) // itemsize)   # bf16 packs 16 sublanes/tile
    return _round_up(max(r, 1), sub) * _round_up(max(c, 1), _LANE) * itemsize


def _dimension_semantics():
    # v7x has two TensorCores per chip: CORE_PARALLEL shards the independent row-tile
    # axis across them.  Plain "parallel" is the safe default on single-TC v5e/v6e.
    try:
        kind = jax.devices()[0].device_kind.lower()
        if "v7" in kind and hasattr(pltpu, "CORE_PARALLEL"):
            return (pltpu.CORE_PARALLEL,)
    except Exception:
        pass
    return ("parallel",)


def _select_tm(M, K, N, x_dtype):
    """K-aware, generation-aware row-tile size (multiple of 8, or the full M)."""
    itemsize = jnp.dtype(x_dtype).itemsize
    k_pad = _round_up(K, _LANE)
    n_pad = _round_up(N, _LANE)

    vmem_cap = _tpu_vmem_bytes()
    # Target x-tile size: big tiles amortize the ~0.35us/step overhead and keep the
    # DMA near the HBM roofline.  Larger VMEM (v5e/v6e, 128 MiB) -> bigger target.
    target_x_tile = (16 << 20) if vmem_cap >= (96 << 20) else (4 << 20)

    # Padded, double-buffered per-row cost of the pipelined x and out tiles, plus the
    # resident (double-buffered) weight/bias footprint.
    per_row = 2 * (k_pad * itemsize + n_pad * itemsize)
    resident = 2 * (_padded_bytes((K, N), x_dtype) + _padded_bytes((1, N), x_dtype))
    budget = int((vmem_cap - _VMEM_HEADROOM) * 0.75) - resident

    tm_by_target = target_x_tile // (k_pad * itemsize)
    tm_by_vmem = max(budget // per_row, _SUBLANE)
    tm = max(256, min(tm_by_target, tm_by_vmem))
    tm = _round_down(tm, _SUBLANE)
    if tm >= M:
        return M          # full-extent block: always legal, single grid step
    return tm


def _dispatcher_kernel(x_ref, w_ref, b_ref, o_ref, *, precision):
    # x_ref: [TM, K]  streamed activation tile
    # w_ref: [K, N]   pre-transposed weight (MXU RHS fed directly), VMEM-resident
    # b_ref: [1, N]   bias, VMEM-resident
    # o_ref: [TM, N]
    acc = jnp.dot(
        x_ref[...], w_ref[...],
        preferred_element_type=jnp.float32,
        precision=precision,
    )
    o_ref[...] = (acc + b_ref[...].astype(jnp.float32)).astype(o_ref.dtype)


@functools.partial(jax.jit, static_argnames=("tm",))
def _pallas_linear_2d(x2d, w_kn, bias2d, *, tm):
    M, K = x2d.shape
    N = w_kn.shape[1]
    grid = (pl.cdiv(M, tm),)

    # Padded VMEM accounting: x/out tiles double-buffered by the pipeliner, the
    # constant-index weight/bias also get (small) double buffers.
    x_bytes = _padded_bytes((tm, K), x2d.dtype)
    o_bytes = _padded_bytes((tm, N), x2d.dtype)
    w_bytes = _padded_bytes((K, N), w_kn.dtype)
    b_bytes = _padded_bytes((1, N), bias2d.dtype)
    needed = 2 * (x_bytes + o_bytes + w_bytes + b_bytes)

    vmem_cap = _tpu_vmem_bytes()
    vmem_limit = int(min(vmem_cap - _VMEM_HEADROOM,
                         max(needed + (4 << 20), 32 << 20)))

    # f32 inputs: force 3-pass MXU so routing logits are exact-f32; compute is not
    # the bottleneck so this is free.  bf16 inputs use the native bf16 MXU path.
    precision = (lax.Precision.HIGHEST
                 if x2d.dtype == jnp.float32 else lax.Precision.DEFAULT)

    itemsize = jnp.dtype(x2d.dtype).itemsize
    cost = pl.CostEstimate(
        flops=2 * M * K * N,
        transcendentals=0,
        bytes_accessed=M * K * itemsize + K * N * itemsize + M * N * itemsize,
    )

    kernel = functools.partial(_dispatcher_kernel, precision=precision)

    return pl.pallas_call(
        kernel,
        out_shape=jax.ShapeDtypeStruct((M, N), x2d.dtype),
        grid_spec=pltpu.PrefetchScalarGridSpec(
            num_scalar_prefetch=0,
            grid=grid,
            in_specs=[
                pl.BlockSpec((tm, K), lambda i: (i, 0)),   # streamed activation tile
                pl.BlockSpec((K, N), lambda i: (0, 0)),    # weight: VMEM-resident
                pl.BlockSpec((1, N), lambda i: (0, 0)),    # bias:   VMEM-resident
            ],
            out_specs=pl.BlockSpec((tm, N), lambda i: (i, 0)),
        ),
        compiler_params=pltpu.CompilerParams(
            dimension_semantics=_dimension_semantics(),
            vmem_limit_bytes=vmem_limit,
        ),
        cost_estimate=cost,
    )(x2d, w_kn, bias2d)


def adapter_dispatcher_linear(hidden_state, weight, bias):
    """Pallas equivalent of nn.Linear(d_model, adapter_group_num)(hidden_state).

    hidden_state: [B, S, d_model] float32 or bfloat16
    weight:       [adapter_group_num, d_model]  (PyTorch nn.Linear layout)
    bias:         [adapter_group_num]
    returns:      [B, S, adapter_group_num], dtype of hidden_state
    """
    B, S, K = hidden_state.shape
    N = weight.shape[0]
    M = B * S
    x2d = hidden_state.reshape(M, K)

    if M < _MIN_PALLAS_ROWS:
        # Tiny case: whole op is a handful of vregs; plain XLA dot is faster.
        out = x2d @ weight.T.astype(x2d.dtype) + bias.astype(x2d.dtype)
        return out.reshape(B, S, N)

    # One-time host-side transpose to [K, N]: feeds the MXU RHS directly and keeps
    # per-grid-step XLU transposes out of the steady-state loop.  Casting to the
    # activation dtype implements the bf16 streaming path when the input is bf16.
    w_kn = weight.T.astype(x2d.dtype)
    bias2d = bias.reshape(1, N).astype(x2d.dtype)

    tm = _select_tm(M, K, N, x2d.dtype)
    out = _pallas_linear_2d(x2d, w_kn, bias2d, tm=tm)
    return out.reshape(B, S, N)


class AdapterDispatcher:
    """JAX/Pallas port of the PyTorch AdapterDispatcher."""

    def __init__(self, d_model, adapter_group_num, key, std=0.01):
        self.input_dim = d_model
        self.output_dim = adapter_group_num
        # nn.Linear weight is [out, in], initialized normal(std=0.01); bias zeros.
        self.weight = std * jax.random.normal(
            key, (adapter_group_num, d_model), dtype=jnp.float32)
        self.bias = jnp.zeros((adapter_group_num,), dtype=jnp.float32)

    def forward(self, task, hidden_state):
        weight = adapter_dispatcher_linear(hidden_state, self.weight, self.bias)
        target_weight = None
        if task in ADAPTER_IDX:
            target_weight = ADAPTER_IDX[task]
        return (weight, target_weight)


if __name__ == "__main__":
    key = jax.random.PRNGKey(0)
    k_w1, k_x1, k_w2, k_x2, k_x3 = jax.random.split(key, 5)

    # --- Case 1: tiny config (matches ADAPTER_IDX length) -> fast non-Pallas path ---
    d_model, adapter_group_num = 32, 16
    batch, seq = 2, 8
    disp_small = AdapterDispatcher(d_model, adapter_group_num, k_w1)
    x_small = jax.random.normal(k_x1, (batch, seq, d_model), dtype=jnp.float32)
    out_small, tgt = disp_small.forward('tp', x_small)
    out_small = jax.block_until_ready(out_small)
    ref_small = x_small @ disp_small.weight.T + disp_small.bias
    assert out_small.shape == (batch, seq, adapter_group_num)
    assert jnp.allclose(out_small, ref_small, atol=1e-5, rtol=1e-5)
    assert tgt == ADAPTER_IDX['tp']

    # --- Case 2: enough tokens to exercise the tiled Pallas kernel (f32 path) ---
    d_model2, groups2 = 128, 16
    batch2, seq2 = 2, 512           # B*S = 1024 rows
    disp_big = AdapterDispatcher(d_model2, groups2, k_w2)
    x_big = jax.random.normal(k_x2, (batch2, seq2, d_model2), dtype=jnp.float32)
    out_big, tgt2 = disp_big.forward('tp', x_big)
    out_big = jax.block_until_ready(out_big)
    ref_big = (jnp.matmul(x_big.reshape(-1, d_model2), disp_big.weight.T,
                          precision=lax.Precision.HIGHEST)
               + disp_big.bias).reshape(batch2, seq2, groups2)
    assert out_big.shape == (batch2, seq2, groups2)
    assert jnp.allclose(out_big, ref_big, atol=1e-5, rtol=1e-5)
    assert tgt2 == ADAPTER_IDX['tp']

    # --- Case 3: bf16 activation-streaming path (half the HBM bytes) ---
    batch3, seq3 = 2, 256           # B*S = 512 rows -> Pallas path in bf16
    x_bf16 = jax.random.normal(
        k_x3, (batch3, seq3, d_model2), dtype=jnp.float32).astype(jnp.bfloat16)
    out_bf16, _ = disp_big.forward('tp', x_bf16)
    out_bf16 = jax.block_until_ready(out_bf16)
    w_bf16 = disp_big.weight.astype(jnp.bfloat16)
    ref_bf16 = (x_bf16.astype(jnp.float32) @ w_bf16.astype(jnp.float32).T
                + disp_big.bias)
    assert out_bf16.shape == (batch3, seq3, groups2)
    assert out_bf16.dtype == jnp.bfloat16
    assert jnp.allclose(out_bf16.astype(jnp.float32), ref_bf16, atol=1e-2, rtol=1e-2)

    print("KERNEL_OK")
</pallas_src>

<mosaic_0001>
module attributes {stable_mosaic.version = 11 : i64} {
  func.func @_dispatcher_kernel(%arg0: i32, %arg1: memref<1024x128xf32, #tpu.memory_space<vmem>>, %arg2: memref<128x16xf32, #tpu.memory_space<vmem>>, %arg3: memref<1x16xf32, #tpu.memory_space<vmem>>, %arg4: memref<1024x16xf32, #tpu.memory_space<vmem>>) attributes {dimension_semantics = [#tpu.dimension_semantics<parallel>], iteration_bounds = array<i64: 1>, scalar_prefetch = 0 : i64, scratch_operands = 0 : i64, tpu.core_type = #tpu.core_type<tc>, window_params = [{transform_indices = @transform_0, window_bounds = array<i64: 1024, 128>}, {pipeline_mode = #tpu.pipeline_mode<synchronous>, transform_indices = @transform_1, window_bounds = array<i64: 128, 16>}, {pipeline_mode = #tpu.pipeline_mode<synchronous>, transform_indices = @transform_2, window_bounds = array<i64: 1, 16>}, {transform_indices = @transform_3, window_bounds = array<i64: 1024, 16>}]} {
    %c0 = arith.constant 0 : index
    %c0_0 = arith.constant 0 : index
    %0 = vector.load %arg1[%c0, %c0_0] : memref<1024x128xf32, #tpu.memory_space<vmem>>, vector<1024x128xf32>
    %c0_1 = arith.constant 0 : index
    %c0_2 = arith.constant 0 : index
    %1 = vector.load %arg2[%c0_1, %c0_2] : memref<128x16xf32, #tpu.memory_space<vmem>>, vector<128x16xf32>
    %cst = arith.constant dense<0.000000e+00> : vector<1024x16xf32>
    %2 = tpu.matmul %0, %1, %cst {dimension_numbers = #tpu.dot_dimension_numbers<[1], [0], [0], [1], [0, 0, 1, 1], [], []>, precision = #tpu.contract_precision<fp32>} : vector<1024x128xf32>, vector<128x16xf32>, vector<1024x16xf32> -> vector<1024x16xf32>
    %c0_3 = arith.constant 0 : index
    %c0_4 = arith.constant 0 : index
    %3 = vector.load %arg3[%c0_3, %c0_4] : memref<1x16xf32, #tpu.memory_space<vmem>>, vector<1x16xf32>
    %4 = vector.broadcast %3 : vector<1x16xf32> to vector<1024x16xf32>
    %5 = arith.addf %2, %4 : vector<1024x16xf32>
    %c0_5 = arith.constant 0 : index
    %c0_6 = arith.constant 0 : index
    %6 = vector.load %arg4[%c0_5, %c0_6] : memref<1024x16xf32, #tpu.memory_space<vmem>>, vector<1024x16xf32>
    tpu.vector_store %arg4[%c0_5, %c0_6], %5 {strides = array<i32>} : memref<1024x16xf32, #tpu.memory_space<vmem>>, vector<1024x16xf32>,
    return
  }
  func.func @transform_0(%arg0: i32) -> (i32, i32) {
    %c0_i32 = arith.constant 0 : i32
    %c0_i32_0 = arith.constant 0 : i32
    return %arg0, %c0_i32 : i32, i32
  }
  func.func @transform_1(%arg0: i32) -> (i32, i32) {
    %c0_i32 = arith.constant 0 : i32
    %c0_i32_0 = arith.constant 0 : i32
    %c0_i32_1 = arith.constant 0 : i32
    return %c0_i32, %c0_i32_0 : i32, i32
  }
  func.func @transform_2(%arg0: i32) -> (i32, i32) {
    %c0_i32 = arith.constant 0 : i32
    %c0_i32_0 = arith.constant 0 : i32
    %c0_i32_1 = arith.constant 0 : i32
    return %c0_i32, %c0_i32_0 : i32, i32
  }
  func.func @transform_3(%arg0: i32) -> (i32, i32) {
    %c0_i32 = arith.constant 0 : i32
    %c0_i32_0 = arith.constant 0 : i32
    return %arg0, %c0_i32 : i32, i32
  }
}

</mosaic_0001>

<bundles_post_ra>
// kernel: _pallas_linear_2d.1
= control target key start
LH: loop header
LB: loop body
LE: loop exit
PB: predicated region body
PF: predicated region fallthrough
CT: control target
= control target key end

     0   :  { %8 = vsyncpa [#allocation3], 0  ;;  %s9616_s12 = smov [#allocation2]   ;;  %s12097_s0 = inlined_call_operand.hbm [shape: f32[1024,128], index: 0, kind: input, shape index: {}]   ;;  %s12098_s1 = inlined_call_operand.vmem [shape: f32[128,16], index: 1, kind: input, shape index: {}]   ;;  %s12099_s2 = inlined_call_operand.vmem [shape: f32[1,16], index: 2, kind: input, shape index: {}]   ;;  %s12100_s3 = inlined_call_operand.vmem [shape: f32[1024,16], index: 3, kind: output, shape index: {}]  }
   0x1   :  { %s14_s13 = sshll.u32 %s9616_s12, 4  ;;  %s9592_s16 = scalar_lea.hbm %s12097_s0, 16384  ;;  %s15_s13 = int_to_ptr.vmem [resolvable:$true] %s14_s13 }
   0x2   :  { %p9593_p0 = scmp.ne.s32.totalorder %s12097_s0, %s9592_s16  ;;  %p9596_p1 = scmp.lt.u32.totalorder %s9592_s16, %s12097_s0 }
   0x4   :  { %p9598_p2 = pnand %p9596_p1, %p9593_p0 }
   0x6   :  { %9601 = shalt.err (!%p9598_p2)
}
   0x7   :  { %s9602_s21 = scalar_lea.vmem %s15_s13, 16384  ;;  %p9607_p4 = scmp.lt.s32.totalorder %s15_s13, %s15_s13 }
   0x8   :  { %p9603_p3 = scmp.ne.s32.totalorder %s15_s13, %s9602_s21  ;;  %p9608_p5 = scmp.lt.s32.totalorder %s9602_s21, %s9602_s21 }
   0xa   :  { %p9609_p6 = por %p9608_p5, %p9607_p4 }
   0xc   :  { %p9610_p7 = pnand %p9609_p6, %p9603_p3 }
   0xe   :  { %9613 = shalt.err (!%p9610_p7)
}
   0xf   :  { %s9617_s22 = smov 128   ;;  %s9618_s23 = smov 8  }
  0x10   :  { %20 = dma.hbm_to_vmem [thread:$0]  %s12097_s0, 16384, %s15_s13, [#allocation3], %s9617_s22, %s9617_s22, %s9618_s23  }
  0x11   :  { %9614 = dma.done.wait [#allocation3], 16384  }
  0x12   :  { %9615 = vsyncadd [#allocation3], 4294950912  ;;  %v156_v0 = vld [vmem:[%s12098_s1] sm:$0xff]  ;;  %v157_v1 = vld [vmem:[%s12098_s1 + $0x8] sm:$0xff]  ;;  %vm6281_vm0 = vcmask 130048  }
  0x13   :  { %v9660_v2 = vld [vmem:[%s12098_s1 + $0x10] sm:$0xff]  ;;  %v180_v3 = vand.u32 4294901760, %v156_v0  ;;  %v183_v4 = vand.u32 4294901760, %v157_v1  ;;  %v9665_v5 = vld [vmem:[%s12098_s1 + $0x18] sm:$0xff]  ;;  %v9671_v7 = vld [vmem:[%s12098_s1 + $0x20] sm:$0xff] }
  0x14   :  { %v186_v6 = vand.u32 4294901760, %v9660_v2  ;;  %v9676_v8 = vld [vmem:[%s12098_s1 + $0x28] sm:$0xff]  ;;  %v189_v9 = vand.u32 4294901760, %v9665_v5  ;;  %v12112_v11 = vand.u32 4294901760, %v9671_v7  ;;  %v9692_v14 = vld [vmem:[%s12098_s1 + $0x30] sm:$0xff]  ;;  %v9697_v15 = vld [vmem:[%s12098_s1 + $0x38] sm:$0xff] }
  0x15   :  { %v9679_v10 = vpack.c.bf16 %v183_v4, %v180_v3  ;;  %v12111_v12 = vand.u32 4294901760, %v9676_v8  ;;  %v28_v16 = vld [vmem:[#allocation2] sm:$0xff]  ;;  %v12110_v19 = vand.u32 4294901760, %v9692_v14  ;;  %v12109_v20 = vand.u32 4294901760, %v9697_v15  ;;  %v9723_v22 = vld [vmem:[%s12098_s1 + $0x48] sm:$0xff]  ;;  %v9744_v28 = vld [vmem:[%s12098_s1 + $0x50] sm:$0xff] }
  0x16   :  { %v9687_v13 = vpack.c.bf16 %v189_v9, %v186_v6  ;;  %v9703_v17 = vand.u32 4294901760, %v28_v16  ;;  %v9718_v21 = vld [vmem:[%s12098_s1 + $0x40] sm:$0xff]  ;;  %v12107_v27 = vand.u32 4294901760, %v9723_v22  ;;  %v9749_v29 = vld [vmem:[%s12098_s1 + $0x58] sm:$0xff]  ;;  %v29_v31 = vld [vmem:[#allocation2 + $0x8] sm:$0xff]  ;;  %v12106_v32 = vand.u32 4294901760, %v9744_v28 }
  0x17   :  { %8625 = vmatprep.subr.bf16.mxu1 %v9679_v10  ;;  %8721 = vmatprep.subr.bf16.mxu0 %v9679_v10  ;;  %v9711_v18 = vpack.c.bf16 %v12111_v12, %v12112_v11  ;;  %v9737_v25 = vpack.c.bf16 %v12109_v20, %v12110_v19  ;;  %v12108_v26 = vand.u32 4294901760, %v9718_v21  ;;  %v12103_v33 = vand.u32 4294901760, %v9749_v29  ;;  %v30_v35 = vld [vmem:[#allocation2 + $0x10] sm:$0xff]  ;;  %v9767_v37 = vld [vmem:[%s12098_s1 + $0x60] sm:$0xff]  ;;  %v9772_v38 = vld [vmem:[%s12098_s1 + $0x68] sm:$0xff] }
  0x18   :  { %8627 = vmatpush3.bf16.msra.mxu1 %v9679_v10  ;;  %8723 = vmatpush3.bf16.msra.mxu0 %v9679_v10  ;;  %v9726_v23 = vsub.f32 %v28_v16, %v9703_v17  ;;  %v9774_v39 = vand.u32 4294901760, %v29_v31  ;;  %v9776_v40 = vsub.f32 %v156_v0, %v180_v3  ;;  %v9778_v41 = vsub.f32 %v157_v1, %v183_v4  ;;  %v31_v43 = vld [vmem:[#allocation2 + $0x18] sm:$0xff]  ;;  %v32_v44 = vld [vmem:[#allocation2 + $0x20] sm:$0xff]  ;;  %v9797_v48 = vld [vmem:[%s12098_s1 + $0x70] sm:$0xff] }
  0x19   :  { %8629 = vmatprep.subr.bf16.mxu1 %v9687_v13  ;;  %8725 = vmatprep.subr.bf16.mxu0 %v9687_v13  ;;  %v9762_v36 = vpack.c.bf16 %v12107_v27, %v12108_v26  ;;  %v9780_v42 = vand.u32 4294901760, %v30_v35  ;;  %v12102_v45 = vand.u32 4294901760, %v9767_v37  ;;  %v12101_v46 = vand.u32 4294901760, %v9772_v38  ;;  %v9802_v49 = vld [vmem:[%s12098_s1 + $0x78] sm:$0xff]  ;;  %v33_v56 = vld [vmem:[#allocation2 + $0x28] sm:$0xff]  ;;  %v34_v63 = vld [vmem:[#allocation2 + $0x30] sm:$0xff] }
  0x1a   :  { %12536 = vst [vmem:[#allocation5_spill] sm:$0xff] %v9726_v23  ;;  %v262_v24 = vand.u32 4294901760, %v9726_v23  ;;  %v9792_v47 = vpack.c.bf16 %v12103_v33, %v12106_v32  ;;  %v9805_v50 = vsub.f32 %v29_v31, %v9774_v39  ;;  %v1543_v51 = vand.u32 4294901760, %v9776_v40 }
  0x1b   :  { %12537 = vst [vmem:[#allocation6_spill] sm:$0xff] %v9762_v36  ;;  %v1550_v52 = vand.u32 4294901760, %v9778_v41  ;;  %v9809_v53 = vand.u32 4294901760, %v31_v43  ;;  %v9811_v54 = vand.u32 4294901760, %v32_v44  ;;  %v9814_v55 = vsub.f32 %v30_v35, %v9780_v42 }
  0x1c   :  { %8631 = vmatpush3.bf16.msra.mxu1 %v9687_v13  ;;  %8727 = vmatpush3.bf16.msra.mxu0 %v9687_v13  ;;  %v263_v30 = vsub.f32 %v9726_v23, %v262_v24  ;;  %12538 = vst [vmem:[#allocation7_spill] sm:$0xff] %v9792_v47  ;;  %12539 = vst [vmem:[#allocation8_spill] sm:$0xff] %v9805_v50  ;;  %v12105_v57 = vand.u32 4294901760, %v9797_v48  ;;  %v12104_v58 = vand.u32 4294901760, %v9802_v49  ;;  %v12116_v60 = vand.u32 4294901760, %v9805_v50 }
  0x1d   :  { %8633 = vmatprep.subr.bf16.mxu1 %v9711_v18  ;;  %8729 = vmatprep.subr.bf16.mxu0 %v9711_v18  ;;  %12540 = vst [vmem:[#allocation9_spill] sm:$0xff] %v9814_v55  ;;  %v9826_v59 = vpack.c.bf16 %v12101_v46, %v12102_v45  ;;  %v1544_v61 = vsub.f32 %v9776_v40, %v1543_v51  ;;  %v9837_v3 = vand.u32 4294901760, %v33_v56  ;;  %v12115_v4 = vand.u32 4294901760, %v9814_v55 }
  0x1e   :  { %7984 = vmatprep.mubr.f32.mxu0 %v262_v24  ;;  %v264_v34 = vand.u32 4294901760, %v263_v30  ;;  %v1551_v62 = vsub.f32 %v9778_v41, %v1550_v52  ;;  %v9832_v0 = vsub.f32 %v31_v43, %v9809_v53  ;;  %v9835_v1 = vsub.f32 %v32_v44, %v9811_v54  ;;  %v35_v24 = vld [vmem:[#allocation2 + $0x38] sm:$0xff]  ;;  %v36_v43 = vld [vmem:[#allocation2 + $0x40] sm:$0xff] }
  0x1f   :  { %12541 = vst [vmem:[#allocation10_spill] sm:$0xff] %v9826_v59  ;;  %v9842_v16 = vand.u32 4294901760, %v34_v63  ;;  %v9850_v30 = vpack.c.bf16 %v12104_v58, %v12105_v57  ;;  %v273_v31 = vsub.f32 %v9805_v50, %v12116_v60  ;;  %v9858_v45 = vsub.f32 %v33_v56, %v9837_v3 }
  0x20   :  { %8635 = vmatpush3.bf16.msra.mxu1 %v9711_v18  ;;  %8731 = vmatpush3.bf16.msra.mxu0 %v9711_v18  ;;  %12542 = vst [vmem:[#allocation11_spill] sm:$0xff] %v9832_v0  ;;  %12543 = vst [vmem:[#allocation12_spill] sm:$0xff] %v9835_v1  ;;  %v1552_v35 = vand.u32 4294901760, %v1551_v62  ;;  %v12114_v44 = vand.u32 4294901760, %v9832_v0  ;;  %v12113_v46 = vand.u32 4294901760, %v9835_v1  ;;  %v9863_v33 = vsub.f32 %v9660_v2, %v186_v6  ;;  %v37_v6 = vld [vmem:[#allocation2 + $0x48] sm:$0xff] }
  0x21   :  { %8637 = vmatprep.subr.bf16.mxu1 %v9737_v25  ;;  %8733 = vmatprep.subr.bf16.mxu0 %v9737_v25  ;;  %12544 = vst [vmem:[#allocation13_spill] sm:$0xff] %v9850_v30  ;;  %12545 = vst [vmem:[#allocation14_spill] sm:$0xff] %v9858_v45  ;;  %v283_v58 = vsub.f32 %v9814_v55, %v12115_v4  ;;  %v9868_v57 = vand.u32 4294901760, %v35_v24  ;;  %v9878_v56 = vsub.f32 %v34_v63, %v9842_v16 }
  0x22   :  { %7312 = vmatprep.mubr.f32.mxu1 %v264_v34  ;;  %v1545_v34 = vand.u32 4294901760, %v1544_v61  ;;  %v9873_v61 = vsub.f32 %v9665_v5, %v189_v9  ;;  %v9880_v2 = vand.u32 4294901760, %v36_v43  ;;  %v1557_v62 = vand.u32 4294901760, %v9863_v33  ;;  %v38_v9 = vld [vmem:[#allocation2 + $0x50] sm:$0xff] }
  0x23   :  { %12546 = vst [vmem:[#allocation15_spill] sm:$0xff] %v9868_v57  ;;  %12547 = vst [vmem:[#allocation16_spill] sm:$0xff] %v9878_v56  ;;  %v274_v32 = vand.u32 4294901760, %v273_v31  ;;  %v8752_v5 = vpack.c.bf16 %v1550_v52, %v1543_v51  ;;  %v293_v63 = vsub.f32 %v9832_v0, %v12114_v44  ;;  %v303_v20 = vsub.f32 %v9835_v1, %v12113_v46  ;;  %v39_v52 = vld [vmem:[#allocation2 + $0x58] sm:$0xff] }
  0x24   :  { %8639 = vmatpush3.bf16.msra.mxu1 %v9737_v25  ;;  %8735 = vmatpush3.bf16.msra.mxu0 %v9737_v25  ;;  %12548 = vst [vmem:[#allocation17_spill] sm:$0xff] %v9880_v2  ;;  %v8656_v27 = vpack.c.bf16 %v1552_v35, %v1545_v34  ;;  %v1564_v26 = vand.u32 4294901760, %v9873_v61  ;;  %v312_v19 = vand.u32 4294901760, %v9858_v45  ;;  %v1558_v12 = vsub.f32 %v9863_v33, %v1557_v62 }
  0x25   :  { %8641 = vmatprep.subr.bf16.mxu1 %v9762_v36  ;;  %8737 = vmatprep.subr.bf16.mxu0 %v9762_v36  ;;  %v284_v11 = vand.u32 4294901760, %v283_v58  ;;  %v9895_v31 = vsub.f32 %v35_v24, %v9868_v57  ;;  %v9897_v51 = vand.u32 4294901760, %v37_v6  ;;  %v322_v35 = vand.u32 4294901760, %v9878_v56  ;;  %v40_v58 = vld [vmem:[#allocation2 + $0x60] sm:$0xff] }
  0x26   :  { %v1565_v34 = vsub.f32 %v9873_v61, %v1564_v26  ;;  %v9904_v46 = vsub.f32 %v36_v43, %v9880_v2  ;;  %v9906_v44 = vand.u32 4294901760, %v38_v9  ;;  %v1559_v4 = vand.u32 4294901760, %v1558_v12 }
  0x27   :  { %12549 = vst [vmem:[#allocation18_spill] sm:$0xff] %v9895_v31  ;;  %v294_v60 = vand.u32 4294901760, %v293_v63  ;;  %v313_v23 = vsub.f32 %v9858_v45, %v312_v19  ;;  %v332_v43 = vand.u32 4294901760, %v9895_v31  ;;  %v9915_v2 = vsub.f32 %v37_v6, %v9897_v51  ;;  %v42_v6 = vld [vmem:[#allocation2 + $0x70] sm:$0xff] }
  0x28   :  { %8643 = vmatpush3.bf16.msra.mxu1 %v9762_v36  ;;  %8739 = vmatpush3.bf16.msra.mxu0 %v9762_v36  ;;  %12550 = vst [vmem:[#allocation19_spill] sm:$0xff] %v9904_v46  ;;  %v1566_v24 = vand.u32 4294901760, %v1565_v34  ;;  %v8756_v36 = vpack.c.bf16 %v1564_v26, %v1557_v62  ;;  %v9917_v12 = vand.u32 4294901760, %v40_v58  ;;  %v304_v63 = vand.u32 4294901760, %v303_v20 }
  0x29   :  { %8645 = vmatprep.subr.bf16.mxu1 %v9792_v47  ;;  %8741 = vmatprep.subr.bf16.mxu0 %v9792_v47  ;;  %12553 = vst [vmem:[#allocation21_spill] sm:$0xff] %v9915_v2  ;;  %v323_v34 = vsub.f32 %v9878_v56, %v322_v35  ;;  %v342_v45 = vand.u32 4294901760, %v9904_v46  ;;  %v9922_v26 = vsub.f32 %v38_v9, %v9906_v44  ;;  %v314_v62 = vand.u32 4294901760, %v313_v23  ;;  %v44_v9 = vld [vmem:[#allocation2 + $0x80] sm:$0xff]  ;;  %v45_v56 = vld [vmem:[#allocation2 + $0x88] sm:$0xff] }
  0x2a   :  { %12554 = vst [vmem:[#allocation22_spill] sm:$0xff] %v9917_v12  ;;  %v8660_v57 = vpack.c.bf16 %v1566_v24, %v1559_v4  ;;  %v333_v20 = vsub.f32 %v9895_v31, %v332_v43  ;;  %v12561_v23 = vand.u32 4294901760, %v9835_v1 }
  0x2b   :  { %12555 = vst [vmem:[#allocation23_spill] sm:$0xff] %v9922_v26  ;;  %v324_v24 = vand.u32 4294901760, %v323_v34 }
  0x2c   :  { %8647 = vmatpush3.bf16.msra.mxu1 %v9792_v47  ;;  %8743 = vmatpush3.bf16.msra.mxu0 %v9792_v47  ;;  %v41_v47 = vld [vmem:[#allocation2 + $0x68] sm:$0xff] }
  0x2d   :  { %8649 = vmatprep.subr.bf16.mxu1 %v9826_v59  ;;  %8745 = vmatprep.subr.bf16.mxu0 %v9826_v59 }
  0x30   :  { %8651 = vmatpush3.bf16.msra.mxu1 %v9826_v59  ;;  %8747 = vmatpush3.bf16.msra.mxu0 %v9826_v59  ;;  %v9909_v59 = vand.u32 4294901760, %v39_v52 }
  0x31   :  { %8653 = vmatprep.subr.bf16.mxu1 %v9850_v30  ;;  %8749 = vmatprep.subr.bf16.mxu0 %v9850_v30 }
  0x32   :  { %12551 = vst [vmem:[#allocation20_spill] sm:$0xff] %v9909_v59  ;;  %v9933_v4 = vsub.f32 %v39_v52, %v9909_v59  ;;  %v53_v59 = vld [vmem:[#allocation2 + $0xc8] sm:$0xff] }
  0x34   :  { %8655 = vmatpush3.bf16.msra.mxu1 %v9850_v30  ;;  %8751 = vmatpush3.bf16.msra.mxu0 %v9850_v30  ;;  %v12552_v30 = vand.u32 4294901760, %v9805_v50  ;;  %v43_v50 = vld [vmem:[#allocation2 + $0x78] sm:$0xff]  ;;  %12559 = vst [vmem:[#allocation25_spill] sm:$0xff] %v9933_v4 }
  0x35   :  { %8657 = vmatprep.subr.bf16.mxu1 %v8656_v27  ;;  %8753 = vmatprep.subr.bf16.mxu0 %v8752_v5  ;;  %v9947_v52 = vand.u32 4294901760, %v43_v50 }
  0x37   :  { %7313 = vmatmul.mubr.f32.vlgmr.msra.gmra.mrb[0].mxu1 %v274_v32  ;;  %7985 = vmatmul.mubr.f32.vlgmr.msra.gmra.mrb[0].mxu0 %v12552_v30  ;;  %v12556_v32 = vand.u32 4294901760, %v9814_v55  ;;  %v9926_v30 = vand.u32 4294901760, %v41_v47  ;;  %12564 = vst [vmem:[#allocation29_spill] sm:$0xff] %v9947_v52  ;;  %v12575_v55 = vand.u32 4294901760, %v9676_v8 }
  0x38   :  { %8659 = vmatpush3.bf16.msra.mxu1 %v8656_v27  ;;  %7315 = vmatprep.mubr.f32.mxu1 %v284_v11  ;;  %v12558_v11 = vand.u32 4294901760, %v9832_v0  ;;  %v352_v27 = vand.u32 4294901760, %v9915_v2 }
  0x39   :  { %7987 = vmatprep.mubr.f32.mxu0 %v12556_v32  ;;  %8755 = vmatpush3.bf16.msra.mxu0 %v8752_v5  ;;  %12557 = vst [vmem:[#allocation24_spill] sm:$0xff] %v9926_v30  ;;  %v9936_v5 = vsub.f32 %v40_v58, %v9917_v12  ;;  %v362_v32 = vand.u32 4294901760, %v9922_v26  ;;  %v9945_v31 = vsub.f32 %v41_v47, %v9926_v30  ;;  %v9949_v58 = vand.u32 4294901760, %v44_v9 }
  0x3a   :  { %8661 = vmatprep.subr.bf16.mxu1 %v8660_v57  ;;  %8757 = vmatprep.subr.bf16.mxu0 %v8756_v36  ;;  %v353_v34 = vsub.f32 %v9915_v2, %v352_v27  ;;  %v9965_v2 = vand.u32 4294901760, %v45_v56 }
  0x3b   :  { %7316 = vmatmul.mubr.f32.gmra.mrb[2].mxu1 %v294_v60  ;;  %7988 = vmatmul.mubr.f32.gmra.mrb[2].mxu0 %v12558_v11  ;;  %12560 = vst [vmem:[#allocation26_spill] sm:$0xff] %v9936_v5  ;;  %v343_v60 = vsub.f32 %v9904_v46, %v342_v45  ;;  %v9942_v11 = vand.u32 4294901760, %v42_v6  ;;  %12563 = vst [vmem:[#allocation28_spill] sm:$0xff] %v9945_v31  ;;  %v382_v46 = vand.u32 4294901760, %v9936_v5 }
  0x3c   :  { %7318 = vmatprep.mubr.f32.mxu1 %v304_v63  ;;  %7990 = vmatprep.mubr.f32.mxu0 %v12561_v23  ;;  %12565 = vst [vmem:[#allocation30_spill] sm:$0xff] %v9949_v58  ;;  %v334_v63 = vand.u32 4294901760, %v333_v20  ;;  %v372_v23 = vand.u32 4294901760, %v9933_v4  ;;  %v363_v1 = vsub.f32 %v9922_v26, %v362_v32  ;;  %v9963_v20 = vsub.f32 %v44_v9, %v9949_v58 }
  0x3d   :  { %12562 = vst [vmem:[#allocation27_spill] sm:$0xff] %v9942_v11  ;;  %8663 = vmatpush3.bf16.msra.mxu1 %v8660_v57  ;;  %8759 = vmatpush3.bf16.msra.mxu0 %v8756_v36  ;;  %v344_v47 = vand.u32 4294901760, %v343_v60  ;;  %v9956_v57 = vsub.f32 %v42_v6, %v9942_v11  ;;  %12569 = vst [vmem:[#allocation34_spill] sm:$0xff] %v9965_v2  ;;  %v383_v60 = vsub.f32 %v9936_v5, %v382_v46  ;;  %v47_v6 = vld [vmem:[#allocation2 + $0x98] sm:$0xff]  ;;  %v48_v5 = vld [vmem:[#allocation2 + $0xa0] sm:$0xff] }
  0x3e   :  { %12568 = vst [vmem:[#allocation33_spill] sm:$0xff] %v9963_v20  ;;  %v364_v36 = vand.u32 4294901760, %v363_v1  ;;  %v12571_v9 = vand.u32 4294901760, %v9671_v7  ;;  %v9985_v1 = vand.u32 4294901760, %v47_v6 }
  0x3f   :  { %7319 = vmatmul.mubr.f32.gmra.mrb[4].mxu1 %v314_v62  ;;  %7991 = vmatmul.mubr.f32.gmra.mrb[4].mxu0 %v312_v19  ;;  %12566 = vst [vmem:[#allocation31_spill] sm:$0xff] %v9956_v57  ;;  %v9960_v19 = vsub.f32 %v43_v50, %v9947_v52  ;;  %v46_v62 = vld [vmem:[#allocation2 + $0x90] sm:$0xff]  ;;  %v402_v50 = vand.u32 4294901760, %v9956_v57 }
  0x40   :  { %7321 = vmatprep.mubr.f32.mxu1 %v324_v24  ;;  %7993 = vmatprep.mubr.f32.mxu0 %v322_v35  ;;  %v354_v35 = vand.u32 4294901760, %v353_v34  ;;  %v373_v24 = vsub.f32 %v9933_v4, %v372_v23  ;;  %v9970_v26 = vand.u32 4294901760, %v46_v62  ;;  %v9975_v0 = vsub.f32 %v9671_v7, %v12571_v9  ;;  %12574 = vst [vmem:[#allocation37_spill] sm:$0xff] %v9985_v1 }
  0x41   :  { %12567 = vst [vmem:[#allocation32_spill] sm:$0xff] %v9960_v19  ;;  %v384_v9 = vand.u32 4294901760, %v383_v60  ;;  %v9997_v34 = vand.u32 4294901760, %v48_v5  ;;  %v12577_v58 = vand.u32 4294901760, %v9960_v19 }
  0x42   :  { %12570 = vst [vmem:[#allocation35_spill] sm:$0xff] %v9970_v26  ;;  %v1571_v4 = vand.u32 4294901760, %v9975_v0  ;;  %v374_v7 = vand.u32 4294901760, %v373_v24  ;;  %v50_v24 = vld [vmem:[#allocation2 + $0xb0] sm:$0xff] }
  0x43   :  { %7322 = vmatmul.mubr.f32.gmra.mrb[6].mxu1 %v334_v63  ;;  %7994 = vmatmul.mubr.f32.gmra.mrb[6].mxu0 %v332_v43  ;;  %v12572_v43 = vand.u32 4294901760, %v9945_v31  ;;  %v10018_v30 = vand.u32 4294901760, %v50_v24 }
  0x44   :  { %7324 = vmatprep.mubr.f32.mxu1 %v344_v47  ;;  %7996 = vmatprep.mubr.f32.mxu0 %v342_v45  ;;  %v9983_v45 = vsub.f32 %v45_v56, %v9965_v2  ;;  %v403_v47 = vsub.f32 %v9956_v57, %v402_v50  ;;  %v9995_v56 = vsub.f32 %v46_v62, %v9970_v26  ;;  %v49_v2 = vld [vmem:[#allocation2 + $0xa8] sm:$0xff] }
  0x45   :  { %v393_v63 = vsub.f32 %v9945_v31, %v12572_v43  ;;  %v9991_v43 = vsub.f32 %v9676_v8, %v12575_v55  ;;  %v413_v8 = vsub.f32 %v9960_v19, %v12577_v58  ;;  %v12578_v55 = vand.u32 4294901760, %v9963_v20  ;;  %12582 = vst [vmem:[#allocation42_spill] sm:$0xff] %v10018_v30 }
  0x46   :  { %12573 = vst [vmem:[#allocation36_spill] sm:$0xff] %v9983_v45  ;;  %12576 = vst [vmem:[#allocation38_spill] sm:$0xff] %v9995_v56  ;;  %v10009_v62 = vsub.f32 %v47_v6, %v9985_v1  ;;  %v10011_v57 = vand.u32 4294901760, %v49_v2  ;;  %v404_v58 = vand.u32 4294901760, %v403_v47  ;;  %v442_v11 = vand.u32 4294901760, %v9995_v56  ;;  %v51_v6 = vld [vmem:[#allocation2 + $0xb8] sm:$0xff] }
  0x47   :  { %7325 = vmatmul.mubr.f32.gmra.mrb[8].mxu1 %v354_v35  ;;  %7997 = vmatmul.mubr.f32.gmra.mrb[8].mxu0 %v352_v27  ;;  %v1572_v35 = vsub.f32 %v9975_v0, %v1571_v4  ;;  %v394_v27 = vand.u32 4294901760, %v393_v63  ;;  %v1578_v60 = vand.u32 4294901760, %v9991_v43  ;;  %v52_v1 = vld [vmem:[#allocation2 + $0xc0] sm:$0xff] }
  0x48   :  { %7327 = vmatprep.mubr.f32.mxu1 %v364_v36  ;;  %7999 = vmatprep.mubr.f32.mxu0 %v362_v32  ;;  %v423_v32 = vsub.f32 %v9963_v20, %v12578_v55  ;;  %v432_v36 = vand.u32 4294901760, %v9983_v45  ;;  %12579 = vst [vmem:[#allocation39_spill] sm:$0xff] %v10009_v62  ;;  %12580 = vst [vmem:[#allocation40_spill] sm:$0xff] %v10011_v57  ;;  %v10016_v55 = vsub.f32 %v48_v5, %v9997_v34 }
  0x49   :  { %v1573_v63 = vand.u32 4294901760, %v1572_v35  ;;  %v1579_v26 = vsub.f32 %v9991_v43, %v1578_v60  ;;  %v8760_v52 = vpack.c.bf16 %v1578_v60, %v1571_v4  ;;  %v54_v4 = vld [vmem:[#allocation2 + $0xd0] sm:$0xff]  ;;  %v452_v5 = vand.u32 4294901760, %v10009_v62 }
  0x4a   :  { %12581 = vst [vmem:[#allocation41_spill] sm:$0xff] %v10016_v55  ;;  %v424_v12 = vand.u32 4294901760, %v423_v32  ;;  %v433_v35 = vsub.f32 %v9983_v45, %v432_v36  ;;  %v10025_v47 = vsub.f32 %v49_v2, %v10011_v57  ;;  %v443_v60 = vsub.f32 %v9995_v56, %v442_v11 }
  0x4b   :  { %7328 = vmatmul.mubr.f32.gmra.mrb[10].mxu1 %v374_v7  ;;  %8000 = vmatmul.mubr.f32.gmra.mrb[10].mxu0 %v372_v23  ;;  %v1580_v7 = vand.u32 4294901760, %v1579_v26  ;;  %v414_v23 = vand.u32 4294901760, %v413_v8  ;;  %v462_v8 = vand.u32 4294901760, %v10016_v55  ;;  %v10036_v32 = vand.u32 4294901760, %v53_v59 }
  0x4c   :  { %7330 = vmatprep.mubr.f32.mxu1 %v384_v9  ;;  %8002 = vmatprep.mubr.f32.mxu0 %v382_v46  ;;  %v12583_v46 = vand.u32 4294901760, %v9945_v31  ;;  %12584 = vst [vmem:[#allocation43_spill] sm:$0xff] %v10025_v47  ;;  %v10027_v9 = vand.u32 4294901760, %v51_v6  ;;  %v12590_v2 = vand.u32 4294901760, %v9960_v19  ;;  %v12592_v56 = vand.u32 4294901760, %v9963_v20  ;;  %v58_v31 = vld [vmem:[#allocation2 + $0xf0] sm:$0xff] }
  0x4d   :  { %8761 = vmatprep.subr.bf16.mxu0 %v8760_v52  ;;  %v8664_v26 = vpack.c.bf16 %v1580_v7, %v1573_v63  ;;  %12588 = vst [vmem:[#allocation47_spill] sm:$0xff] %v10036_v32  ;;  %v453_v63 = vsub.f32 %v10009_v62, %v452_v5  ;;  %v55_v7 = vld [vmem:[#allocation2 + $0xd8] sm:$0xff]  ;;  %v444_v45 = vand.u32 4294901760, %v443_v60 }
  0x4e   :  { %8763 = vmatpush3.bf16.msra.mxu0 %v8760_v52  ;;  %12585 = vst [vmem:[#allocation44_spill] sm:$0xff] %v10027_v9  ;;  %v10032_v52 = vsub.f32 %v50_v24, %v10018_v30  ;;  %v10045_v24 = vsub.f32 %v51_v6, %v10027_v9  ;;  %v56_v6 = vld [vmem:[#allocation2 + $0xe0] sm:$0xff]  ;;  %v10060_v19 = vand.u32 4294901760, %v55_v7 }
  0x4f   :  { %7331 = vmatmul.mubr.f32.gmra.mrb[12].mxu1 %v394_v27  ;;  %8003 = vmatmul.mubr.f32.gmra.mrb[12].mxu0 %v12583_v46  ;;  %v10034_v27 = vand.u32 4294901760, %v52_v1  ;;  %v10038_v46 = vand.u32 4294901760, %v54_v4  ;;  %v10066_v20 = vand.u32 4294901760, %v56_v6  ;;  %v64_v9 = vld [vmem:[#allocation2 + $0x120] sm:$0xff] }
  0x50   :  { %7333 = vmatprep.mubr.f32.mxu1 %v404_v58  ;;  %8005 = vmatprep.mubr.f32.mxu0 %v402_v50  ;;  %12586 = vst [vmem:[#allocation45_spill] sm:$0xff] %v10032_v52  ;;  %v434_v50 = vand.u32 4294901760, %v433_v35  ;;  %v472_v58 = vand.u32 4294901760, %v10025_v47  ;;  %12591 = vst [vmem:[#allocation49_spill] sm:$0xff] %v10045_v24  ;;  %v10055_v35 = vsub.f32 %v53_v59, %v10036_v32  ;;  %v492_v60 = vand.u32 4294901760, %v10045_v24 }
  0x51   :  { %12587 = vst [vmem:[#allocation46_spill] sm:$0xff] %v10034_v27  ;;  %12589 = vst [vmem:[#allocation48_spill] sm:$0xff] %v10038_v46  ;;  %8665 = vmatprep.subr.bf16.mxu1 %v8664_v26  ;;  %v10058_v62 = vsub.f32 %v54_v4, %v10038_v46  ;;  %v57_v4 = vld [vmem:[#allocation2 + $0xe8] sm:$0xff] }
  0x52   :  { %8667 = vmatpush3.bf16.msra.mxu1 %v8664_v26  ;;  %v463_v26 = vsub.f32 %v10016_v55, %v462_v8  ;;  %12594 = vst [vmem:[#allocation51_spill] sm:$0xff] %v10055_v35  ;;  %12596 = vst [vmem:[#allocation53_spill] sm:$0xff] %v10060_v19  ;;  %v512_v46 = vand.u32 4294901760, %v10055_v35 }
  0x53   :  { %7334 = vmatmul.mubr.f32.gmra.mrb[14].mxu1 %v414_v23  ;;  %8006 = vmatmul.mubr.f32.gmra.mrb[14].mxu0 %v12590_v2  ;;  %v482_v23 = vand.u32 4294901760, %v10032_v52  ;;  %v10052_v2 = vsub.f32 %v52_v1, %v10034_v27  ;;  %12595 = vst [vmem:[#allocation52_spill] sm:$0xff] %v10058_v62  ;;  %12597 = vst [vmem:[#allocation54_spill] sm:$0xff] %v10066_v20 }
  0x54   :  { %7336 = vmatprep.mubr.f32.mxu1 %v424_v12  ;;  %8008 = vmatprep.mubr.f32.mxu0 %v12592_v56  ;;  %v454_v12 = vand.u32 4294901760, %v453_v63  ;;  %v473_v56 = vsub.f32 %v10025_v47, %v472_v58  ;;  %v464_v1 = vand.u32 4294901760, %v463_v26  ;;  %v10074_v63 = vand.u32 4294901760, %v57_v4 }
  0x55   :  { %12593 = vst [vmem:[#allocation50_spill] sm:$0xff] %v10052_v2  ;;  %v483_v55 = vsub.f32 %v10032_v52, %v482_v23  ;;  %v502_v59 = vand.u32 4294901760, %v10052_v2  ;;  %v10076_v26 = vand.u32 4294901760, %v58_v31  ;;  %v59_v52 = vld [vmem:[#allocation2 + $0xf8] sm:$0xff] }
  0x56   :  { %12599 = vst [vmem:[#allocation56_spill] sm:$0xff] %v10074_v63 }
  0x57   :  { %7337 = vmatmul.mubr.f32.gmra.mrb[16].mxu1 %v434_v50  ;;  %8009 = vmatmul.mubr.f32.gmra.mrb[16].mxu0 %v432_v36  ;;  %v10071_v50 = vsub.f32 %v55_v7, %v10060_v19  ;;  %12600 = vst [vmem:[#allocation57_spill] sm:$0xff] %v10076_v26  ;;  %v484_v47 = vand.u32 4294901760, %v483_v55  ;;  %v503_v32 = vsub.f32 %v10052_v2, %v502_v59  ;;  %v10092_v55 = vand.u32 4294901760, %v59_v52 }
  0x58   :  { %7339 = vmatprep.mubr.f32.mxu1 %v444_v45  ;;  %8011 = vmatprep.mubr.f32.mxu0 %v442_v11  ;;  %v474_v45 = vand.u32 4294901760, %v473_v56  ;;  %v493_v11 = vsub.f32 %v10045_v24, %v492_v60  ;;  %v10080_v36 = vsub.f32 %v56_v6, %v10066_v20  ;;  %v513_v7 = vsub.f32 %v10055_v35, %v512_v46  ;;  %v60_v56 = vld [vmem:[#allocation2 + $0x100] sm:$0xff] }
  0x59   :  { %12598 = vst [vmem:[#allocation55_spill] sm:$0xff] %v10071_v50  ;;  %v12603_v24 = vand.u32 4294901760, %v9692_v14  ;;  %12604 = vst [vmem:[#allocation59_spill] sm:$0xff] %v10092_v55  ;;  %v10103_v2 = vsub.f32 %v58_v31, %v10076_v26  ;;  %v10107_v20 = vand.u32 4294901760, %v60_v56  ;;  %v12609_v31 = vand.u32 4294901760, %v10071_v50 }
  0x5a   :  { %12601 = vst [vmem:[#allocation58_spill] sm:$0xff] %v10080_v36  ;;  %v494_v35 = vand.u32 4294901760, %v493_v11 }
  0x5b   :  { %7340 = vmatmul.mubr.f32.gmra.mrb[18].mxu1 %v454_v12  ;;  %8012 = vmatmul.mubr.f32.gmra.mrb[18].mxu0 %v452_v5  ;;  %v12602_v5 = vand.u32 4294901760, %v10058_v62  ;;  %v10089_v19 = vsub.f32 %v9692_v14, %v12603_v24  ;;  %12607 = vst [vmem:[#allocation61_spill] sm:$0xff] %v10103_v2  ;;  %v504_v24 = vand.u32 4294901760, %v503_v32  ;;  %12608 = vst [vmem:[#allocation62_spill] sm:$0xff] %v10107_v20  ;;  %v63_v32 = vld [vmem:[#allocation2 + $0x118] sm:$0xff] }
  0x5c   :  { %7342 = vmatprep.mubr.f32.mxu1 %v464_v1  ;;  %8014 = vmatprep.mubr.f32.mxu0 %v462_v8  ;;  %v12605_v1 = vand.u32 4294901760, %v9697_v15  ;;  %v542_v8 = vand.u32 4294901760, %v10080_v36  ;;  %v533_v26 = vsub.f32 %v10071_v50, %v12609_v31 }
  0x5d   :  { %v523_v12 = vsub.f32 %v10058_v62, %v12602_v5  ;;  %v10100_v5 = vsub.f32 %v57_v4, %v10074_v63  ;;  %v1585_v14 = vand.u32 4294901760, %v10089_v19 }
  0x5e   :  { %v10097_v6 = vsub.f32 %v9697_v15, %v12605_v1  ;;  %v61_v15 = vld [vmem:[#allocation2 + $0x108] sm:$0xff]  ;;  %v62_v1 = vld [vmem:[#allocation2 + $0x110] sm:$0xff]  ;;  %v543_v31 = vsub.f32 %v10080_v36, %v542_v8 }
  0x5f   :  { %7343 = vmatmul.mubr.f32.gmra.mrb[20].mxu1 %v474_v45  ;;  %8015 = vmatmul.mubr.f32.gmra.mrb[20].mxu0 %v472_v58  ;;  %12606 = vst [vmem:[#allocation60_spill] sm:$0xff] %v10100_v5  ;;  %v514_v58 = vand.u32 4294901760, %v513_v7  ;;  %v524_v11 = vand.u32 4294901760, %v523_v12  ;;  %v1586_v4 = vsub.f32 %v10089_v19, %v1585_v14  ;;  %v552_v27 = vand.u32 4294901760, %v10100_v5  ;;  %v65_v36 = vld [vmem:[#allocation2 + $0x128] sm:$0xff] }
  0x60   :  { %7345 = vmatprep.mubr.f32.mxu1 %v484_v47  ;;  %8017 = vmatprep.mubr.f32.mxu0 %v482_v23  ;;  %v1592_v45 = vand.u32 4294901760, %v10097_v6  ;;  %v10115_v47 = vsub.f32 %v59_v52, %v10092_v55  ;;  %v562_v7 = vand.u32 4294901760, %v10103_v2  ;;  %v10120_v12 = vand.u32 4294901760, %v61_v15 }
  0x61   :  { %v1587_v30 = vand.u32 4294901760, %v1586_v4  ;;  %v10124_v52 = vsub.f32 %v60_v56, %v10107_v20  ;;  %v10126_v55 = vand.u32 4294901760, %v62_v1  ;;  %v534_v4 = vand.u32 4294901760, %v533_v26 }
  0x62   :  { %12610 = vst [vmem:[#allocation63_spill] sm:$0xff] %v10115_v47  ;;  %v1593_v23 = vsub.f32 %v10097_v6, %v1592_v45  ;;  %v8764_v63 = vpack.c.bf16 %v1592_v45, %v1585_v14  ;;  %12611 = vst [vmem:[#allocation64_spill] sm:$0xff] %v10120_v12  ;;  %v10135_v56 = vsub.f32 %v61_v15, %v10120_v12  ;;  %v544_v20 = vand.u32 4294901760, %v543_v31 }
  0x63   :  { %7346 = vmatmul.mubr.f32.gmra.mrb[22].mxu1 %v494_v35  ;;  %8018 = vmatmul.mubr.f32.gmra.mrb[22].mxu0 %v492_v60  ;;  %12612 = vst [vmem:[#allocation65_spill] sm:$0xff] %v10124_v52  ;;  %12613 = vst [vmem:[#allocation66_spill] sm:$0xff] %v10126_v55  ;;  %v10128_v35 = vand.u32 4294901760, %v63_v32  ;;  %v10130_v60 = vand.u32 4294901760, %v64_v9  ;;  %v563_v57 = vsub.f32 %v10103_v2, %v562_v7  ;;  %v12622_v31 = vand.u32 4294901760, %v10071_v50 }
  0x64   :  { %7348 = vmatprep.mubr.f32.mxu1 %v504_v24  ;;  %8020 = vmatprep.mubr.f32.mxu0 %v502_v59  ;;  %v1594_v14 = vand.u32 4294901760, %v1593_v23  ;;  %v553_v59 = vsub.f32 %v10100_v5, %v552_v27  ;;  %v572_v24 = vand.u32 4294901760, %v10115_v47  ;;  %12616 = vst [vmem:[#allocation69_spill] sm:$0xff] %v10135_v56  ;;  %v12617_v23 = vand.u32 4294901760, %v10058_v62  ;;  %v68_v62 = vld [vmem:[#allocation2 + $0x140] sm:$0xff] }
  0x65   :  { %12614 = vst [vmem:[#allocation67_spill] sm:$0xff] %v10128_v35  ;;  %8765 = vmatprep.subr.bf16.mxu0 %v8764_v63  ;;  %12615 = vst [vmem:[#allocation68_spill] sm:$0xff] %v10130_v60  ;;  %v10145_v26 = vsub.f32 %v63_v32, %v10128_v35  ;;  %v10148_v15 = vsub.f32 %v64_v9, %v10130_v60  ;;  %v564_v32 = vand.u32 4294901760, %v563_v57 }
  0x66   :  { %v8668_v45 = vpack.c.bf16 %v1594_v14, %v1587_v30  ;;  %8767 = vmatpush3.bf16.msra.mxu0 %v8764_v63  ;;  %v582_v30 = vand.u32 4294901760, %v10124_v52  ;;  %v66_v63 = vld [vmem:[#allocation2 + $0x130] sm:$0xff]  ;;  %v554_v14 = vand.u32 4294901760, %v553_v59 }
  0x67   :  { %7349 = vmatmul.mubr.f32.gmra.mrb[24].mxu1 %v514_v58  ;;  %8021 = vmatmul.mubr.f32.gmra.mrb[24].mxu0 %v512_v46  ;;  %v10142_v46 = vsub.f32 %v62_v1, %v10126_v55  ;;  %12619 = vst [vmem:[#allocation71_spill] sm:$0xff] %v10145_v26  ;;  %12620 = vst [vmem:[#allocation72_spill] sm:$0xff] %v10148_v15  ;;  %v10150_v58 = vand.u32 4294901760, %v65_v36  ;;  %v573_v1 = vsub.f32 %v10115_v47, %v572_v24  ;;  %v69_v47 = vld [vmem:[#allocation2 + $0x148] sm:$0xff] }
  0x68   :  { %7351 = vmatprep.mubr.f32.mxu1 %v524_v11  ;;  %8023 = vmatprep.mubr.f32.mxu0 %v12617_v23  ;;  %v67_v11 = vld [vmem:[#allocation2 + $0x138] sm:$0xff]  ;;  %v592_v23 = vand.u32 4294901760, %v10135_v56  ;;  %v10156_v2 = vand.u32 4294901760, %v66_v63  ;;  %v583_v9 = vsub.f32 %v10124_v52, %v582_v30  ;;  %v10171_v52 = vand.u32 4294901760, %v68_v62 }
  0x69   :  { %12618 = vst [vmem:[#allocation70_spill] sm:$0xff] %v10142_v46  ;;  %8669 = vmatprep.subr.bf16.mxu1 %v8668_v45  ;;  %12621 = vst [vmem:[#allocation73_spill] sm:$0xff] %v10150_v58  ;;  %v602_v5 = vand.u32 4294901760, %v10142_v46 }
  0x6a   :  { %8671 = vmatpush3.bf16.msra.mxu1 %v8668_v45  ;;  %12623 = vst [vmem:[#allocation74_spill] sm:$0xff] %v10156_v2  ;;  %v612_v45 = vand.u32 4294901760, %v10145_v26  ;;  %v593_v57 = vsub.f32 %v10135_v56, %v592_v23  ;;  %12627 = vst [vmem:[#allocation78_spill] sm:$0xff] %v10171_v52  ;;  %v584_v50 = vand.u32 4294901760, %v583_v9 }
  0x6b   :  { %7352 = vmatmul.mubr.f32.gmra.mrb[26].mxu1 %v534_v4  ;;  %8024 = vmatmul.mubr.f32.gmra.mrb[26].mxu0 %v12622_v31  ;;  %v10161_v4 = vand.u32 4294901760, %v67_v11  ;;  %v10165_v31 = vsub.f32 %v65_v36, %v10150_v58  ;;  %v603_v60 = vsub.f32 %v10142_v46, %v602_v5 }
  0x6c   :  { %7354 = vmatprep.mubr.f32.mxu1 %v544_v20  ;;  %8026 = vmatprep.mubr.f32.mxu0 %v542_v8  ;;  %v574_v20 = vand.u32 4294901760, %v573_v1  ;;  %v10169_v8 = vsub.f32 %v66_v63, %v10156_v2  ;;  %v613_v59 = vsub.f32 %v10145_v26, %v612_v45  ;;  %v12630_v1 = vand.u32 4294901760, %v10148_v15  ;;  %v72_v2 = vld [vmem:[#allocation2 + $0x160] sm:$0xff] }
  0x6d   :  { %12624 = vst [vmem:[#allocation75_spill] sm:$0xff] %v10161_v4  ;;  %12625 = vst [vmem:[#allocation76_spill] sm:$0xff] %v10165_v31  ;;  %v10176_v36 = vsub.f32 %v67_v11, %v10161_v4  ;;  %v632_v56 = vand.u32 4294901760, %v10165_v31  ;;  %v594_v9 = vand.u32 4294901760, %v593_v57  ;;  %v10191_v26 = vsub.f32 %v68_v62, %v10171_v52 }
  0x6e   :  { %12626 = vst [vmem:[#allocation77_spill] sm:$0xff] %v10169_v8  ;;  %v623_v63 = vsub.f32 %v10148_v15, %v12630_v1  ;;  %v642_v11 = vand.u32 4294901760, %v10169_v8  ;;  %v604_v46 = vand.u32 4294901760, %v603_v60  ;;  %v71_v1 = vld [vmem:[#allocation2 + $0x158] sm:$0xff] }
  0x6f   :  { %7355 = vmatmul.mubr.f32.gmra.mrb[28].mxu1 %v554_v14  ;;  %8027 = vmatmul.mubr.f32.gmra.mrb[28].mxu0 %v552_v27  ;;  %12628 = vst [vmem:[#allocation79_spill] sm:$0xff] %v10176_v36  ;;  %v10178_v14 = vand.u32 4294901760, %v69_v47  ;;  %v70_v27 = vld [vmem:[#allocation2 + $0x150] sm:$0xff]  ;;  %12632 = vst [vmem:[#allocation81_spill] sm:$0xff] %v10191_v26  ;;  %v652_v57 = vand.u32 4294901760, %v10176_v36  ;;  %v633_v60 = vsub.f32 %v10165_v31, %v632_v56 }
  0x70   :  { %7357 = vmatprep.mubr.f32.mxu1 %v564_v32  ;;  %8029 = vmatprep.mubr.f32.mxu0 %v562_v7  ;;  %v12631_v32 = vand.u32 4294901760, %v9718_v21  ;;  %v10193_v4 = vand.u32 4294901760, %v70_v27  ;;  %v643_v52 = vsub.f32 %v10169_v8, %v642_v11 }
  0x71   :  { %12629 = vst [vmem:[#allocation80_spill] sm:$0xff] %v10178_v14  ;;  %v10203_v62 = vsub.f32 %v69_v47, %v10178_v14  ;;  %v653_v8 = vsub.f32 %v10176_v36, %v652_v57 }
  0x72   :  { %v10187_v7 = vsub.f32 %v9718_v21, %v12631_v32  ;;  %12633 = vst [vmem:[#allocation82_spill] sm:$0xff] %v10193_v4  ;;  %v12634_v21 = vand.u32 4294901760, %v9723_v22  ;;  %v10215_v47 = vsub.f32 %v70_v27, %v10193_v4  ;;  %v75_v4 = vld [vmem:[#allocation2 + $0x178] sm:$0xff] }
  0x73   :  { %7358 = vmatmul.mubr.f32.gmra.mrb[30].mxu1 %v574_v20  ;;  %8030 = vmatmul.mubr.f32.gmra.mrb[30].mxu0 %v572_v24  ;;  %v614_v24 = vand.u32 4294901760, %v613_v59  ;;  %12635 = vst [vmem:[#allocation83_spill] sm:$0xff] %v10203_v62  ;;  %v10212_v59 = vand.u32 4294901760, %v72_v2  ;;  %v672_v55 = vand.u32 4294901760, %v10203_v62 }
  0x74   :  { %7360 = vmatprep.mubr.f32.mxu1 %v584_v50  ;;  %8032 = vmatprep.mubr.f32.mxu0 %v582_v30  ;;  %v1599_v58 = vand.u32 4294901760, %v10187_v7  ;;  %v10199_v20 = vsub.f32 %v9723_v22, %v12634_v21  ;;  %v624_v50 = vand.u32 4294901760, %v623_v63  ;;  %v662_v22 = vand.u32 4294901760, %v10191_v26  ;;  %12638 = vst [vmem:[#allocation86_spill] sm:$0xff] %v10215_v47  ;;  %v73_v63 = vld [vmem:[#allocation2 + $0x168] sm:$0xff] }
  0x75   :  { %v10210_v21 = vand.u32 4294901760, %v71_v1  ;;  %12637 = vst [vmem:[#allocation85_spill] sm:$0xff] %v10212_v59 }
  0x76   :  { %v1600_v30 = vsub.f32 %v10187_v7, %v1599_v58  ;;  %v1606_v32 = vand.u32 4294901760, %v10199_v20 }
  0x77   :  { %7361 = vmatmul.mubr.f32.gmra.mrb[32].mxu1 %v594_v9  ;;  %8033 = vmatmul.mubr.f32.gmra.mrb[32].mxu0 %v592_v23  ;;  %12636 = vst [vmem:[#allocation84_spill] sm:$0xff] %v10210_v21  ;;  %v74_v9 = vld [vmem:[#allocation2 + $0x170] sm:$0xff]  ;;  %v634_v23 = vand.u32 4294901760, %v633_v60  ;;  %v10222_v27 = vsub.f32 %v71_v1, %v10210_v21  ;;  %v12641_v60 = vand.u32 4294901760, %v10148_v15 }
  0x78   :  { %7363 = vmatprep.mubr.f32.mxu1 %v604_v46  ;;  %8035 = vmatprep.mubr.f32.mxu0 %v602_v5  ;;  %v1601_v31 = vand.u32 4294901760, %v1600_v30  ;;  %v1607_v14 = vsub.f32 %v10199_v20, %v1606_v32  ;;  %v8768_v35 = vpack.c.bf16 %v1606_v32, %v1599_v58  ;;  %v644_v46 = vand.u32 4294901760, %v643_v52  ;;  %v76_v58 = vld [vmem:[#allocation2 + $0x180] sm:$0xff] }
  0x79   :  { %v663_v5 = vsub.f32 %v10191_v26, %v662_v22  ;;  %12639 = vst [vmem:[#allocation87_spill] sm:$0xff] %v10222_v27  ;;  %v10224_v30 = vand.u32 4294901760, %v73_v63  ;;  %v682_v32 = vand.u32 4294901760, %v10215_v47  ;;  %v10236_v1 = vand.u32 4294901760, %v76_v58 }
  0x7a   :  { %v1608_v12 = vand.u32 4294901760, %v1607_v14  ;;  %8769 = vmatprep.subr.bf16.mxu0 %v8768_v35  ;;  %v10230_v14 = vsub.f32 %v72_v2, %v10212_v59  ;;  %v673_v26 = vsub.f32 %v10203_v62, %v672_v55  ;;  %v77_v2 = vld [vmem:[#allocation2 + $0x188] sm:$0xff]  ;;  %v80_v62 = vld [vmem:[#allocation2 + $0x1a0] sm:$0xff] }
  0x7b   :  { %7364 = vmatmul.mubr.f32.gmra.mrb[34].mxu1 %v614_v24  ;;  %8036 = vmatmul.mubr.f32.gmra.mrb[34].mxu0 %v612_v45  ;;  %12640 = vst [vmem:[#allocation88_spill] sm:$0xff] %v10224_v30  ;;  %v10232_v45 = vand.u32 4294901760, %v74_v9  ;;  %v10234_v24 = vand.u32 4294901760, %v75_v4  ;;  %12645 = vst [vmem:[#allocation92_spill] sm:$0xff] %v10236_v1  ;;  %v10241_v36 = vsub.f32 %v73_v63, %v10224_v30  ;;  %v10254_v63 = vand.u32 4294901760, %v77_v2 }
  0x7c   :  { %7366 = vmatprep.mubr.f32.mxu1 %v624_v50  ;;  %8038 = vmatprep.mubr.f32.mxu0 %v12641_v60  ;;  %12642 = vst [vmem:[#allocation89_spill] sm:$0xff] %v10230_v14  ;;  %v8672_v52 = vpack.c.bf16 %v1608_v12, %v1601_v31  ;;  %v654_v50 = vand.u32 4294901760, %v653_v8  ;;  %v692_v60 = vand.u32 4294901760, %v10222_v27  ;;  %v664_v12 = vand.u32 4294901760, %v663_v5 }
  0x7d   :  { %12643 = vst [vmem:[#allocation90_spill] sm:$0xff] %v10232_v45  ;;  %8771 = vmatpush3.bf16.msra.mxu0 %v8768_v35  ;;  %12644 = vst [vmem:[#allocation91_spill] sm:$0xff] %v10234_v24  ;;  %v683_v35 = vsub.f32 %v10215_v47, %v682_v32  ;;  %v702_v31 = vand.u32 4294901760, %v10230_v14  ;;  %v10246_v15 = vsub.f32 %v74_v9, %v10232_v45  ;;  %v712_v5 = vand.u32 4294901760, %v10241_v36 }
  0x7e   :  { %8673 = vmatprep.subr.bf16.mxu1 %v8672_v52  ;;  %12646 = vst [vmem:[#allocation93_spill] sm:$0xff] %v10241_v36  ;;  %v10249_v8 = vsub.f32 %v75_v4, %v10234_v24  ;;  %12650 = vst [vmem:[#allocation97_spill] sm:$0xff] %v10254_v63 }
  0x7f   :  { %7367 = vmatmul.mubr.f32.gmra.mrb[36].mxu1 %v634_v23  ;;  %8039 = vmatmul.mubr.f32.gmra.mrb[36].mxu0 %v632_v56  ;;  %12647 = vst [vmem:[#allocation94_spill] sm:$0xff] %v10246_v15  ;;  %v78_v56 = vld [vmem:[#allocation2 + $0x190] sm:$0xff]  ;;  %v10252_v23 = vsub.f32 %v76_v58, %v10236_v1  ;;  %v684_v9 = vand.u32 4294901760, %v683_v35  ;;  %v722_v4 = vand.u32 4294901760, %v10246_v15  ;;  %v79_v58 = vld [vmem:[#allocation2 + $0x198] sm:$0xff]  ;;  %v81_v35 = vld [vmem:[#allocation2 + $0x1a8] sm:$0xff] }
  0x80   :  { %7369 = vmatprep.mubr.f32.mxu1 %v644_v46  ;;  %8041 = vmatprep.mubr.f32.mxu0 %v642_v11  ;;  %12648 = vst [vmem:[#allocation95_spill] sm:$0xff] %v10249_v8  ;;  %v674_v11 = vand.u32 4294901760, %v673_v26  ;;  %v693_v46 = vsub.f32 %v10222_v27, %v692_v60  ;;  %v10260_v47 = vand.u32 4294901760, %v78_v56  ;;  %v10265_v26 = vsub.f32 %v77_v2, %v10254_v63  ;;  %v82_v2 = vld [vmem:[#allocation2 + $0x1b0] sm:$0xff] }
  0x81   :  { %8675 = vmatpush3.bf16.msra.mxu1 %v8672_v52  ;;  %12649 = vst [vmem:[#allocation96_spill] sm:$0xff] %v10252_v23  ;;  %v703_v52 = vsub.f32 %v10230_v14, %v702_v31  ;;  %v723_v27 = vsub.f32 %v10246_v15, %v722_v4  ;;  %v10304_v24 = vand.u32 4294901760, %v82_v2 }
  0x82   :  { %12651 = vst [vmem:[#allocation98_spill] sm:$0xff] %v10260_v47  ;;  %12652 = vst [vmem:[#allocation99_spill] sm:$0xff] %v10265_v26  ;;  %v10272_v1 = vsub.f32 %v78_v56, %v10260_v47  ;;  %v12659_v56 = vand.u32 4294901760, %v10252_v23  ;;  %v752_v15 = vand.u32 4294901760, %v10265_v26  ;;  %v10293_v47 = vand.u32 4294901760, %v81_v35 }
  0x83   :  { %7370 = vmatmul.mubr.f32.gmra.mrb[38].mxu1 %v654_v50  ;;  %8042 = vmatmul.mubr.f32.gmra.mrb[38].mxu0 %v652_v57  ;;  %v694_v50 = vand.u32 4294901760, %v693_v46  ;;  %v704_v14 = vand.u32 4294901760, %v703_v52  ;;  %v10274_v57 = vand.u32 4294901760, %v80_v62  ;;  %v12657_v46 = vand.u32 4294901760, %v9749_v29  ;;  %12663 = vst [vmem:[#allocation106_spill] sm:$0xff] %v10304_v24 }
  0x84   :  { %7372 = vmatprep.mubr.f32.mxu1 %v664_v12  ;;  %8044 = vmatprep.mubr.f32.mxu0 %v662_v22  ;;  %v713_v22 = vsub.f32 %v10241_v36, %v712_v5  ;;  %v10268_v12 = vand.u32 4294901760, %v79_v58  ;;  %12654 = vst [vmem:[#allocation101_spill] sm:$0xff] %v10272_v1  ;;  %v743_v52 = vsub.f32 %v10252_v23, %v12659_v56  ;;  %12660 = vst [vmem:[#allocation103_spill] sm:$0xff] %v10293_v47 }
  0x85   :  { %12655 = vst [vmem:[#allocation102_spill] sm:$0xff] %v10274_v57  ;;  %v10284_v36 = vsub.f32 %v9749_v29, %v12657_v46  ;;  %v762_v63 = vand.u32 4294901760, %v10272_v1  ;;  %v10302_v56 = vsub.f32 %v80_v62, %v10274_v57  ;;  %v85_v57 = vld [vmem:[#allocation2 + $0x1c8] sm:$0xff] }
  0x86   :  { %12653 = vst [vmem:[#allocation100_spill] sm:$0xff] %v10268_v12  ;;  %v744_v30 = vand.u32 4294901760, %v743_v52  ;;  %v10318_v52 = vsub.f32 %v82_v2, %v10304_v24 }
  0x87   :  { %7373 = vmatmul.mubr.f32.gmra.mrb[40].mxu1 %v674_v11  ;;  %8045 = vmatmul.mubr.f32.gmra.mrb[40].mxu0 %v672_v55  ;;  %v12656_v11 = vand.u32 4294901760, %v9744_v28  ;;  %v1620_v46 = vand.u32 4294901760, %v10284_v36  ;;  %12662 = vst [vmem:[#allocation105_spill] sm:$0xff] %v10302_v56 }
  0x88   :  { %7375 = vmatprep.mubr.f32.mxu1 %v684_v9  ;;  %8047 = vmatprep.mubr.f32.mxu0 %v682_v32  ;;  %v12658_v32 = vand.u32 4294901760, %v10249_v8  ;;  %12666 = vst [vmem:[#allocation109_spill] sm:$0xff] %v10318_v52 }
  0x89   :  { %v10279_v55 = vsub.f32 %v9744_v28, %v12656_v11  ;;  %v714_v28 = vand.u32 4294901760, %v713_v22  ;;  %v10296_v11 = vsub.f32 %v79_v58, %v10268_v12  ;;  %v1621_v58 = vsub.f32 %v10284_v36, %v1620_v46 }
  0x8a   :  { %v733_v9 = vsub.f32 %v10249_v8, %v12658_v32  ;;  %v724_v32 = vand.u32 4294901760, %v723_v27  ;;  %v10310_v27 = vsub.f32 %v81_v35, %v10293_v47  ;;  %v98_v47 = vld [vmem:[#allocation2 + $0x230] sm:$0xff] }
  0x8b   :  { %7376 = vmatmul.mubr.f32.gmra.mrb[42].mxu1 %v694_v50  ;;  %8048 = vmatmul.mubr.f32.gmra.mrb[42].mxu0 %v692_v60  ;;  %12661 = vst [vmem:[#allocation104_spill] sm:$0xff] %v10296_v11  ;;  %v1613_v29 = vand.u32 4294901760, %v10279_v55  ;;  %v83_v50 = vld [vmem:[#allocation2 + $0x1b8] sm:$0xff]  ;;  %v84_v60 = vld [vmem:[#allocation2 + $0x1c0] sm:$0xff]  ;;  %v772_v62 = vand.u32 4294901760, %v10296_v11  ;;  %v1622_v21 = vand.u32 4294901760, %v1621_v58 }
  0x8c   :  { %7378 = vmatprep.mubr.f32.mxu1 %v704_v14  ;;  %8050 = vmatprep.mubr.f32.mxu0 %v702_v31  ;;  %v734_v45 = vand.u32 4294901760, %v733_v9  ;;  %v753_v14 = vsub.f32 %v10265_v26, %v752_v15  ;;  %12664 = vst [vmem:[#allocation107_spill] sm:$0xff] %v10310_v27  ;;  %v10313_v31 = vand.u32 4294901760, %v83_v50  ;;  %v782_v9 = vand.u32 4294901760, %v10302_v56 }
  0x8d   :  { %v1614_v22 = vsub.f32 %v10279_v55, %v1613_v29  ;;  %v8772_v12 = vpack.c.bf16 %v1620_v46, %v1613_v29  ;;  %v763_v29 = vsub.f32 %v10272_v1, %v762_v63  ;;  %v10320_v35 = vand.u32 4294901760, %v84_v60 }
  0x8e   :  { %12665 = vst [vmem:[#allocation108_spill] sm:$0xff] %v10313_v31  ;;  %v792_v46 = vand.u32 4294901760, %v10310_v27  ;;  %v10323_v26 = vand.u32 4294901760, %v85_v57  ;;  %v773_v58 = vsub.f32 %v10296_v11, %v772_v62  ;;  %v10329_v2 = vsub.f32 %v83_v50, %v10313_v31 }
  0x8f   :  { %7379 = vmatmul.mubr.f32.gmra.mrb[44].mxu1 %v714_v28  ;;  %8051 = vmatmul.mubr.f32.gmra.mrb[44].mxu0 %v712_v5  ;;  %v1615_v59 = vand.u32 4294901760, %v1614_v22  ;;  %12667 = vst [vmem:[#allocation110_spill] sm:$0xff] %v10320_v35  ;;  %v86_v28 = vld [vmem:[#allocation2 + $0x1d0] sm:$0xff]  ;;  %v87_v22 = vld [vmem:[#allocation2 + $0x1d8] sm:$0xff]  ;;  %v783_v24 = vsub.f32 %v10302_v56, %v782_v9 }
  0x90   :  { %7381 = vmatprep.mubr.f32.mxu1 %v724_v32  ;;  %8053 = vmatprep.mubr.f32.mxu0 %v722_v4  ;;  %12668 = vst [vmem:[#allocation111_spill] sm:$0xff] %v10323_v26  ;;  %v12669_v4 = vand.u32 4294901760, %v10249_v8  ;;  %v754_v32 = vand.u32 4294901760, %v753_v14  ;;  %12670 = vst [vmem:[#allocation112_spill] sm:$0xff] %v10329_v2  ;;  %v10331_v1 = vand.u32 4294901760, %v86_v28  ;;  %v88_v14 = vld [vmem:[#allocation2 + $0x1e0] sm:$0xff]  ;;  %v793_v50 = vsub.f32 %v10310_v27, %v792_v46 }
  0x91   :  { %v8676_v5 = vpack.c.bf16 %v1622_v21, %v1615_v59  ;;  %8773 = vmatprep.subr.bf16.mxu0 %v8772_v12  ;;  %v12672_v21 = vand.u32 4294901760, %v10252_v23  ;;  %v764_v59 = vand.u32 4294901760, %v763_v29  ;;  %v10344_v11 = vsub.f32 %v85_v57, %v10323_v26 }
  0x92   :  { %8775 = vmatpush3.bf16.msra.mxu0 %v8772_v12  ;;  %12671 = vst [vmem:[#allocation113_spill] sm:$0xff] %v10331_v1  ;;  %v10338_v12 = vsub.f32 %v84_v60, %v10320_v35  ;;  %v774_v29 = vand.u32 4294901760, %v773_v58  ;;  %v10348_v56 = vsub.f32 %v86_v28, %v10331_v1  ;;  %v10350_v60 = vand.u32 4294901760, %v88_v14 }
  0x93   :  { %7382 = vmatmul.mubr.f32.gmra.mrb[46].mxu1 %v734_v45  ;;  %8054 = vmatmul.mubr.f32.gmra.mrb[46].mxu0 %v12669_v4  ;;  %v802_v45 = vand.u32 4294901760, %v10318_v52  ;;  %v10340_v4 = vand.u32 4294901760, %v87_v22  ;;  %12675 = vst [vmem:[#allocation116_spill] sm:$0xff] %v10344_v11  ;;  %v784_v23 = vand.u32 4294901760, %v783_v24  ;;  %v794_v28 = vand.u32 4294901760, %v793_v50  ;;  %v92_v50 = vld [vmem:[#allocation2 + $0x200] sm:$0xff] }
  0x94   :  { %7384 = vmatprep.mubr.f32.mxu1 %v744_v30  ;;  %8056 = vmatprep.mubr.f32.mxu0 %v12672_v21  ;;  %12673 = vst [vmem:[#allocation114_spill] sm:$0xff] %v10338_v12  ;;  %v89_v30 = vld [vmem:[#allocation2 + $0x1e8] sm:$0xff]  ;;  %v812_v21 = vand.u32 4294901760, %v10329_v2  ;;  %12676 = vst [vmem:[#allocation117_spill] sm:$0xff] %v10348_v56  ;;  %v822_v57 = vand.u32 4294901760, %v10338_v12  ;;  %v10363_v24 = vsub.f32 %v88_v14, %v10350_v60  ;;  %v12684_v1 = vand.u32 4294901760, %v9767_v37 }
  0x95   :  { %12674 = vst [vmem:[#allocation115_spill] sm:$0xff] %v10340_v4  ;;  %8677 = vmatprep.subr.bf16.mxu1 %v8676_v5  ;;  %12677 = vst [vmem:[#allocation118_spill] sm:$0xff] %v10350_v60  ;;  %v803_v27 = vsub.f32 %v10318_v52, %v802_v45  ;;  %v10355_v8 = vsub.f32 %v87_v22, %v10340_v4 }
  0x96   :  { %8679 = vmatpush3.bf16.msra.mxu1 %v8676_v5  ;;  %v10357_v5 = vand.u32 4294901760, %v89_v30  ;;  %v813_v58 = vsub.f32 %v10329_v2, %v812_v21  ;;  %12680 = vst [vmem:[#allocation121_spill] sm:$0xff] %v10363_v24  ;;  %v823_v52 = vsub.f32 %v10338_v12, %v822_v57 }
  0x97   :  { %7385 = vmatmul.mubr.f32.gmra.mrb[48].mxu1 %v754_v32  ;;  %8057 = vmatmul.mubr.f32.gmra.mrb[48].mxu0 %v752_v15  ;;  %12678 = vst [vmem:[#allocation119_spill] sm:$0xff] %v10355_v8  ;;  %v90_v15 = vld [vmem:[#allocation2 + $0x1f0] sm:$0xff]  ;;  %v832_v32 = vand.u32 4294901760, %v10344_v11  ;;  %v804_v22 = vand.u32 4294901760, %v803_v27 }
  0x98   :  { %7387 = vmatprep.mubr.f32.mxu1 %v764_v59  ;;  %8059 = vmatprep.mubr.f32.mxu0 %v762_v63  ;;  %12679 = vst [vmem:[#allocation120_spill] sm:$0xff] %v10357_v5  ;;  %v842_v63 = vand.u32 4294901760, %v10348_v56  ;;  %v91_v59 = vld [vmem:[#allocation2 + $0x1f8] sm:$0xff]  ;;  %v10366_v4 = vand.u32 4294901760, %v90_v15  ;;  %v814_v14 = vand.u32 4294901760, %v813_v58  ;;  %v12687_v58 = vand.u32 4294901760, %v10355_v8 }
  0x99   :  { %v10373_v2 = vand.u32 4294901760, %v91_v59 }
  0x9a   :  { %12681 = vst [vmem:[#allocation122_spill] sm:$0xff] %v10366_v4  ;;  %v10385_v12 = vsub.f32 %v90_v15, %v10366_v4  ;;  %v853_v27 = vsub.f32 %v10355_v8, %v12687_v58  ;;  %v12691_v58 = vand.u32 4294901760, %v10363_v24 }
  0x9b   :  { %7388 = vmatmul.mubr.f32.gmra.mrb[50].mxu1 %v774_v29  ;;  %8060 = vmatmul.mubr.f32.gmra.mrb[50].mxu0 %v772_v62  ;;  %v10370_v62 = vsub.f32 %v89_v30, %v10357_v5  ;;  %v833_v29 = vsub.f32 %v10344_v11, %v832_v32  ;;  %12683 = vst [vmem:[#allocation124_spill] sm:$0xff] %v10373_v2  ;;  %v824_v11 = vand.u32 4294901760, %v823_v52  ;;  %v94_v5 = vld [vmem:[#allocation2 + $0x210] sm:$0xff]  ;;  %v9588_v52 = vld [vmem:[%s12098_s1 + $0x68] sm:$0xff] }
  0x9c   :  { %7390 = vmatprep.mubr.f32.mxu1 %v784_v23  ;;  %8062 = vmatprep.mubr.f32.mxu0 %v782_v9  ;;  %v843_v23 = vsub.f32 %v10348_v56, %v842_v63  ;;  %v9587_v9 = vld [vmem:[%s12098_s1 + $0x60] sm:$0xff]  ;;  %12685 = vst [vmem:[#allocation125_spill] sm:$0xff] %v10385_v12  ;;  %v863_v56 = vsub.f32 %v10363_v24, %v12691_v58 }
  0x9d   :  { %12682 = vst [vmem:[#allocation123_spill] sm:$0xff] %v10370_v62  ;;  %v10382_v30 = vsub.f32 %v9587_v9, %v12684_v1  ;;  %v834_v1 = vand.u32 4294901760, %v833_v29  ;;  %v882_v29 = vand.u32 4294901760, %v10385_v12 }
  0x9e   :  { %v844_v9 = vand.u32 4294901760, %v843_v23 }
  0x9f   :  { %7391 = vmatmul.mubr.f32.gmra.mrb[52].mxu1 %v794_v28  ;;  %8063 = vmatmul.mubr.f32.gmra.mrb[52].mxu0 %v792_v46  ;;  %v10387_v46 = vand.u32 4294901760, %v92_v50  ;;  %v93_v28 = vld [vmem:[#allocation2 + $0x208] sm:$0xff]  ;;  %v1627_v37 = vand.u32 4294901760, %v10382_v30 }
  0xa0   :  { %7393 = vmatprep.mubr.f32.mxu1 %v804_v22  ;;  %8065 = vmatprep.mubr.f32.mxu0 %v802_v45  ;;  %v10395_v22 = vsub.f32 %v91_v59, %v10373_v2  ;;  %v12689_v45 = vand.u32 4294901760, %v9772_v38  ;;  %v10407_v4 = vand.u32 4294901760, %v93_v28  ;;  %v10414_v38 = vand.u32 4294901760, %v94_v5 }
  0xa1   :  { %12686 = vst [vmem:[#allocation126_spill] sm:$0xff] %v10387_v46  ;;  %v1628_v59 = vsub.f32 %v10382_v30, %v1627_v37  ;;  %v10412_v2 = vsub.f32 %v92_v50, %v10387_v46  ;;  %v864_v50 = vand.u32 4294901760, %v863_v56 }
  0xa2   :  { %12688 = vst [vmem:[#allocation127_spill] sm:$0xff] %v10395_v22  ;;  %v10402_v15 = vsub.f32 %v9588_v52, %v12689_v45  ;;  %12692 = vst [vmem:[#allocation129_spill] sm:$0xff] %v10407_v4  ;;  %v854_v52 = vand.u32 4294901760, %v853_v27  ;;  %v12695_v45 = vand.u32 4294901760, %v10370_v62  ;;  %v892_v60 = vand.u32 4294901760, %v10395_v22 }
  0xa3   :  { %7394 = vmatmul.mubr.f32.gmra.mrb[54].mxu1 %v814_v14  ;;  %8066 = vmatmul.mubr.f32.gmra.mrb[54].mxu0 %v812_v21  ;;  %12693 = vst [vmem:[#allocation130_spill] sm:$0xff] %v10412_v2  ;;  %12694 = vst [vmem:[#allocation131_spill] sm:$0xff] %v10414_v38  ;;  %v95_v14 = vld [vmem:[#allocation2 + $0x218] sm:$0xff]  ;;  %v96_v21 = vld [vmem:[#allocation2 + $0x220] sm:$0xff]  ;;  %v10423_v46 = vsub.f32 %v93_v28, %v10407_v4  ;;  %v10436_v28 = vand.u32 4294901760, %v98_v47 }
  0xa4   :  { %12690 = vst [vmem:[#allocation128_spill] sm:$0xff] %v10402_v15  ;;  %7396 = vmatprep.mubr.f32.mxu1 %v824_v11  ;;  %8068 = vmatprep.mubr.f32.mxu0 %v822_v57  ;;  %v1634_v23 = vand.u32 4294901760, %v10402_v15  ;;  %v873_v58 = vsub.f32 %v10370_v62, %v12695_v45  ;;  %v97_v11 = vld [vmem:[#allocation2 + $0x228] sm:$0xff]  ;;  %v1629_v57 = vand.u32 4294901760, %v1628_v59  ;;  %v10425_v31 = vand.u32 4294901760, %v95_v14 }
  0xa5   :  { %12696 = vst [vmem:[#allocation132_spill] sm:$0xff] %v10423_v46  ;;  %v10427_v27 = vand.u32 4294901760, %v96_v21  ;;  %v883_v45 = vsub.f32 %v10385_v12, %v882_v29  ;;  %v902_v59 = vand.u32 4294901760, %v10412_v2  ;;  %12701 = vst [vmem:[#allocation137_spill] sm:$0xff] %v10436_v28  ;;  %v912_v12 = vand.u32 4294901760, %v10423_v46 }
  0xa6   :  { %v1635_v26 = vsub.f32 %v10402_v15, %v1634_v23  ;;  %v8776_v35 = vpack.c.bf16 %v1634_v23, %v1627_v37  ;;  %12697 = vst [vmem:[#allocation133_spill] sm:$0xff] %v10425_v31  ;;  %v10432_v15 = vsub.f32 %v94_v5, %v10414_v38  ;;  %v874_v56 = vand.u32 4294901760, %v873_v58 }
  0xa7   :  { %7397 = vmatmul.mubr.f32.gmra.mrb[56].mxu1 %v834_v1  ;;  %8069 = vmatmul.mubr.f32.gmra.mrb[56].mxu0 %v832_v32  ;;  %12698 = vst [vmem:[#allocation134_spill] sm:$0xff] %v10427_v27  ;;  %v10434_v32 = vand.u32 4294901760, %v97_v11  ;;  %v99_v1 = vld [vmem:[#allocation2 + $0x238] sm:$0xff]  ;;  %v10443_v5 = vsub.f32 %v95_v14, %v10425_v31  ;;  %v12705_v58 = vand.u32 4294901760, %v10363_v24  ;;  %v10458_v14 = vsub.f32 %v98_v47, %v10436_v28  ;;  %v101_v47 = vld [vmem:[#allocation2 + $0x248] sm:$0xff] }
  0xa8   :  { %7399 = vmatprep.mubr.f32.mxu1 %v844_v9  ;;  %8071 = vmatprep.mubr.f32.mxu0 %v842_v63  ;;  %12699 = vst [vmem:[#allocation135_spill] sm:$0xff] %v10432_v15  ;;  %v1636_v37 = vand.u32 4294901760, %v1635_v26  ;;  %v12702_v63 = vand.u32 4294901760, %v10355_v8  ;;  %v893_v9 = vsub.f32 %v10395_v22, %v892_v60  ;;  %v10446_v26 = vsub.f32 %v96_v21, %v10427_v27  ;;  %v100_v22 = vld [vmem:[#allocation2 + $0x240] sm:$0xff] }
  0xa9   :  { %12700 = vst [vmem:[#allocation136_spill] sm:$0xff] %v10434_v32  ;;  %8777 = vmatprep.subr.bf16.mxu0 %v8776_v35  ;;  %12703 = vst [vmem:[#allocation138_spill] sm:$0xff] %v10443_v5  ;;  %v12709_v21 = vand.u32 4294901760, %v10370_v62  ;;  %v10466_v8 = vand.u32 4294901760, %v100_v22  ;;  %v12720_v28 = vand.u32 4294901760, %v9802_v49 }
  0xaa   :  { %v8680_v23 = vpack.c.bf16 %v1636_v37, %v1629_v57  ;;  %8779 = vmatpush3.bf16.msra.mxu0 %v8776_v35  ;;  %12704 = vst [vmem:[#allocation139_spill] sm:$0xff] %v10446_v26  ;;  %v884_v57 = vand.u32 4294901760, %v883_v45  ;;  %v903_v35 = vsub.f32 %v10412_v2, %v902_v59  ;;  %v10453_v37 = vsub.f32 %v97_v11, %v10434_v32 }
  0xab   :  { %7400 = vmatmul.mubr.f32.gmra.mrb[58].mxu1 %v854_v52  ;;  %8072 = vmatmul.mubr.f32.gmra.mrb[58].mxu0 %v12702_v63  ;;  %v922_v52 = vand.u32 4294901760, %v10432_v15  ;;  %v10455_v63 = vand.u32 4294901760, %v99_v1  ;;  %12708 = vst [vmem:[#allocation142_spill] sm:$0xff] %v10458_v14  ;;  %v913_v45 = vsub.f32 %v10423_v46, %v912_v12  ;;  %v942_v11 = vand.u32 4294901760, %v10446_v26  ;;  %12710 = vst [vmem:[#allocation143_spill] sm:$0xff] %v10466_v8 }
  0xac   :  { %7402 = vmatprep.mubr.f32.mxu1 %v864_v50  ;;  %8074 = vmatprep.mubr.f32.mxu0 %v12705_v58  ;;  %12706 = vst [vmem:[#allocation140_spill] sm:$0xff] %v10453_v37  ;;  %v894_v50 = vand.u32 4294901760, %v893_v9  ;;  %v932_v58 = vand.u32 4294901760, %v10443_v5  ;;  %v904_v2 = vand.u32 4294901760, %v903_v35  ;;  %v102_v9 = vld [vmem:[#allocation2 + $0x250] sm:$0xff]  ;;  %v10475_v35 = vand.u32 4294901760, %v101_v47 }
  0xad   :  { %12707 = vst [vmem:[#allocation141_spill] sm:$0xff] %v10455_v63  ;;  %8681 = vmatprep.subr.bf16.mxu1 %v8680_v23  ;;  %v923_v24 = vsub.f32 %v10432_v15, %v922_v52  ;;  %v914_v46 = vand.u32 4294901760, %v913_v45  ;;  %v103_v15 = vld [vmem:[#allocation2 + $0x258] sm:$0xff]  ;;  %v104_v45 = vld [vmem:[#allocation2 + $0x260] sm:$0xff] }
  0xae   :  { %8683 = vmatpush3.bf16.msra.mxu1 %v8680_v23  ;;  %v10470_v23 = vsub.f32 %v99_v1, %v10455_v63  ;;  %12712 = vst [vmem:[#allocation145_spill] sm:$0xff] %v10475_v35  ;;  %v10480_v1 = vand.u32 4294901760, %v102_v9  ;;  %v10489_v63 = vand.u32 4294901760, %v103_v15 }
  0xaf   :  { %7403 = vmatmul.mubr.f32.gmra.mrb[60].mxu1 %v874_v56  ;;  %8075 = vmatmul.mubr.f32.gmra.mrb[60].mxu0 %v12709_v21  ;;  %v924_v62 = vand.u32 4294901760, %v923_v24  ;;  %v10478_v56 = vsub.f32 %v100_v22, %v10466_v8  ;;  %v12715_v21 = vand.u32 4294901760, %v10453_v37  ;;  %v12718_v24 = vand.u32 4294901760, %v9797_v48  ;;  %v105_v8 = vld [vmem:[#allocation2 + $0x268] sm:$0xff] }
  0xb0   :  { %7405 = vmatprep.mubr.f32.mxu1 %v884_v57  ;;  %8077 = vmatprep.mubr.f32.mxu0 %v882_v29  ;;  %12711 = vst [vmem:[#allocation144_spill] sm:$0xff] %v10470_v23  ;;  %v933_v57 = vsub.f32 %v10443_v5, %v932_v58  ;;  %v943_v29 = vsub.f32 %v10446_v26, %v942_v11  ;;  %12714 = vst [vmem:[#allocation147_spill] sm:$0xff] %v10480_v1  ;;  %v12716_v26 = vand.u32 4294901760, %v10458_v14 }
  0xb1   :  { %12713 = vst [vmem:[#allocation146_spill] sm:$0xff] %v10478_v56  ;;  %12717 = vst [vmem:[#allocation148_spill] sm:$0xff] %v10489_v63  ;;  %v982_v48 = vand.u32 4294901760, %v10478_v56 }
  0xb2   :  { %v963_v5 = vsub.f32 %v10458_v14, %v12716_v26  ;;  %v9590_v26 = vld [vmem:[%s12098_s1 + $0x78] sm:$0xff] }
  0xb3   :  { %7406 = vmatmul.mubr.f32.gmra.mrb[62].mxu1 %v894_v50  ;;  %8078 = vmatmul.mubr.f32.gmra.mrb[62].mxu0 %v892_v60  ;;  %v953_v60 = vsub.f32 %v10453_v37, %v12715_v21  ;;  %v944_v21 = vand.u32 4294901760, %v943_v29  ;;  %v10499_v50 = vsub.f32 %v101_v47, %v10475_v35  ;;  %v10506_v32 = vsub.f32 %v9590_v26, %v12720_v28  ;;  %v106_v47 = vld [vmem:[#allocation2 + $0x270] sm:$0xff] }
  0xb4   :  { %7408 = vmatprep.mubr.f32.mxu1 %v904_v2  ;;  %8080 = vmatprep.mubr.f32.mxu0 %v902_v59  ;;  %v9589_v2 = vld [vmem:[%s12098_s1 + $0x70] sm:$0xff]  ;;  %v934_v59 = vand.u32 4294901760, %v933_v57  ;;  %v964_v28 = vand.u32 4294901760, %v963_v5  ;;  %v983_v5 = vsub.f32 %v10478_v56, %v982_v48 }
  0xb5   :  { %v10496_v22 = vsub.f32 %v9589_v2, %v12718_v24  ;;  %12719 = vst [vmem:[#allocation149_spill] sm:$0xff] %v10499_v50  ;;  %v954_v29 = vand.u32 4294901760, %v953_v60  ;;  %v12723_v2 = vand.u32 4294901760, %v10470_v23  ;;  %v1648_v49 = vand.u32 4294901760, %v10506_v32  ;;  %v107_v60 = vld [vmem:[#allocation2 + $0x278] sm:$0xff] }
  0xb6   :  { %v992_v26 = vand.u32 4294901760, %v10499_v50  ;;  %v10537_v4 = vand.u32 4294901760, %v107_v60 }
  0xb7   :  { %7409 = vmatmul.mubr.f32.gmra.mrb[64].mxu1 %v914_v46  ;;  %8081 = vmatmul.mubr.f32.gmra.mrb[64].mxu0 %v912_v12  ;;  %v10510_v12 = vsub.f32 %v102_v9, %v10480_v1  ;;  %v10512_v46 = vand.u32 4294901760, %v104_v45  ;;  %v1641_v57 = vand.u32 4294901760, %v10496_v22  ;;  %v973_v24 = vsub.f32 %v10470_v23, %v12723_v2 }
  0xb8   :  { %7411 = vmatprep.mubr.f32.mxu1 %v924_v62  ;;  %8083 = vmatprep.mubr.f32.mxu0 %v922_v52  ;;  %v10520_v62 = vsub.f32 %v103_v15, %v10489_v63  ;;  %v10522_v52 = vand.u32 4294901760, %v105_v8  ;;  %v10526_v1 = vand.u32 4294901760, %v106_v47  ;;  %v1649_v35 = vsub.f32 %v10506_v32, %v1648_v49  ;;  %12729 = vst [vmem:[#allocation157_spill] sm:$0xff] %v10537_v4 }
  0xb9   :  { %12721 = vst [vmem:[#allocation150_spill] sm:$0xff] %v10510_v12  ;;  %12722 = vst [vmem:[#allocation151_spill] sm:$0xff] %v10512_v46  ;;  %v1642_v9 = vsub.f32 %v10496_v22, %v1641_v57  ;;  %v8780_v2 = vpack.c.bf16 %v1648_v49, %v1641_v57  ;;  %v1002_v15 = vand.u32 4294901760, %v10510_v12  ;;  %v10532_v63 = vsub.f32 %v104_v45, %v10512_v46 }
  0xba   :  { %12724 = vst [vmem:[#allocation152_spill] sm:$0xff] %v10520_v62  ;;  %12725 = vst [vmem:[#allocation153_spill] sm:$0xff] %v10522_v52  ;;  %v974_v31 = vand.u32 4294901760, %v973_v24  ;;  %v10535_v38 = vsub.f32 %v105_v8, %v10522_v52  ;;  %v1012_v45 = vand.u32 4294901760, %v10520_v62  ;;  %v10544_v57 = vsub.f32 %v106_v47, %v10526_v1 }
  0xbb   :  { %7412 = vmatmul.mubr.f32.gmra.mrb[66].mxu1 %v934_v59  ;;  %8084 = vmatmul.mubr.f32.gmra.mrb[66].mxu0 %v932_v58  ;;  %12726 = vst [vmem:[#allocation154_spill] sm:$0xff] %v10526_v1  ;;  %12727 = vst [vmem:[#allocation155_spill] sm:$0xff] %v10532_v63  ;;  %v1643_v27 = vand.u32 4294901760, %v1642_v9  ;;  %v108_v59 = vld [vmem:[#allocation2 + $0x280] sm:$0xff]  ;;  %v1650_v58 = vand.u32 4294901760, %v1649_v35  ;;  %v12732_v24 = vand.u32 4294901760, %v10458_v14  ;;  %v1003_v49 = vsub.f32 %v10510_v12, %v1002_v15 }
  0xbc   :  { %7414 = vmatprep.mubr.f32.mxu1 %v944_v21  ;;  %8086 = vmatprep.mubr.f32.mxu0 %v942_v11  ;;  %12728 = vst [vmem:[#allocation156_spill] sm:$0xff] %v10535_v38  ;;  %v12730_v11 = vand.u32 4294901760, %v10453_v37  ;;  %v993_v21 = vsub.f32 %v10499_v50, %v992_v26  ;;  %12731 = vst [vmem:[#allocation158_spill] sm:$0xff] %v10544_v57  ;;  %v984_v8 = vand.u32 4294901760, %v983_v5  ;;  %v10550_v9 = vand.u32 4294901760, %v108_v59  ;;  %v115_v37 = vld [vmem:[#allocation2 + $0x2b8] sm:$0xff] }
  0xbd   :  { %8781 = vmatprep.subr.bf16.mxu0 %v8780_v2  ;;  %v8684_v35 = vpack.c.bf16 %v1650_v58, %v1643_v27  ;;  %v1032_v47 = vand.u32 4294901760, %v10535_v38  ;;  %v10555_v27 = vsub.f32 %v107_v60, %v10537_v4  ;;  %v1013_v58 = vsub.f32 %v10520_v62, %v1012_v45 }
  0xbe   :  { %8783 = vmatpush3.bf16.msra.mxu0 %v8780_v2  ;;  %12733 = vst [vmem:[#allocation159_spill] sm:$0xff] %v10550_v9  ;;  %v109_v2 = vld [vmem:[#allocation2 + $0x288] sm:$0xff]  ;;  %v994_v5 = vand.u32 4294901760, %v993_v21  ;;  %v1004_v50 = vand.u32 4294901760, %v1003_v49  ;;  %v10565_v60 = vsub.f32 %v108_v59, %v10550_v9 }
  0xbf   :  { %7415 = vmatmul.mubr.f32.gmra.mrb[68].mxu1 %v954_v29  ;;  %8087 = vmatmul.mubr.f32.gmra.mrb[68].mxu0 %v12730_v11  ;;  %v1022_v29 = vand.u32 4294901760, %v10532_v63  ;;  %v110_v11 = vld [vmem:[#allocation2 + $0x290] sm:$0xff]  ;;  %12734 = vst [vmem:[#allocation160_spill] sm:$0xff] %v10555_v27  ;;  %v10561_v12 = vand.u32 4294901760, %v109_v2  ;;  %v1033_v21 = vsub.f32 %v10535_v38, %v1032_v47  ;;  %v1014_v62 = vand.u32 4294901760, %v1013_v58 }
  0xc0   :  { %7417 = vmatprep.mubr.f32.mxu1 %v964_v28  ;;  %8089 = vmatprep.mubr.f32.mxu0 %v12732_v24  ;;  %v12735_v28 = vand.u32 4294901760, %v10470_v23  ;;  %v1042_v24 = vand.u32 4294901760, %v10544_v57  ;;  %12737 = vst [vmem:[#allocation162_spill] sm:$0xff] %v10565_v60  ;;  %v112_v23 = vld [vmem:[#allocation2 + $0x2a0] sm:$0xff] }
  0xc1   :  { %8685 = vmatprep.subr.bf16.mxu1 %v8684_v35  ;;  %8785 = vmatprep.subr.bf16.mxu0 %v9679_v10  ;;  %12736 = vst [vmem:[#allocation161_spill] sm:$0xff] %v10561_v12  ;;  %v1023_v56 = vsub.f32 %v10532_v63, %v1022_v29  ;;  %v1062_v63 = vand.u32 4294901760, %v10565_v60  ;;  %v10581_v38 = vand.u32 4294901760, %v112_v23  ;;  %v1034_v58 = vand.u32 4294901760, %v1033_v21 }
  0xc2   :  { %8687 = vmatpush3.bf16.msra.mxu1 %v8684_v35  ;;  %v10567_v35 = vand.u32 4294901760, %v110_v11 }
  0xc3   :  { %7418 = vmatmul.mubr.f32.gmra.mrb[70].mxu1 %v974_v31  ;;  %8090 = vmatmul.mubr.f32.gmra.mrb[70].mxu0 %v12735_v28  ;;  %v111_v31 = vld [vmem:[#allocation2 + $0x298] sm:$0xff]  ;;  %v1052_v28 = vand.u32 4294901760, %v10555_v27  ;;  %v1024_v59 = vand.u32 4294901760, %v1023_v56  ;;  %12742 = vst [vmem:[#allocation167_spill] sm:$0xff] %v10581_v38  ;;  %v1063_v21 = vsub.f32 %v10565_v60, %v1062_v63 }
  0xc4   :  { %7420 = vmatprep.mubr.f32.mxu1 %v984_v8  ;;  %8092 = vmatprep.mubr.f32.mxu0 %v982_v48  ;;  %12738 = vst [vmem:[#allocation163_spill] sm:$0xff] %v10567_v35  ;;  %v1043_v8 = vsub.f32 %v10544_v57, %v1042_v24  ;;  %v10573_v48 = vsub.f32 %v109_v2, %v10561_v12  ;;  %v10575_v49 = vand.u32 4294901760, %v111_v31 }
  0xc5   :  { %v10579_v14 = vsub.f32 %v110_v11, %v10567_v35  ;;  %v1053_v57 = vsub.f32 %v10555_v27, %v1052_v28  ;;  %v10586_v2 = vpack.c.bf16 %v9778_v41, %v9776_v40  ;;  %v10597_v40 = vsub.f32 %v112_v23, %v10581_v38  ;;  %v117_v23 = vld [vmem:[#allocation2 + $0x2c8] sm:$0xff] }
  0xc6   :  { %12739 = vst [vmem:[#allocation164_spill] sm:$0xff] %v10573_v48  ;;  %12740 = vst [vmem:[#allocation165_spill] sm:$0xff] %v10575_v49  ;;  %v1072_v56 = vand.u32 4294901760, %v10573_v48  ;;  %v1064_v38 = vand.u32 4294901760, %v1063_v21  ;;  %v10619_v35 = vand.u32 4294901760, %v117_v23 }
  0xc7   :  { %7421 = vmatmul.mubr.f32.gmra.mrb[72].mxu1 %v994_v5  ;;  %8093 = vmatmul.mubr.f32.gmra.mrb[72].mxu0 %v992_v26  ;;  %12741 = vst [vmem:[#allocation166_spill] sm:$0xff] %v10579_v14  ;;  %v113_v5 = vld [vmem:[#allocation2 + $0x2a8] sm:$0xff]  ;;  %v114_v26 = vld [vmem:[#allocation2 + $0x2b0] sm:$0xff]  ;;  %v1082_v27 = vand.u32 4294901760, %v10579_v14  ;;  %12745 = vst [vmem:[#allocation170_spill] sm:$0xff] %v10597_v40 }
  0xc8   :  { %7423 = vmatprep.mubr.f32.mxu1 %v1004_v50  ;;  %8095 = vmatprep.mubr.f32.mxu0 %v1002_v15  ;;  %v1044_v50 = vand.u32 4294901760, %v1043_v8  ;;  %v10590_v15 = vsub.f32 %v111_v31, %v10575_v49  ;;  %v10592_v11 = vand.u32 4294901760, %v113_v5  ;;  %v10599_v41 = vand.u32 4294901760, %v114_v26  ;;  %12752 = vst [vmem:[#allocation177_spill] sm:$0xff] %v10619_v35 }
  0xc9   :  { %8689 = vmatprep.subr.bf16.mxu1 %v10586_v2  ;;  %v10602_v31 = vand.u32 4294901760, %v115_v37  ;;  %v1073_v8 = vsub.f32 %v10573_v48, %v1072_v56  ;;  %v1083_v49 = vsub.f32 %v10579_v14, %v1082_v27 }
  0xca   :  { %12743 = vst [vmem:[#allocation168_spill] sm:$0xff] %v10590_v15  ;;  %12744 = vst [vmem:[#allocation169_spill] sm:$0xff] %v10592_v11 }
  0xcb   :  { %7424 = vmatmul.mubr.f32.gmra.mrb[74].mxu1 %v1014_v62  ;;  %8096 = vmatmul.mubr.f32.gmra.mrb[74].mxu0 %v1012_v45  ;;  %12746 = vst [vmem:[#allocation171_spill] sm:$0xff] %v10599_v41  ;;  %v116_v62 = vld [vmem:[#allocation2 + $0x2c0] sm:$0xff]  ;;  %v1054_v45 = vand.u32 4294901760, %v1053_v57  ;;  %12747 = vst [vmem:[#allocation172_spill] sm:$0xff] %v10602_v31  ;;  %v1102_v57 = vand.u32 4294901760, %v10597_v40  ;;  %v10617_v48 = vsub.f32 %v115_v37, %v10602_v31 }
  0xcc   :  { %7426 = vmatprep.mubr.f32.mxu1 %v1024_v59  ;;  %8098 = vmatprep.mubr.f32.mxu0 %v1022_v29  ;;  %v1092_v29 = vand.u32 4294901760, %v10590_v15  ;;  %v10607_v59 = vsub.f32 %v113_v5, %v10592_v11  ;;  %v10609_v60 = vand.u32 4294901760, %v116_v62  ;;  %v1074_v5 = vand.u32 4294901760, %v1073_v8 }
  0xcd   :  { %12751 = vst [vmem:[#allocation176_spill] sm:$0xff] %v10617_v48  ;;  %v1103_v14 = vsub.f32 %v10597_v40, %v1102_v57  ;;  %v10632_v8 = vsub.f32 %v117_v23, %v10619_v35  ;;  %v121_v23 = vld [vmem:[#allocation2 + $0x2e8] sm:$0xff] }
  0xce   :  { %12748 = vst [vmem:[#allocation173_spill] sm:$0xff] %v10607_v59  ;;  %12749 = vst [vmem:[#allocation174_spill] sm:$0xff] %v10609_v60  ;;  %v10624_v21 = vsub.f32 %v116_v62, %v10609_v60 }
  0xcf   :  { %7427 = vmatmul.mubr.f32.gmra.mrb[76].mxu1 %v1034_v58  ;;  %8099 = vmatmul.mubr.f32.gmra.mrb[76].mxu0 %v1032_v47  ;;  %v10614_v58 = vsub.f32 %v114_v26, %v10599_v41  ;;  %v118_v47 = vld [vmem:[#allocation2 + $0x2d0] sm:$0xff]  ;;  %v1084_v26 = vand.u32 4294901760, %v1083_v49  ;;  %v119_v41 = vld [vmem:[#allocation2 + $0x2d8] sm:$0xff]  ;;  %12755 = vst [vmem:[#allocation180_spill] sm:$0xff] %v10632_v8  ;;  %v1104_v40 = vand.u32 4294901760, %v1103_v14 }
  0xd0   :  { %7429 = vmatprep.mubr.f32.mxu1 %v1044_v50  ;;  %8101 = vmatprep.mubr.f32.mxu0 %v1042_v24  ;;  %v1093_v50 = vsub.f32 %v10590_v15, %v1092_v29  ;;  %v1112_v24 = vand.u32 4294901760, %v10607_v59  ;;  %12753 = vst [vmem:[#allocation178_spill] sm:$0xff] %v10624_v21  ;;  %v10628_v31 = vand.u32 4294901760, %v118_v47  ;;  %v10636_v49 = vand.u32 4294901760, %v119_v41 }
  0xd1   :  { %12750 = vst [vmem:[#allocation175_spill] sm:$0xff] %v10614_v58  ;;  %v1122_v37 = vand.u32 4294901760, %v10614_v58 }
  0xd2   :  { %12754 = vst [vmem:[#allocation179_spill] sm:$0xff] %v10628_v31  ;;  %v1094_v62 = vand.u32 4294901760, %v1093_v50  ;;  %12756 = vst [vmem:[#allocation181_spill] sm:$0xff] %v10636_v49  ;;  %v10640_v60 = vsub.f32 %v118_v47, %v10628_v31  ;;  %v1152_v50 = vand.u32 4294901760, %v10632_v8  ;;  %v10648_v14 = vsub.f32 %v119_v41, %v10636_v49 }
  0xd3   :  { %7430 = vmatmul.mubr.f32.gmra.mrb[78].mxu1 %v1054_v45  ;;  %8102 = vmatmul.mubr.f32.gmra.mrb[78].mxu0 %v1052_v28  ;;  %v120_v45 = vld [vmem:[#allocation2 + $0x2e0] sm:$0xff]  ;;  %v1132_v28 = vand.u32 4294901760, %v10617_v48  ;;  %v1123_v15 = vsub.f32 %v10614_v58, %v1122_v37 }
  0xd4   :  { %7432 = vmatprep.mubr.f32.mxu1 %v1064_v38  ;;  %8104 = vmatprep.mubr.f32.mxu0 %v1062_v63  ;;  %v1113_v38 = vsub.f32 %v10607_v59, %v1112_v24  ;;  %v1142_v63 = vand.u32 4294901760, %v10624_v21  ;;  %12757 = vst [vmem:[#allocation182_spill] sm:$0xff] %v10640_v60  ;;  %v10642_v11 = vand.u32 4294901760, %v120_v45  ;;  %12759 = vst [vmem:[#allocation184_spill] sm:$0xff] %v10648_v14  ;;  %v1162_v58 = vand.u32 4294901760, %v10640_v60 }
  0xd5   :  { %v1124_v47 = vand.u32 4294901760, %v1123_v15  ;;  %v1172_v49 = vand.u32 4294901760, %v10648_v14 }
  0xd6   :  { %12758 = vst [vmem:[#allocation183_spill] sm:$0xff] %v10642_v11  ;;  %v1114_v59 = vand.u32 4294901760, %v1113_v38  ;;  %v10654_v31 = vsub.f32 %v120_v45, %v10642_v11  ;;  %v1163_v45 = vsub.f32 %v10640_v60, %v1162_v58 }
  0xd7   :  { %7433 = vmatmul.mubr.f32.gmra.mrb[80].mxu1 %v1074_v5  ;;  %8105 = vmatmul.mubr.f32.gmra.mrb[80].mxu0 %v1072_v56  ;;  %v122_v5 = vld [vmem:[#allocation2 + $0x2f0] sm:$0xff]  ;;  %v1133_v56 = vsub.f32 %v10617_v48, %v1132_v28 }
  0xd8   :  { %7435 = vmatprep.mubr.f32.mxu1 %v1084_v26  ;;  %8107 = vmatprep.mubr.f32.mxu0 %v1082_v27  ;;  %v1143_v26 = vsub.f32 %v10624_v21, %v1142_v63  ;;  %v10650_v27 = vand.u32 4294901760, %v121_v23  ;;  %12761 = vst [vmem:[#allocation186_spill] sm:$0xff] %v10654_v31  ;;  %v10656_v48 = vand.u32 4294901760, %v122_v5  ;;  %v1153_v21 = vsub.f32 %v10632_v8, %v1152_v50 }
  0xd9   :  { %v1134_v38 = vand.u32 4294901760, %v1133_v56  ;;  %v1182_v11 = vand.u32 4294901760, %v10654_v31 }
  0xda   :  { %12760 = vst [vmem:[#allocation185_spill] sm:$0xff] %v10650_v27  ;;  %12762 = vst [vmem:[#allocation187_spill] sm:$0xff] %v10656_v48  ;;  %v1144_v41 = vand.u32 4294901760, %v1143_v26  ;;  %v10668_v56 = vsub.f32 %v122_v5, %v10656_v48  ;;  %v1154_v26 = vand.u32 4294901760, %v1153_v21  ;;  %v1164_v5 = vand.u32 4294901760, %v1163_v45 }
  0xdb   :  { %7436 = vmatmul.mubr.f32.gmra.mrb[82].mxu1 %v1094_v62  ;;  %8108 = vmatmul.mubr.f32.gmra.mrb[82].mxu0 %v1092_v29  ;;  %v123_v62 = vld [vmem:[#allocation2 + $0x2f8] sm:$0xff]  ;;  %v124_v29 = vld [vmem:[#allocation2 + $0x300] sm:$0xff]  ;;  %v1183_v48 = vsub.f32 %v10654_v31, %v1182_v11 }
  0xdc   :  { %7438 = vmatprep.mubr.f32.mxu1 %v1104_v40  ;;  %8110 = vmatprep.mubr.f32.mxu0 %v1102_v57  ;;  %v10661_v40 = vsub.f32 %v121_v23, %v10650_v27  ;;  %v10663_v15 = vand.u32 4294901760, %v123_v62  ;;  %v125_v57 = vld [vmem:[#allocation2 + $0x308] sm:$0xff]  ;;  %12765 = vst [vmem:[#allocation190_spill] sm:$0xff] %v10668_v56  ;;  %v1173_v23 = vsub.f32 %v10648_v14, %v1172_v49  ;;  %v127_v27 = vld [vmem:[#allocation2 + $0x318] sm:$0xff]  ;;  %v1202_v21 = vand.u32 4294901760, %v10668_v56 }
  0xdd   :  { %v10672_v8 = vand.u32 4294901760, %v125_v57  ;;  %v10689_v35 = vand.u32 4294901760, %v127_v27 }
  0xde   :  { %12763 = vst [vmem:[#allocation188_spill] sm:$0xff] %v10661_v40  ;;  %12764 = vst [vmem:[#allocation189_spill] sm:$0xff] %v10663_v15  ;;  %v1203_v31 = vsub.f32 %v10668_v56, %v1202_v21 }
  0xdf   :  { %7439 = vmatmul.mubr.f32.gmra.mrb[84].mxu1 %v1114_v59  ;;  %8111 = vmatmul.mubr.f32.gmra.mrb[84].mxu0 %v1112_v24  ;;  %v10670_v59 = vand.u32 4294901760, %v124_v29  ;;  %v126_v24 = vld [vmem:[#allocation2 + $0x310] sm:$0xff]  ;;  %12767 = vst [vmem:[#allocation192_spill] sm:$0xff] %v10672_v8  ;;  %v10687_v14 = vsub.f32 %v125_v57, %v10672_v8  ;;  %12772 = vst [vmem:[#allocation197_spill] sm:$0xff] %v10689_v35 }
  0xe0   :  { %7441 = vmatprep.mubr.f32.mxu1 %v1124_v47  ;;  %8113 = vmatprep.mubr.f32.mxu0 %v1122_v37  ;;  %v1192_v47 = vand.u32 4294901760, %v10661_v40  ;;  %v10677_v37 = vsub.f32 %v123_v62, %v10663_v15  ;;  %v10679_v60 = vand.u32 4294901760, %v126_v24  ;;  %v1174_v62 = vand.u32 4294901760, %v1173_v23 }
  0xe1   :  { %12766 = vst [vmem:[#allocation191_spill] sm:$0xff] %v10670_v59  ;;  %12771 = vst [vmem:[#allocation196_spill] sm:$0xff] %v10687_v14  ;;  %v10702_v23 = vsub.f32 %v127_v27, %v10689_v35  ;;  %v1204_v56 = vand.u32 4294901760, %v1203_v31  ;;  %v131_v27 = vld [vmem:[#allocation2 + $0x338] sm:$0xff] }
  0xe2   :  { %12768 = vst [vmem:[#allocation193_spill] sm:$0xff] %v10677_v37  ;;  %12769 = vst [vmem:[#allocation194_spill] sm:$0xff] %v10679_v60  ;;  %v10694_v45 = vsub.f32 %v126_v24, %v10679_v60  ;;  %v10720_v31 = vand.u32 4294901760, %v131_v27 }
  0xe3   :  { %7442 = vmatmul.mubr.f32.gmra.mrb[86].mxu1 %v1134_v38  ;;  %8114 = vmatmul.mubr.f32.gmra.mrb[86].mxu0 %v1132_v28  ;;  %v10684_v38 = vsub.f32 %v124_v29, %v10670_v59  ;;  %v128_v28 = vld [vmem:[#allocation2 + $0x320] sm:$0xff]  ;;  %v1184_v29 = vand.u32 4294901760, %v1183_v48  ;;  %v129_v59 = vld [vmem:[#allocation2 + $0x328] sm:$0xff]  ;;  %12775 = vst [vmem:[#allocation200_spill] sm:$0xff] %v10702_v23 }
  0xe4   :  { %7444 = vmatprep.mubr.f32.mxu1 %v1144_v41  ;;  %8116 = vmatprep.mubr.f32.mxu0 %v1142_v63  ;;  %v1193_v41 = vsub.f32 %v10661_v40, %v1192_v47  ;;  %v1212_v63 = vand.u32 4294901760, %v10677_v37  ;;  %12773 = vst [vmem:[#allocation198_spill] sm:$0xff] %v10694_v45  ;;  %v10698_v8 = vand.u32 4294901760, %v128_v28  ;;  %v1242_v48 = vand.u32 4294901760, %v10694_v45  ;;  %12780 = vst [vmem:[#allocation205_spill] sm:$0xff] %v10720_v31 }
  0xe5   :  { %12770 = vst [vmem:[#allocation195_spill] sm:$0xff] %v10684_v38  ;;  %v1222_v57 = vand.u32 4294901760, %v10684_v38 }
  0xe6   :  { %12774 = vst [vmem:[#allocation199_spill] sm:$0xff] %v10698_v8  ;;  %v1194_v24 = vand.u32 4294901760, %v1193_v41  ;;  %v10710_v60 = vsub.f32 %v128_v28, %v10698_v8  ;;  %v1252_v41 = vand.u32 4294901760, %v10702_v23 }
  0xe7   :  { %7445 = vmatmul.mubr.f32.gmra.mrb[88].mxu1 %v1154_v26  ;;  %8117 = vmatmul.mubr.f32.gmra.mrb[88].mxu0 %v1152_v50  ;;  %v130_v26 = vld [vmem:[#allocation2 + $0x330] sm:$0xff]  ;;  %v1232_v50 = vand.u32 4294901760, %v10687_v14  ;;  %v1223_v40 = vsub.f32 %v10684_v38, %v1222_v57 }
  0xe8   :  { %7447 = vmatprep.mubr.f32.mxu1 %v1164_v5  ;;  %8119 = vmatprep.mubr.f32.mxu0 %v1162_v58  ;;  %v1213_v5 = vsub.f32 %v10677_v37, %v1212_v63  ;;  %v10706_v58 = vand.u32 4294901760, %v129_v59  ;;  %12777 = vst [vmem:[#allocation202_spill] sm:$0xff] %v10710_v60  ;;  %v10712_v15 = vand.u32 4294901760, %v130_v26  ;;  %v1262_v38 = vand.u32 4294901760, %v10710_v60 }
  0xe9   :  { %v1224_v28 = vand.u32 4294901760, %v1223_v40 }
  0xea   :  { %12776 = vst [vmem:[#allocation201_spill] sm:$0xff] %v10706_v58  ;;  %12778 = vst [vmem:[#allocation203_spill] sm:$0xff] %v10712_v15  ;;  %v1214_v37 = vand.u32 4294901760, %v1213_v5  ;;  %v10724_v8 = vsub.f32 %v130_v26, %v10712_v15  ;;  %v1263_v26 = vsub.f32 %v10710_v60, %v1262_v38 }
  0xeb   :  { %7448 = vmatmul.mubr.f32.gmra.mrb[90].mxu1 %v1174_v62  ;;  %8120 = vmatmul.mubr.f32.gmra.mrb[90].mxu0 %v1172_v49  ;;  %v132_v62 = vld [vmem:[#allocation2 + $0x340] sm:$0xff]  ;;  %v1233_v49 = vsub.f32 %v10687_v14, %v1232_v50 }
  0xec   :  { %7450 = vmatprep.mubr.f32.mxu1 %v1184_v29  ;;  %8122 = vmatprep.mubr.f32.mxu0 %v1182_v11  ;;  %v1243_v29 = vsub.f32 %v10694_v45, %v1242_v48  ;;  %v10718_v11 = vsub.f32 %v129_v59, %v10706_v58  ;;  %12781 = vst [vmem:[#allocation206_spill] sm:$0xff] %v10724_v8  ;;  %v10726_v14 = vand.u32 4294901760, %v132_v62  ;;  %v1282_v15 = vand.u32 4294901760, %v10724_v8 }
  0xed   :  { %v1234_v5 = vand.u32 4294901760, %v1233_v49  ;;  %v1253_v45 = vsub.f32 %v10702_v23, %v1252_v41 }
  0xee   :  { %12779 = vst [vmem:[#allocation204_spill] sm:$0xff] %v10718_v11  ;;  %12782 = vst [vmem:[#allocation207_spill] sm:$0xff] %v10726_v14  ;;  %v1244_v59 = vand.u32 4294901760, %v1243_v29  ;;  %v1272_v58 = vand.u32 4294901760, %v10718_v11  ;;  %v10738_v49 = vsub.f32 %v132_v62, %v10726_v14  ;;  %v1264_v62 = vand.u32 4294901760, %v1263_v26 }
  0xef   :  { %7451 = vmatmul.mubr.f32.gmra.mrb[92].mxu1 %v1194_v24  ;;  %8123 = vmatmul.mubr.f32.gmra.mrb[92].mxu0 %v1192_v47  ;;  %v133_v24 = vld [vmem:[#allocation2 + $0x348] sm:$0xff]  ;;  %v134_v47 = vld [vmem:[#allocation2 + $0x350] sm:$0xff]  ;;  %v1254_v29 = vand.u32 4294901760, %v1253_v45  ;;  %v1283_v14 = vsub.f32 %v10724_v8, %v1282_v15 }
  0xf0   :  { %7453 = vmatprep.mubr.f32.mxu1 %v1204_v56  ;;  %8125 = vmatprep.mubr.f32.mxu0 %v1202_v21  ;;  %v10731_v56 = vsub.f32 %v131_v27, %v10720_v31  ;;  %v10733_v40 = vand.u32 4294901760, %v133_v24  ;;  %v135_v21 = vld [vmem:[#allocation2 + $0x358] sm:$0xff]  ;;  %12785 = vst [vmem:[#allocation210_spill] sm:$0xff] %v10738_v49  ;;  %v1273_v27 = vsub.f32 %v10718_v11, %v1272_v58  ;;  %v137_v31 = vld [vmem:[#allocation2 + $0x368] sm:$0xff]  ;;  %v1302_v45 = vand.u32 4294901760, %v10738_v49 }
  0xf1   :  { %v10742_v23 = vand.u32 4294901760, %v135_v21  ;;  %v10759_v35 = vand.u32 4294901760, %v137_v31 }
  0xf2   :  { %12783 = vst [vmem:[#allocation208_spill] sm:$0xff] %v10731_v56  ;;  %12784 = vst [vmem:[#allocation209_spill] sm:$0xff] %v10733_v40  ;;  %v1303_v8 = vsub.f32 %v10738_v49, %v1302_v45 }
  0xf3   :  { %7454 = vmatmul.mubr.f32.gmra.mrb[94].mxu1 %v1214_v37  ;;  %8126 = vmatmul.mubr.f32.gmra.mrb[94].mxu0 %v1212_v63  ;;  %v10740_v37 = vand.u32 4294901760, %v134_v47  ;;  %v136_v63 = vld [vmem:[#allocation2 + $0x360] sm:$0xff]  ;;  %12787 = vst [vmem:[#allocation212_spill] sm:$0xff] %v10742_v23  ;;  %v10757_v11 = vsub.f32 %v135_v21, %v10742_v23  ;;  %12792 = vst [vmem:[#allocation217_spill] sm:$0xff] %v10759_v35 }
  0xf4   :  { %7456 = vmatprep.mubr.f32.mxu1 %v1224_v28  ;;  %8128 = vmatprep.mubr.f32.mxu0 %v1222_v57  ;;  %v1292_v28 = vand.u32 4294901760, %v10731_v56  ;;  %v10747_v57 = vsub.f32 %v133_v24, %v10733_v40  ;;  %v10749_v60 = vand.u32 4294901760, %v136_v63  ;;  %v1274_v24 = vand.u32 4294901760, %v1273_v27 }
  0xf5   :  { %12786 = vst [vmem:[#allocation211_spill] sm:$0xff] %v10740_v37  ;;  %12791 = vst [vmem:[#allocation216_spill] sm:$0xff] %v10757_v11  ;;  %v10772_v27 = vsub.f32 %v137_v31, %v10759_v35  ;;  %v1304_v49 = vand.u32 4294901760, %v1303_v8  ;;  %v141_v31 = vld [vmem:[#allocation2 + $0x388] sm:$0xff] }
  0xf6   :  { %12788 = vst [vmem:[#allocation213_spill] sm:$0xff] %v10747_v57  ;;  %12789 = vst [vmem:[#allocation214_spill] sm:$0xff] %v10749_v60  ;;  %v10764_v26 = vsub.f32 %v136_v63, %v10749_v60 }
  0xf7   :  { %7457 = vmatmul.mubr.f32.gmra.mrb[96].mxu1 %v1234_v5  ;;  %8129 = vmatmul.mubr.f32.gmra.mrb[96].mxu0 %v1232_v50  ;;  %v10754_v5 = vsub.f32 %v134_v47, %v10740_v37  ;;  %v138_v50 = vld [vmem:[#allocation2 + $0x370] sm:$0xff]  ;;  %v1284_v47 = vand.u32 4294901760, %v1283_v14  ;;  %v139_v37 = vld [vmem:[#allocation2 + $0x378] sm:$0xff]  ;;  %12795 = vst [vmem:[#allocation220_spill] sm:$0xff] %v10772_v27 }
  0xf8   :  { %7459 = vmatprep.mubr.f32.mxu1 %v1244_v59  ;;  %8131 = vmatprep.mubr.f32.mxu0 %v1242_v48  ;;  %v1293_v59 = vsub.f32 %v10731_v56, %v1292_v28  ;;  %v1312_v48 = vand.u32 4294901760, %v10747_v57  ;;  %12793 = vst [vmem:[#allocation218_spill] sm:$0xff] %v10764_v26  ;;  %v10768_v23 = vand.u32 4294901760, %v138_v50  ;;  %v1342_v14 = vand.u32 4294901760, %v10764_v26 }
  0xf9   :  { %12790 = vst [vmem:[#allocation215_spill] sm:$0xff] %v10754_v5  ;;  %v1322_v21 = vand.u32 4294901760, %v10754_v5 }
  0xfa   :  { %12794 = vst [vmem:[#allocation219_spill] sm:$0xff] %v10768_v23  ;;  %v1294_v63 = vand.u32 4294901760, %v1293_v59  ;;  %v10780_v60 = vsub.f32 %v138_v50, %v10768_v23  ;;  %v1352_v59 = vand.u32 4294901760, %v10772_v27 }
  0xfb   :  { %7460 = vmatmul.mubr.f32.gmra.mrb[98].mxu1 %v1254_v29  ;;  %8132 = vmatmul.mubr.f32.gmra.mrb[98].mxu0 %v1252_v41  ;;  %v140_v29 = vld [vmem:[#allocation2 + $0x380] sm:$0xff]  ;;  %v1332_v41 = vand.u32 4294901760, %v10757_v11  ;;  %v1323_v56 = vsub.f32 %v10754_v5, %v1322_v21 }
  0xfc   :  { %7462 = vmatprep.mubr.f32.mxu1 %v1264_v62  ;;  %8134 = vmatprep.mubr.f32.mxu0 %v1262_v38  ;;  %v1313_v62 = vsub.f32 %v10747_v57, %v1312_v48  ;;  %v10776_v38 = vand.u32 4294901760, %v139_v37  ;;  %12797 = vst [vmem:[#allocation222_spill] sm:$0xff] %v10780_v60  ;;  %v10782_v40 = vand.u32 4294901760, %v140_v29  ;;  %v1362_v5 = vand.u32 4294901760, %v10780_v60 }
  0xfd   :  { %v1324_v50 = vand.u32 4294901760, %v1323_v56 }
  0xfe   :  { %12796 = vst [vmem:[#allocation221_spill] sm:$0xff] %v10776_v38  ;;  %12798 = vst [vmem:[#allocation223_spill] sm:$0xff] %v10782_v40  ;;  %v1314_v57 = vand.u32 4294901760, %v1313_v62  ;;  %v10788_v8 = vsub.f32 %v139_v37, %v10776_v38  ;;  %v10794_v23 = vsub.f32 %v140_v29, %v10782_v40  ;;  %v1363_v29 = vsub.f32 %v10780_v60, %v1362_v5 }
  0xff   :  { %7463 = vmatmul.mubr.f32.gmra.mrb[100].mxu1 %v1274_v24  ;;  %8135 = vmatmul.mubr.f32.gmra.mrb[100].mxu0 %v1272_v58  ;;  %v142_v24 = vld [vmem:[#allocation2 + $0x390] sm:$0xff]  ;;  %v1333_v58 = vsub.f32 %v10757_v11, %v1332_v41 }
 0x100   :  { %7465 = vmatprep.mubr.f32.mxu1 %v1284_v47  ;;  %8137 = vmatprep.mubr.f32.mxu0 %v1282_v15  ;;  %v1343_v47 = vsub.f32 %v10764_v26, %v1342_v14  ;;  %12799 = vst [vmem:[#allocation224_spill] sm:$0xff] %v10788_v8  ;;  %v10790_v15 = vand.u32 4294901760, %v141_v31  ;;  %12801 = vst [vmem:[#allocation226_spill] sm:$0xff] %v10794_v23  ;;  %v10796_v11 = vand.u32 4294901760, %v142_v24  ;;  %v1372_v38 = vand.u32 4294901760, %v10788_v8 }
 0x101   :  { %v1334_v62 = vand.u32 4294901760, %v1333_v58  ;;  %v1353_v26 = vsub.f32 %v10772_v27, %v1352_v59  ;;  %v1382_v40 = vand.u32 4294901760, %v10794_v23 }
 0x102   :  { %12800 = vst [vmem:[#allocation225_spill] sm:$0xff] %v10790_v15  ;;  %12802 = vst [vmem:[#allocation227_spill] sm:$0xff] %v10796_v11  ;;  %v1344_v37 = vand.u32 4294901760, %v1343_v47  ;;  %v10808_v58 = vsub.f32 %v142_v24, %v10796_v11  ;;  %v1364_v24 = vand.u32 4294901760, %v1363_v29 }
 0x103   :  { %7466 = vmatmul.mubr.f32.gmra.mrb[102].mxu1 %v1294_v63  ;;  %8138 = vmatmul.mubr.f32.gmra.mrb[102].mxu0 %v1292_v28  ;;  %v143_v63 = vld [vmem:[#allocation2 + $0x398] sm:$0xff]  ;;  %v144_v28 = vld [vmem:[#allocation2 + $0x3a0] sm:$0xff]  ;;  %v1354_v47 = vand.u32 4294901760, %v1353_v26  ;;  %v1383_v11 = vsub.f32 %v10794_v23, %v1382_v40 }
 0x104   :  { %7468 = vmatprep.mubr.f32.mxu1 %v1304_v49  ;;  %8140 = vmatprep.mubr.f32.mxu0 %v1302_v45  ;;  %v10801_v49 = vsub.f32 %v141_v31, %v10790_v15  ;;  %v10803_v56 = vand.u32 4294901760, %v143_v63  ;;  %v145_v45 = vld [vmem:[#allocation2 + $0x3a8] sm:$0xff]  ;;  %12805 = vst [vmem:[#allocation230_spill] sm:$0xff] %v10808_v58  ;;  %v1373_v31 = vsub.f32 %v10788_v8, %v1372_v38  ;;  %v147_v15 = vld [vmem:[#allocation2 + $0x3b8] sm:$0xff]  ;;  %v1402_v26 = vand.u32 4294901760, %v10808_v58 }
 0x105   :  { %v10812_v27 = vand.u32 4294901760, %v145_v45  ;;  %v10829_v35 = vand.u32 4294901760, %v147_v15 }
 0x106   :  { %12803 = vst [vmem:[#allocation228_spill] sm:$0xff] %v10801_v49  ;;  %12804 = vst [vmem:[#allocation229_spill] sm:$0xff] %v10803_v56  ;;  %v1403_v23 = vsub.f32 %v10808_v58, %v1402_v26 }
 0x107   :  { %7469 = vmatmul.mubr.f32.gmra.mrb[104].mxu1 %v1314_v57  ;;  %8141 = vmatmul.mubr.f32.gmra.mrb[104].mxu0 %v1312_v48  ;;  %v10810_v57 = vand.u32 4294901760, %v144_v28  ;;  %v146_v48 = vld [vmem:[#allocation2 + $0x3b0] sm:$0xff]  ;;  %12807 = vst [vmem:[#allocation232_spill] sm:$0xff] %v10812_v27  ;;  %v10827_v8 = vsub.f32 %v145_v45, %v10812_v27 }
 0x108   :  { %7471 = vmatprep.mubr.f32.mxu1 %v1324_v50  ;;  %8143 = vmatprep.mubr.f32.mxu0 %v1322_v21  ;;  %v1392_v50 = vand.u32 4294901760, %v10801_v49  ;;  %v10817_v21 = vsub.f32 %v143_v63, %v10803_v56  ;;  %v10819_v60 = vand.u32 4294901760, %v146_v48  ;;  %v1374_v63 = vand.u32 4294901760, %v1373_v31 }
 0x109   :  { %12806 = vst [vmem:[#allocation231_spill] sm:$0xff] %v10810_v57  ;;  %12811 = vst [vmem:[#allocation236_spill] sm:$0xff] %v10827_v8  ;;  %v10842_v31 = vsub.f32 %v147_v15, %v10829_v35  ;;  %v1404_v58 = vand.u32 4294901760, %v1403_v23  ;;  %v151_v15 = vld [vmem:[#allocation2 + $0x3d8] sm:$0xff] }
 0x10a   :  { %12808 = vst [vmem:[#allocation233_spill] sm:$0xff] %v10817_v21  ;;  %12809 = vst [vmem:[#allocation234_spill] sm:$0xff] %v10819_v60  ;;  %v10834_v29 = vsub.f32 %v146_v48, %v10819_v60 }
 0x10b   :  { %7472 = vmatmul.mubr.f32.gmra.mrb[106].mxu1 %v1334_v62  ;;  %8144 = vmatmul.mubr.f32.gmra.mrb[106].mxu0 %v1332_v41  ;;  %v10824_v62 = vsub.f32 %v144_v28, %v10810_v57  ;;  %v148_v41 = vld [vmem:[#allocation2 + $0x3c0] sm:$0xff]  ;;  %v1384_v28 = vand.u32 4294901760, %v1383_v11  ;;  %v149_v57 = vld [vmem:[#allocation2 + $0x3c8] sm:$0xff]  ;;  %12814 = vst [vmem:[#allocation239_spill] sm:$0xff] %v10842_v31 }
 0x10c   :  { %7474 = vmatprep.mubr.f32.mxu1 %v1344_v37  ;;  %8146 = vmatprep.mubr.f32.mxu0 %v1342_v14  ;;  %v1393_v37 = vsub.f32 %v10801_v49, %v1392_v50  ;;  %v1412_v14 = vand.u32 4294901760, %v10817_v21  ;;  %12812 = vst [vmem:[#allocation237_spill] sm:$0xff] %v10834_v29  ;;  %v10838_v27 = vand.u32 4294901760, %v148_v41  ;;  %v1442_v11 = vand.u32 4294901760, %v10834_v29 }
 0x10d   :  { %12810 = vst [vmem:[#allocation235_spill] sm:$0xff] %v10824_v62  ;;  %v1422_v45 = vand.u32 4294901760, %v10824_v62 }
 0x10e   :  { %12813 = vst [vmem:[#allocation238_spill] sm:$0xff] %v10838_v27  ;;  %v1394_v48 = vand.u32 4294901760, %v1393_v37  ;;  %v10850_v60 = vsub.f32 %v148_v41, %v10838_v27  ;;  %v1452_v37 = vand.u32 4294901760, %v10842_v31 }
 0x10f   :  { %7475 = vmatmul.mubr.f32.gmra.mrb[108].mxu1 %v1354_v47  ;;  %8147 = vmatmul.mubr.f32.gmra.mrb[108].mxu0 %v1352_v59  ;;  %v150_v47 = vld [vmem:[#allocation2 + $0x3d0] sm:$0xff]  ;;  %v1432_v59 = vand.u32 4294901760, %v10827_v8  ;;  %v1423_v49 = vsub.f32 %v10824_v62, %v1422_v45 }
 0x110   :  { %7477 = vmatprep.mubr.f32.mxu1 %v1364_v24  ;;  %8149 = vmatprep.mubr.f32.mxu0 %v1362_v5  ;;  %v1413_v24 = vsub.f32 %v10817_v21, %v1412_v14  ;;  %v10846_v5 = vand.u32 4294901760, %v149_v57  ;;  %12816 = vst [vmem:[#allocation241_spill] sm:$0xff] %v10850_v60  ;;  %v10852_v56 = vand.u32 4294901760, %v150_v47  ;;  %v1462_v62 = vand.u32 4294901760, %v10850_v60 }
 0x111   :  { %v1424_v41 = vand.u32 4294901760, %v1423_v49 }
 0x112   :  { %12815 = vst [vmem:[#allocation240_spill] sm:$0xff] %v10846_v5  ;;  %12817 = vst [vmem:[#allocation242_spill] sm:$0xff] %v10852_v56  ;;  %v1414_v21 = vand.u32 4294901760, %v1413_v24  ;;  %v10858_v23 = vsub.f32 %v149_v57, %v10846_v5  ;;  %v10864_v27 = vsub.f32 %v150_v47, %v10852_v56 }
 0x113   :  { %7478 = vmatmul.mubr.f32.gmra.mrb[110].mxu1 %v1374_v63  ;;  %8150 = vmatmul.mubr.f32.gmra.mrb[110].mxu0 %v1372_v38  ;;  %v152_v63 = vld [vmem:[#allocation2 + $0x3e0] sm:$0xff]  ;;  %v1433_v38 = vsub.f32 %v10827_v8, %v1432_v59 }
 0x114   :  { %7480 = vmatprep.mubr.f32.mxu1 %v1384_v28  ;;  %8152 = vmatprep.mubr.f32.mxu0 %v1382_v40  ;;  %v1443_v28 = vsub.f32 %v10834_v29, %v1442_v11  ;;  %12818 = vst [vmem:[#allocation243_spill] sm:$0xff] %v10858_v23  ;;  %v10860_v40 = vand.u32 4294901760, %v151_v15  ;;  %12820 = vst [vmem:[#allocation245_spill] sm:$0xff] %v10864_v27  ;;  %v10866_v8 = vand.u32 4294901760, %v152_v63  ;;  %v1472_v5 = vand.u32 4294901760, %v10858_v23 }
 0x115   :  { %v1434_v24 = vand.u32 4294901760, %v1433_v38  ;;  %v1453_v29 = vsub.f32 %v10842_v31, %v1452_v37  ;;  %v1482_v47 = vand.u32 4294901760, %v10864_v27 }
 0x116   :  { %12819 = vst [vmem:[#allocation244_spill] sm:$0xff] %v10860_v40  ;;  %12821 = vst [vmem:[#allocation246_spill] sm:$0xff] %v10866_v8  ;;  %v1444_v57 = vand.u32 4294901760, %v1443_v28  ;;  %v10878_v38 = vsub.f32 %v152_v63, %v10866_v8 }
 0x117   :  { %7481 = vmatmul.mubr.f32.gmra.mrb[112].mxu1 %v1394_v48  ;;  %8153 = vmatmul.mubr.f32.gmra.mrb[112].mxu0 %v1392_v50  ;;  %v153_v48 = vld [vmem:[#allocation2 + $0x3e8] sm:$0xff]  ;;  %v154_v50 = vld [vmem:[#allocation2 + $0x3f0] sm:$0xff]  ;;  %v1483_v63 = vsub.f32 %v10864_v27, %v1482_v47  ;;  %v12874_v27 = vld [vmem:[#allocation97_spill] sm:$0xff] }
 0x118   :  { %7483 = vmatprep.mubr.f32.mxu1 %v1404_v58  ;;  %8155 = vmatprep.mubr.f32.mxu0 %v1402_v26  ;;  %v10871_v58 = vsub.f32 %v151_v15, %v10860_v40  ;;  %v10873_v49 = vand.u32 4294901760, %v153_v48  ;;  %v1463_v26 = vsub.f32 %v10850_v60, %v1462_v62  ;;  %12824 = vst [vmem:[#allocation249_spill] sm:$0xff] %v10878_v38  ;;  %v10880_v31 = vand.u32 4294901760, %v154_v50 }
 0x119   :  { %v1473_v15 = vsub.f32 %v10858_v23, %v1472_v5  ;;  %v1502_v8 = vand.u32 4294901760, %v10878_v38 }
 0x11a   :  { %12822 = vst [vmem:[#allocation247_spill] sm:$0xff] %v10871_v58  ;;  %12823 = vst [vmem:[#allocation248_spill] sm:$0xff] %v10873_v49  ;;  %v1492_v28 = vand.u32 4294901760, %v10871_v58  ;;  %v1464_v60 = vand.u32 4294901760, %v1463_v26 }
 0x11b   :  { %7484 = vmatmul.mubr.f32.gmra.mrb[114].mxu1 %v1414_v21  ;;  %8156 = vmatmul.mubr.f32.gmra.mrb[114].mxu0 %v1412_v14  ;;  %12825 = vst [vmem:[#allocation250_spill] sm:$0xff] %v10880_v31  ;;  %v155_v21 = vld [vmem:[#allocation2 + $0x3f8] sm:$0xff]  ;;  %v1454_v14 = vand.u32 4294901760, %v1453_v29  ;;  %v10892_v29 = vsub.f32 %v154_v50, %v10880_v31 }
 0x11c   :  { %7486 = vmatprep.mubr.f32.mxu1 %v1424_v41  ;;  %8158 = vmatprep.mubr.f32.mxu0 %v1422_v45  ;;  %v10885_v41 = vsub.f32 %v153_v48, %v10873_v49  ;;  %v10887_v45 = vand.u32 4294901760, %v155_v21 }
 0x11d   :  { %12828 = vst [vmem:[#allocation253_spill] sm:$0xff] %v10892_v29  ;;  %v1522_v26 = vand.u32 4294901760, %v10892_v29 }
 0x11e   :  { %12826 = vst [vmem:[#allocation251_spill] sm:$0xff] %v10885_v41  ;;  %12827 = vst [vmem:[#allocation252_spill] sm:$0xff] %v10887_v45  ;;  %v1512_v48 = vand.u32 4294901760, %v10885_v41  ;;  %v10897_v23 = vsub.f32 %v155_v21, %v10887_v45 }
 0x11f   :  { %7487 = vmatmul.mubr.f32.gmra.mrb[116].mxu1 %v1434_v24  ;;  %8159 = vmatmul.mubr.f32.gmra.mrb[116].mxu0 %v1432_v59  ;;  %v1474_v59 = vand.u32 4294901760, %v1473_v15  ;;  %v1493_v24 = vsub.f32 %v10871_v58, %v1492_v28  ;;  %v1523_v21 = vsub.f32 %v10892_v29, %v1522_v26  ;;  %v12870_v29 = vld [vmem:[#allocation88_spill] sm:$0xff] }
 0x120   :  { %7489 = vmatprep.mubr.f32.mxu1 %v1444_v57  ;;  %8161 = vmatprep.mubr.f32.mxu0 %v1442_v11  ;;  %12829 = vst [vmem:[#allocation254_spill] sm:$0xff] %v10897_v23  ;;  %v1484_v11 = vand.u32 4294901760, %v1483_v63  ;;  %v1503_v57 = vsub.f32 %v10878_v38, %v1502_v8  ;;  %v12872_v38 = vld [vmem:[#allocation91_spill] sm:$0xff]  ;;  %v12873_v58 = vld [vmem:[#allocation92_spill] sm:$0xff] }
 0x121   :  { %v1494_v50 = vand.u32 4294901760, %v1493_v24  ;;  %v1524_v63 = vand.u32 4294901760, %v1523_v21  ;;  %v8708_v24 = vpack.c.bf16 %v10284_v36, %v10279_v55  ;;  %v12847_v36 = vld [vmem:[#allocation44_spill] sm:$0xff]  ;;  %v12848_v55 = vld [vmem:[#allocation46_spill] sm:$0xff] }
 0x122   :  { %v1504_v15 = vand.u32 4294901760, %v1503_v57  ;;  %v12845_v57 = vld [vmem:[#allocation40_spill] sm:$0xff] }
 0x123   :  { %7490 = vmatmul.mubr.f32.gmra.mrb[118].mxu1 %v1454_v14  ;;  %8162 = vmatmul.mubr.f32.gmra.mrb[118].mxu0 %v1452_v37  ;;  %v1513_v37 = vsub.f32 %v10885_v41, %v1512_v48  ;;  %v1532_v14 = vand.u32 4294901760, %v10897_v23  ;;  %v12853_v21 = vld [vmem:[#allocation56_spill] sm:$0xff]  ;;  %v12871_v41 = vld [vmem:[#allocation90_spill] sm:$0xff] }
 0x124   :  { %7492 = vmatprep.mubr.f32.mxu1 %v1464_v60  ;;  %8164 = vmatprep.mubr.f32.mxu0 %v1462_v62 }
 0x125   :  { %v1514_v60 = vand.u32 4294901760, %v1513_v37  ;;  %v1533_v62 = vsub.f32 %v10897_v23, %v1532_v14  ;;  %v12850_v37 = vld [vmem:[#allocation48_spill] sm:$0xff]  ;;  %v12869_v23 = vld [vmem:[#allocation85_spill] sm:$0xff] }
 0x127   :  { %7493 = vmatmul.mubr.f32.gmra.mrb[120].mxu1 %v1474_v59  ;;  %8165 = vmatmul.mubr.f32.gmra.mrb[120].mxu0 %v1472_v5  ;;  %v1534_v5 = vand.u32 4294901760, %v1533_v62  ;;  %v12842_v59 = vld [vmem:[#allocation34_spill] sm:$0xff]  ;;  %v12855_v62 = vld [vmem:[#allocation59_spill] sm:$0xff] }
 0x128   :  { %7495 = vmatprep.mubr.f32.mxu1 %v1484_v11  ;;  %8167 = vmatprep.mubr.f32.mxu0 %v1482_v47  ;;  %v8692_v47 = vpack.c.bf16 %v9873_v61, %v9863_v33  ;;  %v12830_v33 = vld [vmem:[#allocation15_spill] sm:$0xff]  ;;  %v12832_v61 = vld [vmem:[#allocation6_spill] sm:$0xff]  ;;  %v12844_v11 = vld [vmem:[#allocation37_spill] sm:$0xff] }
 0x12b   :  { %7496 = vmatmul.mubr.f32.gmra.mrb[122].mxu1 %v1494_v50  ;;  %8168 = vmatmul.mubr.f32.gmra.mrb[122].mxu0 %v1492_v28  ;;  %v12841_v28 = vld [vmem:[#allocation30_spill] sm:$0xff]  ;;  %v12849_v50 = vld [vmem:[#allocation47_spill] sm:$0xff] }
 0x12c   :  { %7498 = vmatprep.mubr.f32.mxu1 %v1504_v15  ;;  %8170 = vmatprep.mubr.f32.mxu0 %v1502_v8  ;;  %v8696_v8 = vpack.c.bf16 %v9991_v43, %v9975_v0  ;;  %v12831_v0 = vld [vmem:[#allocation17_spill] sm:$0xff]  ;;  %v12836_v43 = vld [vmem:[#allocation10_spill] sm:$0xff] }
 0x12d   :  { %v12852_v15 = vld [vmem:[#allocation54_spill] sm:$0xff] }
 0x12f   :  { %7499 = vmatmul.mubr.f32.gmra.mrb[124].mxu1 %v1514_v60  ;;  %8171 = vmatmul.mubr.f32.gmra.mrb[124].mxu0 %v1512_v48  ;;  %v12843_v48 = vld [vmem:[#allocation35_spill] sm:$0xff]  ;;  %v12854_v60 = vld [vmem:[#allocation57_spill] sm:$0xff] }
 0x130   :  { %7501 = vmatprep.mubr.f32.mxu1 %v1524_v63  ;;  %8173 = vmatprep.mubr.f32.mxu0 %v1522_v26  ;;  %v12846_v26 = vld [vmem:[#allocation42_spill] sm:$0xff] }
 0x131   :  { %v12856_v63 = vld [vmem:[#allocation62_spill] sm:$0xff] }
 0x133   :  { %7502 = vmatmul.mubr.f32.gmra.mrb[126].mxu1 %v1534_v5  ;;  %8174 = vmatmul.mubr.f32.gmra.mrb[126].mxu0 %v1532_v14  ;;  %v12851_v14 = vld [vmem:[#allocation53_spill] sm:$0xff]  ;;  %v12857_v5 = vld [vmem:[#allocation64_spill] sm:$0xff] }
 0x134   :  { %7536 = vmatprep.mubr.f32.mxu1 %v9703_v17  ;;  %8208 = vmatprep.mubr.f32.mxu0 %v9703_v17 }
 0x137   :  { %7537 = vmatmul.mubr.f32.vlgmr.msra.gmra.mrb[0].mxu1 %v9774_v39  ;;  %8209 = vmatmul.mubr.f32.vlgmr.msra.gmra.mrb[0].mxu0 %v9774_v39 }
 0x138   :  { %8691 = vmatpush3.bf16.msra.mxu1 %v10586_v2  ;;  %7539 = vmatprep.mubr.f32.mxu1 %v9780_v42  ;;  %v12840_v2 = vld [vmem:[#allocation29_spill] sm:$0xff] }
 0x139   :  { %8211 = vmatprep.mubr.f32.mxu0 %v9780_v42  ;;  %8787 = vmatpush3.bf16.msra.mxu0 %v9679_v10  ;;  %v8700_v10 = vpack.c.bf16 %v10097_v6, %v10089_v19  ;;  %v12834_v19 = vld [vmem:[#allocation20_spill] sm:$0xff] }
 0x13a   :  { %8693 = vmatprep.subr.bf16.mxu1 %v8692_v47  ;;  %8789 = vmatprep.subr.bf16.mxu0 %v9687_v13  ;;  %v12837_v6 = vld [vmem:[#allocation24_spill] sm:$0xff] }
 0x13b   :  { %7540 = vmatmul.mubr.f32.gmra.mrb[2].mxu1 %v9809_v53  ;;  %8212 = vmatmul.mubr.f32.gmra.mrb[2].mxu0 %v9809_v53 }
 0x13c   :  { %7542 = vmatprep.mubr.f32.mxu1 %v9811_v54  ;;  %8214 = vmatprep.mubr.f32.mxu0 %v9811_v54 }
 0x13d   :  { %8695 = vmatpush3.bf16.msra.mxu1 %v8692_v47  ;;  %8791 = vmatpush3.bf16.msra.mxu0 %v9687_v13  ;;  %v8704_v13 = vpack.c.bf16 %v10199_v20, %v10187_v7  ;;  %v12838_v7 = vld [vmem:[#allocation27_spill] sm:$0xff]  ;;  %v12839_v20 = vld [vmem:[#allocation13_spill] sm:$0xff]  ;;  %v12858_v47 = vld [vmem:[#allocation128_spill] sm:$0xff] }
 0x13e   :  { %8697 = vmatprep.subr.bf16.mxu1 %v8696_v8  ;;  %8793 = vmatprep.subr.bf16.mxu0 %v9711_v18 }
 0x13f   :  { %7543 = vmatmul.mubr.f32.gmra.mrb[4].mxu1 %v9837_v3  ;;  %8215 = vmatmul.mubr.f32.gmra.mrb[4].mxu0 %v9837_v3 }
 0x140   :  { %7545 = vmatprep.mubr.f32.mxu1 %v9842_v16  ;;  %8217 = vmatprep.mubr.f32.mxu0 %v9842_v16 }
 0x141   :  { %8699 = vmatpush3.bf16.msra.mxu1 %v8696_v8  ;;  %8795 = vmatpush3.bf16.msra.mxu0 %v9711_v18  ;;  %v12833_v18 = vld [vmem:[#allocation7_spill] sm:$0xff]  ;;  %v8712_v8 = vpack.c.bf16 %v12858_v47, %v10382_v30  ;;  %v12867_v47 = vld [vmem:[#allocation82_spill] sm:$0xff] }
 0x142   :  { %8701 = vmatprep.subr.bf16.mxu1 %v8700_v10  ;;  %8797 = vmatprep.subr.bf16.mxu0 %v9737_v25  ;;  %v12864_v30 = vld [vmem:[#allocation75_spill] sm:$0xff] }
 0x143   :  { %7546 = vmatmul.mubr.f32.gmra.mrb[6].mxu1 %v12830_v33  ;;  %8218 = vmatmul.mubr.f32.gmra.mrb[6].mxu0 %v12830_v33 }
 0x144   :  { %7548 = vmatprep.mubr.f32.mxu1 %v12831_v0  ;;  %8220 = vmatprep.mubr.f32.mxu0 %v12831_v0 }
 0x145   :  { %8703 = vmatpush3.bf16.msra.mxu1 %v8700_v10  ;;  %8799 = vmatpush3.bf16.msra.mxu0 %v9737_v25  ;;  %v12835_v25 = vld [vmem:[#allocation22_spill] sm:$0xff] }
 0x146   :  { %8705 = vmatprep.subr.bf16.mxu1 %v8704_v13  ;;  %8801 = vmatprep.subr.bf16.mxu0 %v12832_v61  ;;  %v12859_v10 = vld [vmem:[#allocation66_spill] sm:$0xff] }
 0x147   :  { %7549 = vmatmul.mubr.f32.gmra.mrb[8].mxu1 %v9897_v51  ;;  %8221 = vmatmul.mubr.f32.gmra.mrb[8].mxu0 %v9897_v51 }
 0x148   :  { %7551 = vmatprep.mubr.f32.mxu1 %v9906_v44  ;;  %8223 = vmatprep.mubr.f32.mxu0 %v9906_v44 }
 0x149   :  { %8707 = vmatpush3.bf16.msra.mxu1 %v8704_v13  ;;  %8803 = vmatpush3.bf16.msra.mxu0 %v12832_v61  ;;  %v12860_v13 = vld [vmem:[#allocation67_spill] sm:$0xff]  ;;  %v12861_v61 = vld [vmem:[#allocation68_spill] sm:$0xff] }
 0x14a   :  { %8805 = vmatprep.subr.bf16.mxu0 %v12833_v18  ;;  %8709 = vmatprep.subr.bf16.mxu1 %v8708_v24 }
 0x14b   :  { %7552 = vmatmul.mubr.f32.gmra.mrb[10].mxu1 %v12834_v19  ;;  %8224 = vmatmul.mubr.f32.gmra.mrb[10].mxu0 %v12834_v19 }
 0x14c   :  { %7554 = vmatprep.mubr.f32.mxu1 %v12835_v25  ;;  %8226 = vmatprep.mubr.f32.mxu0 %v12835_v25 }
 0x14d   :  { %8807 = vmatpush3.bf16.msra.mxu0 %v12833_v18  ;;  %8711 = vmatpush3.bf16.msra.mxu1 %v8708_v24  ;;  %v12862_v18 = vld [vmem:[#allocation73_spill] sm:$0xff]  ;;  %v12866_v24 = vld [vmem:[#allocation80_spill] sm:$0xff] }
 0x14e   :  { %8809 = vmatprep.subr.bf16.mxu0 %v12836_v43  ;;  %8713 = vmatprep.subr.bf16.mxu1 %v8712_v8 }
 0x14f   :  { %7555 = vmatmul.mubr.f32.gmra.mrb[12].mxu1 %v12837_v6  ;;  %8227 = vmatmul.mubr.f32.gmra.mrb[12].mxu0 %v12837_v6 }
 0x150   :  { %7557 = vmatprep.mubr.f32.mxu1 %v12838_v7  ;;  %8229 = vmatprep.mubr.f32.mxu0 %v12838_v7 }
 0x151   :  { %8811 = vmatpush3.bf16.msra.mxu0 %v12836_v43  ;;  %8715 = vmatpush3.bf16.msra.mxu1 %v8712_v8  ;;  %v12863_v43 = vld [vmem:[#allocation74_spill] sm:$0xff]  ;;  %v12868_v8 = vld [vmem:[#allocation84_spill] sm:$0xff] }
 0x152   :  { %8813 = vmatprep.subr.bf16.mxu0 %v12839_v20 }
 0x153   :  { %7558 = vmatmul.mubr.f32.gmra.mrb[14].mxu1 %v12840_v2  ;;  %8230 = vmatmul.mubr.f32.gmra.mrb[14].mxu0 %v12840_v2 }
 0x154   :  { %7560 = vmatprep.mubr.f32.mxu1 %v12841_v28  ;;  %8232 = vmatprep.mubr.f32.mxu0 %v12841_v28 }
 0x155   :  { %8815 = vmatpush3.bf16.msra.mxu0 %v12839_v20  ;;  %v12865_v20 = vld [vmem:[#allocation78_spill] sm:$0xff] }
 0x157   :  { %7561 = vmatmul.mubr.f32.gmra.mrb[16].mxu1 %v12842_v59  ;;  %8233 = vmatmul.mubr.f32.gmra.mrb[16].mxu0 %v12842_v59 }
 0x158   :  { %7563 = vmatprep.mubr.f32.mxu1 %v12843_v48  ;;  %8235 = vmatprep.mubr.f32.mxu0 %v12843_v48 }
 0x15b   :  { %7564 = vmatmul.mubr.f32.gmra.mrb[18].mxu1 %v12844_v11  ;;  %8236 = vmatmul.mubr.f32.gmra.mrb[18].mxu0 %v12844_v11 }
 0x15c   :  { %7566 = vmatprep.mubr.f32.mxu1 %v9997_v34  ;;  %8238 = vmatprep.mubr.f32.mxu0 %v9997_v34 }
 0x15f   :  { %7567 = vmatmul.mubr.f32.gmra.mrb[20].mxu1 %v12845_v57  ;;  %8239 = vmatmul.mubr.f32.gmra.mrb[20].mxu0 %v12845_v57 }
 0x160   :  { %7569 = vmatprep.mubr.f32.mxu1 %v12846_v26  ;;  %8241 = vmatprep.mubr.f32.mxu0 %v12846_v26 }
 0x163   :  { %7570 = vmatmul.mubr.f32.gmra.mrb[22].mxu1 %v12847_v36  ;;  %8242 = vmatmul.mubr.f32.gmra.mrb[22].mxu0 %v12847_v36 }
 0x164   :  { %7572 = vmatprep.mubr.f32.mxu1 %v12848_v55  ;;  %8244 = vmatprep.mubr.f32.mxu0 %v12848_v55 }
 0x167   :  { %7573 = vmatmul.mubr.f32.gmra.mrb[24].mxu1 %v12849_v50  ;;  %8245 = vmatmul.mubr.f32.gmra.mrb[24].mxu0 %v12849_v50 }
 0x168   :  { %7575 = vmatprep.mubr.f32.mxu1 %v12850_v37  ;;  %8247 = vmatprep.mubr.f32.mxu0 %v12850_v37 }
 0x16b   :  { %7576 = vmatmul.mubr.f32.gmra.mrb[26].mxu1 %v12851_v14  ;;  %8248 = vmatmul.mubr.f32.gmra.mrb[26].mxu0 %v12851_v14 }
 0x16c   :  { %7578 = vmatprep.mubr.f32.mxu1 %v12852_v15  ;;  %8250 = vmatprep.mubr.f32.mxu0 %v12852_v15 }
 0x16f   :  { %7579 = vmatmul.mubr.f32.gmra.mrb[28].mxu1 %v12853_v21  ;;  %8251 = vmatmul.mubr.f32.gmra.mrb[28].mxu0 %v12853_v21 }
 0x170   :  { %7581 = vmatprep.mubr.f32.mxu1 %v12854_v60  ;;  %8253 = vmatprep.mubr.f32.mxu0 %v12854_v60 }
 0x173   :  { %7582 = vmatmul.mubr.f32.gmra.mrb[30].mxu1 %v12855_v62  ;;  %8254 = vmatmul.mubr.f32.gmra.mrb[30].mxu0 %v12855_v62 }
 0x174   :  { %7584 = vmatprep.mubr.f32.mxu1 %v12856_v63  ;;  %8256 = vmatprep.mubr.f32.mxu0 %v12856_v63 }
 0x177   :  { %7585 = vmatmul.mubr.f32.gmra.mrb[32].mxu1 %v12857_v5  ;;  %8257 = vmatmul.mubr.f32.gmra.mrb[32].mxu0 %v12857_v5 }
 0x178   :  { %7587 = vmatprep.mubr.f32.mxu1 %v12859_v10  ;;  %8259 = vmatprep.mubr.f32.mxu0 %v12859_v10 }
 0x17b   :  { %7588 = vmatmul.mubr.f32.gmra.mrb[34].mxu1 %v12860_v13  ;;  %8260 = vmatmul.mubr.f32.gmra.mrb[34].mxu0 %v12860_v13 }
 0x17c   :  { %7590 = vmatprep.mubr.f32.mxu1 %v12861_v61  ;;  %8262 = vmatprep.mubr.f32.mxu0 %v12861_v61 }
 0x17f   :  { %7591 = vmatmul.mubr.f32.gmra.mrb[36].mxu1 %v12862_v18  ;;  %8263 = vmatmul.mubr.f32.gmra.mrb[36].mxu0 %v12862_v18 }
 0x180   :  { %7593 = vmatprep.mubr.f32.mxu1 %v12863_v43  ;;  %8265 = vmatprep.mubr.f32.mxu0 %v12863_v43 }
 0x183   :  { %7594 = vmatmul.mubr.f32.gmra.mrb[38].mxu1 %v12864_v30  ;;  %8266 = vmatmul.mubr.f32.gmra.mrb[38].mxu0 %v12864_v30 }
 0x184   :  { %7596 = vmatprep.mubr.f32.mxu1 %v12865_v20  ;;  %8268 = vmatprep.mubr.f32.mxu0 %v12865_v20 }
 0x187   :  { %7597 = vmatmul.mubr.f32.gmra.mrb[40].mxu1 %v12866_v24  ;;  %8269 = vmatmul.mubr.f32.gmra.mrb[40].mxu0 %v12866_v24 }
 0x188   :  { %7599 = vmatprep.mubr.f32.mxu1 %v12867_v47  ;;  %8271 = vmatprep.mubr.f32.mxu0 %v12867_v47 }
 0x18b   :  { %7600 = vmatmul.mubr.f32.gmra.mrb[42].mxu1 %v12868_v8  ;;  %8272 = vmatmul.mubr.f32.gmra.mrb[42].mxu0 %v12868_v8 }
 0x18c   :  { %7602 = vmatprep.mubr.f32.mxu1 %v12869_v23  ;;  %8274 = vmatprep.mubr.f32.mxu0 %v12869_v23  ;;  %v8716_v23 = vpack.c.bf16 %v10506_v32, %v10496_v22  ;;  %v12880_v32 = vld [vmem:[#allocation108_spill] sm:$0xff]  ;;  %v12881_v22 = vld [vmem:[#allocation110_spill] sm:$0xff] }
 0x18e   :  { %8717 = vmatprep.subr.bf16.mxu1 %v8716_v23 }
 0x18f   :  { %7603 = vmatmul.mubr.f32.gmra.mrb[44].mxu1 %v12870_v29  ;;  %8275 = vmatmul.mubr.f32.gmra.mrb[44].mxu0 %v12870_v29  ;;  %v12875_v29 = vld [vmem:[#allocation98_spill] sm:$0xff] }
 0x190   :  { %7605 = vmatprep.mubr.f32.mxu1 %v12871_v41  ;;  %8277 = vmatprep.mubr.f32.mxu0 %v12871_v41  ;;  %v12876_v41 = vld [vmem:[#allocation100_spill] sm:$0xff] }
 0x191   :  { %8719 = vmatpush3.bf16.msra.mxu1 %v8716_v23  ;;  %v12882_v23 = vld [vmem:[#allocation111_spill] sm:$0xff] }
 0x193   :  { %7606 = vmatmul.mubr.f32.gmra.mrb[46].mxu1 %v12872_v38  ;;  %8278 = vmatmul.mubr.f32.gmra.mrb[46].mxu0 %v12872_v38  ;;  %v12877_v38 = vld [vmem:[#allocation102_spill] sm:$0xff] }
 0x194   :  { %7608 = vmatprep.mubr.f32.mxu1 %v12873_v58  ;;  %8280 = vmatprep.mubr.f32.mxu0 %v12873_v58  ;;  %v12878_v58 = vld [vmem:[#allocation103_spill] sm:$0xff] }
 0x197   :  { %7609 = vmatmul.mubr.f32.gmra.mrb[48].mxu1 %v12874_v27  ;;  %8281 = vmatmul.mubr.f32.gmra.mrb[48].mxu0 %v12874_v27  ;;  %v12879_v27 = vld [vmem:[#allocation106_spill] sm:$0xff] }
 0x198   :  { %7611 = vmatprep.mubr.f32.mxu1 %v12875_v29  ;;  %8283 = vmatprep.mubr.f32.mxu0 %v12875_v29 }
 0x19b   :  { %7612 = vmatmul.mubr.f32.gmra.mrb[50].mxu1 %v12876_v41  ;;  %8284 = vmatmul.mubr.f32.gmra.mrb[50].mxu0 %v12876_v41 }
 0x19c   :  { %7614 = vmatprep.mubr.f32.mxu1 %v12877_v38  ;;  %8286 = vmatprep.mubr.f32.mxu0 %v12877_v38  ;;  %v12883_v38 = vld [vmem:[#allocation113_spill] sm:$0xff] }
 0x19f   :  { %7615 = vmatmul.mubr.f32.gmra.mrb[52].mxu1 %v12878_v58  ;;  %8287 = vmatmul.mubr.f32.gmra.mrb[52].mxu0 %v12878_v58  ;;  %v12884_v58 = vld [vmem:[#allocation115_spill] sm:$0xff] }
 0x1a0   :  { %7617 = vmatprep.mubr.f32.mxu1 %v12879_v27  ;;  %8289 = vmatprep.mubr.f32.mxu0 %v12879_v27  ;;  %v12885_v27 = vld [vmem:[#allocation118_spill] sm:$0xff] }
 0x1a3   :  { %7618 = vmatmul.mubr.f32.gmra.mrb[54].mxu1 %v12880_v32  ;;  %8290 = vmatmul.mubr.f32.gmra.mrb[54].mxu0 %v12880_v32  ;;  %v12886_v32 = vld [vmem:[#allocation120_spill] sm:$0xff] }
 0x1a4   :  { %7620 = vmatprep.mubr.f32.mxu1 %v12881_v22  ;;  %8292 = vmatprep.mubr.f32.mxu0 %v12881_v22  ;;  %v12887_v22 = vld [vmem:[#allocation122_spill] sm:$0xff] }
 0x1a7   :  { %7621 = vmatmul.mubr.f32.gmra.mrb[56].mxu1 %v12882_v23  ;;  %8293 = vmatmul.mubr.f32.gmra.mrb[56].mxu0 %v12882_v23  ;;  %v12888_v23 = vld [vmem:[#allocation124_spill] sm:$0xff] }
 0x1a8   :  { %7623 = vmatprep.mubr.f32.mxu1 %v12883_v38  ;;  %8295 = vmatprep.mubr.f32.mxu0 %v12883_v38  ;;  %v12889_v38 = vld [vmem:[#allocation126_spill] sm:$0xff] }
 0x1ab   :  { %7624 = vmatmul.mubr.f32.gmra.mrb[58].mxu1 %v12884_v58  ;;  %8296 = vmatmul.mubr.f32.gmra.mrb[58].mxu0 %v12884_v58  ;;  %v12890_v58 = vld [vmem:[#allocation129_spill] sm:$0xff] }
 0x1ac   :  { %7626 = vmatprep.mubr.f32.mxu1 %v12885_v27  ;;  %8298 = vmatprep.mubr.f32.mxu0 %v12885_v27  ;;  %v12891_v27 = vld [vmem:[#allocation131_spill] sm:$0xff] }
 0x1af   :  { %7627 = vmatmul.mubr.f32.gmra.mrb[60].mxu1 %v12886_v32  ;;  %8299 = vmatmul.mubr.f32.gmra.mrb[60].mxu0 %v12886_v32  ;;  %v12892_v32 = vld [vmem:[#allocation133_spill] sm:$0xff] }
 0x1b0   :  { %7629 = vmatprep.mubr.f32.mxu1 %v12887_v22  ;;  %8301 = vmatprep.mubr.f32.mxu0 %v12887_v22  ;;  %v12893_v22 = vld [vmem:[#allocation134_spill] sm:$0xff] }
 0x1b3   :  { %7630 = vmatmul.mubr.f32.gmra.mrb[62].mxu1 %v12888_v23  ;;  %8302 = vmatmul.mubr.f32.gmra.mrb[62].mxu0 %v12888_v23  ;;  %v12894_v23 = vld [vmem:[#allocation136_spill] sm:$0xff] }
 0x1b4   :  { %7632 = vmatprep.mubr.f32.mxu1 %v12889_v38  ;;  %8304 = vmatprep.mubr.f32.mxu0 %v12889_v38  ;;  %v12895_v38 = vld [vmem:[#allocation137_spill] sm:$0xff] }
 0x1b7   :  { %7633 = vmatmul.mubr.f32.gmra.mrb[64].mxu1 %v12890_v58  ;;  %8305 = vmatmul.mubr.f32.gmra.mrb[64].mxu0 %v12890_v58  ;;  %v12896_v58 = vld [vmem:[#allocation141_spill] sm:$0xff] }
 0x1b8   :  { %7635 = vmatprep.mubr.f32.mxu1 %v12891_v27  ;;  %8307 = vmatprep.mubr.f32.mxu0 %v12891_v27  ;;  %v12897_v27 = vld [vmem:[#allocation143_spill] sm:$0xff] }
 0x1bb   :  { %7636 = vmatmul.mubr.f32.gmra.mrb[66].mxu1 %v12892_v32  ;;  %8308 = vmatmul.mubr.f32.gmra.mrb[66].mxu0 %v12892_v32  ;;  %v12898_v32 = vld [vmem:[#allocation145_spill] sm:$0xff] }
 0x1bc   :  { %7638 = vmatprep.mubr.f32.mxu1 %v12893_v22  ;;  %8310 = vmatprep.mubr.f32.mxu0 %v12893_v22  ;;  %v12899_v22 = vld [vmem:[#allocation147_spill] sm:$0xff] }
 0x1bf   :  { %7639 = vmatmul.mubr.f32.gmra.mrb[68].mxu1 %v12894_v23  ;;  %8311 = vmatmul.mubr.f32.gmra.mrb[68].mxu0 %v12894_v23  ;;  %v12900_v23 = vld [vmem:[#allocation148_spill] sm:$0xff] }
 0x1c0   :  { %7641 = vmatprep.mubr.f32.mxu1 %v12895_v38  ;;  %8313 = vmatprep.mubr.f32.mxu0 %v12895_v38 }
 0x1c3   :  { %7642 = vmatmul.mubr.f32.gmra.mrb[70].mxu1 %v12896_v58  ;;  %8314 = vmatmul.mubr.f32.gmra.mrb[70].mxu0 %v12896_v58 }
 0x1c4   :  { %7644 = vmatprep.mubr.f32.mxu1 %v12897_v27  ;;  %8316 = vmatprep.mubr.f32.mxu0 %v12897_v27 }
 0x1c7   :  { %7645 = vmatmul.mubr.f32.gmra.mrb[72].mxu1 %v12898_v32  ;;  %8317 = vmatmul.mubr.f32.gmra.mrb[72].mxu0 %v12898_v32 }
 0x1c8   :  { %7647 = vmatprep.mubr.f32.mxu1 %v12899_v22  ;;  %8319 = vmatprep.mubr.f32.mxu0 %v12899_v22 }
 0x1cb   :  { %7648 = vmatmul.mubr.f32.gmra.mrb[74].mxu1 %v12900_v23  ;;  %8320 = vmatmul.mubr.f32.gmra.mrb[74].mxu0 %v12900_v23 }
 0x1cc   :  { %7650 = vmatprep.mubr.f32.mxu1 %v10512_v46  ;;  %8322 = vmatprep.mubr.f32.mxu0 %v10512_v46  ;;  %v12901_v46 = vld [vmem:[#allocation163_spill] sm:$0xff] }
 0x1cf   :  { %7651 = vmatmul.mubr.f32.gmra.mrb[76].mxu1 %v10522_v52  ;;  %8323 = vmatmul.mubr.f32.gmra.mrb[76].mxu0 %v10522_v52  ;;  %v12902_v52 = vld [vmem:[#allocation165_spill] sm:$0xff] }
 0x1d0   :  { %7653 = vmatprep.mubr.f32.mxu1 %v10526_v1  ;;  %8325 = vmatprep.mubr.f32.mxu0 %v10526_v1  ;;  %v12903_v1 = vld [vmem:[#allocation167_spill] sm:$0xff] }
 0x1d3   :  { %7654 = vmatmul.mubr.f32.gmra.mrb[78].mxu1 %v10537_v4  ;;  %8326 = vmatmul.mubr.f32.gmra.mrb[78].mxu0 %v10537_v4  ;;  %v12904_v4 = vld [vmem:[#allocation169_spill] sm:$0xff] }
 0x1d4   :  { %7656 = vmatprep.mubr.f32.mxu1 %v10550_v9  ;;  %8328 = vmatprep.mubr.f32.mxu0 %v10550_v9  ;;  %v12905_v9 = vld [vmem:[#allocation171_spill] sm:$0xff] }
 0x1d7   :  { %7657 = vmatmul.mubr.f32.gmra.mrb[80].mxu1 %v10561_v12  ;;  %8329 = vmatmul.mubr.f32.gmra.mrb[80].mxu0 %v10561_v12  ;;  %v12906_v12 = vld [vmem:[#allocation172_spill] sm:$0xff] }
 0x1d8   :  { %7659 = vmatprep.mubr.f32.mxu1 %v12901_v46  ;;  %8331 = vmatprep.mubr.f32.mxu0 %v12901_v46  ;;  %v12907_v46 = vld [vmem:[#allocation174_spill] sm:$0xff] }
 0x1db   :  { %7660 = vmatmul.mubr.f32.gmra.mrb[82].mxu1 %v12902_v52  ;;  %8332 = vmatmul.mubr.f32.gmra.mrb[82].mxu0 %v12902_v52  ;;  %v12908_v52 = vld [vmem:[#allocation177_spill] sm:$0xff] }
 0x1dc   :  { %7662 = vmatprep.mubr.f32.mxu1 %v12903_v1  ;;  %8334 = vmatprep.mubr.f32.mxu0 %v12903_v1  ;;  %v12909_v1 = vld [vmem:[#allocation179_spill] sm:$0xff] }
 0x1df   :  { %7663 = vmatmul.mubr.f32.gmra.mrb[84].mxu1 %v12904_v4  ;;  %8335 = vmatmul.mubr.f32.gmra.mrb[84].mxu0 %v12904_v4  ;;  %v12910_v4 = vld [vmem:[#allocation181_spill] sm:$0xff] }
 0x1e0   :  { %7665 = vmatprep.mubr.f32.mxu1 %v12905_v9  ;;  %8337 = vmatprep.mubr.f32.mxu0 %v12905_v9  ;;  %v12911_v9 = vld [vmem:[#allocation183_spill] sm:$0xff] }
 0x1e3   :  { %7666 = vmatmul.mubr.f32.gmra.mrb[86].mxu1 %v12906_v12  ;;  %8338 = vmatmul.mubr.f32.gmra.mrb[86].mxu0 %v12906_v12  ;;  %v12912_v12 = vld [vmem:[#allocation185_spill] sm:$0xff] }
 0x1e4   :  { %7668 = vmatprep.mubr.f32.mxu1 %v12907_v46  ;;  %8340 = vmatprep.mubr.f32.mxu0 %v12907_v46  ;;  %v12913_v46 = vld [vmem:[#allocation187_spill] sm:$0xff] }
 0x1e7   :  { %7669 = vmatmul.mubr.f32.gmra.mrb[88].mxu1 %v12908_v52  ;;  %8341 = vmatmul.mubr.f32.gmra.mrb[88].mxu0 %v12908_v52  ;;  %v12914_v52 = vld [vmem:[#allocation189_spill] sm:$0xff] }
 0x1e8   :  { %7671 = vmatprep.mubr.f32.mxu1 %v12909_v1  ;;  %8343 = vmatprep.mubr.f32.mxu0 %v12909_v1  ;;  %v12915_v1 = vld [vmem:[#allocation191_spill] sm:$0xff] }
 0x1eb   :  { %7672 = vmatmul.mubr.f32.gmra.mrb[90].mxu1 %v12910_v4  ;;  %8344 = vmatmul.mubr.f32.gmra.mrb[90].mxu0 %v12910_v4  ;;  %v12916_v4 = vld [vmem:[#allocation192_spill] sm:$0xff] }
 0x1ec   :  { %7674 = vmatprep.mubr.f32.mxu1 %v12911_v9  ;;  %8346 = vmatprep.mubr.f32.mxu0 %v12911_v9  ;;  %v12917_v9 = vld [vmem:[#allocation194_spill] sm:$0xff] }
 0x1ef   :  { %7675 = vmatmul.mubr.f32.gmra.mrb[92].mxu1 %v12912_v12  ;;  %8347 = vmatmul.mubr.f32.gmra.mrb[92].mxu0 %v12912_v12  ;;  %v12918_v12 = vld [vmem:[#allocation197_spill] sm:$0xff] }
 0x1f0   :  { %7677 = vmatprep.mubr.f32.mxu1 %v12913_v46  ;;  %8349 = vmatprep.mubr.f32.mxu0 %v12913_v46  ;;  %v12919_v46 = vld [vmem:[#allocation199_spill] sm:$0xff] }
 0x1f3   :  { %7678 = vmatmul.mubr.f32.gmra.mrb[94].mxu1 %v12914_v52  ;;  %8350 = vmatmul.mubr.f32.gmra.mrb[94].mxu0 %v12914_v52  ;;  %v12920_v52 = vld [vmem:[#allocation201_spill] sm:$0xff] }
 0x1f4   :  { %7680 = vmatprep.mubr.f32.mxu1 %v12915_v1  ;;  %8352 = vmatprep.mubr.f32.mxu0 %v12915_v1  ;;  %v12921_v1 = vld [vmem:[#allocation203_spill] sm:$0xff] }
 0x1f7   :  { %7681 = vmatmul.mubr.f32.gmra.mrb[96].mxu1 %v12916_v4  ;;  %8353 = vmatmul.mubr.f32.gmra.mrb[96].mxu0 %v12916_v4  ;;  %v12922_v4 = vld [vmem:[#allocation205_spill] sm:$0xff] }
 0x1f8   :  { %7683 = vmatprep.mubr.f32.mxu1 %v12917_v9  ;;  %8355 = vmatprep.mubr.f32.mxu0 %v12917_v9  ;;  %v12923_v9 = vld [vmem:[#allocation207_spill] sm:$0xff] }
 0x1fb   :  { %7684 = vmatmul.mubr.f32.gmra.mrb[98].mxu1 %v12918_v12  ;;  %8356 = vmatmul.mubr.f32.gmra.mrb[98].mxu0 %v12918_v12  ;;  %v12924_v12 = vld [vmem:[#allocation209_spill] sm:$0xff] }
 0x1fc   :  { %7686 = vmatprep.mubr.f32.mxu1 %v12919_v46  ;;  %8358 = vmatprep.mubr.f32.mxu0 %v12919_v46  ;;  %v12925_v46 = vld [vmem:[#allocation211_spill] sm:$0xff] }
 0x1ff   :  { %7687 = vmatmul.mubr.f32.gmra.mrb[100].mxu1 %v12920_v52  ;;  %8359 = vmatmul.mubr.f32.gmra.mrb[100].mxu0 %v12920_v52  ;;  %v12926_v52 = vld [vmem:[#allocation212_spill] sm:$0xff] }
 0x200   :  { %7689 = vmatprep.mubr.f32.mxu1 %v12921_v1  ;;  %8361 = vmatprep.mubr.f32.mxu0 %v12921_v1  ;;  %v12927_v1 = vld [vmem:[#allocation214_spill] sm:$0xff] }
 0x203   :  { %7690 = vmatmul.mubr.f32.gmra.mrb[102].mxu1 %v12922_v4  ;;  %8362 = vmatmul.mubr.f32.gmra.mrb[102].mxu0 %v12922_v4  ;;  %v12928_v4 = vld [vmem:[#allocation217_spill] sm:$0xff] }
 0x204   :  { %7692 = vmatprep.mubr.f32.mxu1 %v12923_v9  ;;  %8364 = vmatprep.mubr.f32.mxu0 %v12923_v9  ;;  %v12929_v9 = vld [vmem:[#allocation219_spill] sm:$0xff] }
 0x207   :  { %7693 = vmatmul.mubr.f32.gmra.mrb[104].mxu1 %v12924_v12  ;;  %8365 = vmatmul.mubr.f32.gmra.mrb[104].mxu0 %v12924_v12  ;;  %v12930_v12 = vld [vmem:[#allocation221_spill] sm:$0xff] }
 0x208   :  { %7695 = vmatprep.mubr.f32.mxu1 %v12925_v46  ;;  %8367 = vmatprep.mubr.f32.mxu0 %v12925_v46  ;;  %v12931_v46 = vld [vmem:[#allocation223_spill] sm:$0xff] }
 0x20b   :  { %7696 = vmatmul.mubr.f32.gmra.mrb[106].mxu1 %v12926_v52  ;;  %8368 = vmatmul.mubr.f32.gmra.mrb[106].mxu0 %v12926_v52  ;;  %v12932_v52 = vld [vmem:[#allocation225_spill] sm:$0xff] }
 0x20c   :  { %7698 = vmatprep.mubr.f32.mxu1 %v12927_v1  ;;  %8370 = vmatprep.mubr.f32.mxu0 %v12927_v1  ;;  %v12933_v1 = vld [vmem:[#allocation227_spill] sm:$0xff] }
 0x20f   :  { %7699 = vmatmul.mubr.f32.gmra.mrb[108].mxu1 %v12928_v4  ;;  %8371 = vmatmul.mubr.f32.gmra.mrb[108].mxu0 %v12928_v4  ;;  %v12934_v4 = vld [vmem:[#allocation229_spill] sm:$0xff] }
 0x210   :  { %7701 = vmatprep.mubr.f32.mxu1 %v12929_v9  ;;  %8373 = vmatprep.mubr.f32.mxu0 %v12929_v9  ;;  %v12935_v9 = vld [vmem:[#allocation231_spill] sm:$0xff] }
 0x213   :  { %7702 = vmatmul.mubr.f32.gmra.mrb[110].mxu1 %v12930_v12  ;;  %8374 = vmatmul.mubr.f32.gmra.mrb[110].mxu0 %v12930_v12  ;;  %v12936_v12 = vld [vmem:[#allocation232_spill] sm:$0xff] }
 0x214   :  { %7704 = vmatprep.mubr.f32.mxu1 %v12931_v46  ;;  %8376 = vmatprep.mubr.f32.mxu0 %v12931_v46  ;;  %v12937_v46 = vld [vmem:[#allocation234_spill] sm:$0xff] }
 0x217   :  { %7705 = vmatmul.mubr.f32.gmra.mrb[112].mxu1 %v12932_v52  ;;  %8377 = vmatmul.mubr.f32.gmra.mrb[112].mxu0 %v12932_v52 }
 0x218   :  { %7707 = vmatprep.mubr.f32.mxu1 %v12933_v1  ;;  %8379 = vmatprep.mubr.f32.mxu0 %v12933_v1  ;;  %v12938_v1 = vld [vmem:[#allocation238_spill] sm:$0xff] }
 0x21b   :  { %7708 = vmatmul.mubr.f32.gmra.mrb[114].mxu1 %v12934_v4  ;;  %8380 = vmatmul.mubr.f32.gmra.mrb[114].mxu0 %v12934_v4  ;;  %v12939_v4 = vld [vmem:[#allocation240_spill] sm:$0xff] }
 0x21c   :  { %7710 = vmatprep.mubr.f32.mxu1 %v12935_v9  ;;  %8382 = vmatprep.mubr.f32.mxu0 %v12935_v9 }
 0x21f   :  { %7711 = vmatmul.mubr.f32.gmra.mrb[116].mxu1 %v12936_v12  ;;  %8383 = vmatmul.mubr.f32.gmra.mrb[116].mxu0 %v12936_v12 }
 0x220   :  { %7713 = vmatprep.mubr.f32.mxu1 %v12937_v46  ;;  %8385 = vmatprep.mubr.f32.mxu0 %v12937_v46  ;;  %v12940_v46 = vld [vmem:[#allocation246_spill] sm:$0xff] }
 0x223   :  { %7714 = vmatmul.mubr.f32.gmra.mrb[118].mxu1 %v10829_v35  ;;  %8386 = vmatmul.mubr.f32.gmra.mrb[118].mxu0 %v10829_v35 }
 0x224   :  { %7716 = vmatprep.mubr.f32.mxu1 %v12938_v1  ;;  %8388 = vmatprep.mubr.f32.mxu0 %v12938_v1 }
 0x227   :  { %7717 = vmatmul.mubr.f32.gmra.mrb[120].mxu1 %v12939_v4  ;;  %8389 = vmatmul.mubr.f32.gmra.mrb[120].mxu0 %v12939_v4 }
 0x228   :  { %7719 = vmatprep.mubr.f32.mxu1 %v10852_v56  ;;  %8391 = vmatprep.mubr.f32.mxu0 %v10852_v56  ;;  %v12941_v56 = vld [vmem:[#allocation5_spill] sm:$0xff] }
 0x22b   :  { %7720 = vmatmul.mubr.f32.gmra.mrb[122].mxu1 %v10860_v40  ;;  %8392 = vmatmul.mubr.f32.gmra.mrb[122].mxu0 %v10860_v40  ;;  %v12942_v40 = vld [vmem:[#allocation8_spill] sm:$0xff] }
 0x22c   :  { %7722 = vmatprep.mubr.f32.mxu1 %v12940_v46  ;;  %8394 = vmatprep.mubr.f32.mxu0 %v12940_v46  ;;  %v12943_v46 = vld [vmem:[#allocation9_spill] sm:$0xff] }
 0x22f   :  { %7723 = vmatmul.mubr.f32.gmra.mrb[124].mxu1 %v10873_v49  ;;  %8395 = vmatmul.mubr.f32.gmra.mrb[124].mxu0 %v10873_v49  ;;  %v12944_v49 = vld [vmem:[#allocation11_spill] sm:$0xff] }
 0x230   :  { %7725 = vmatprep.mubr.f32.mxu1 %v10880_v31  ;;  %8397 = vmatprep.mubr.f32.mxu0 %v10880_v31  ;;  %v12945_v31 = vld [vmem:[#allocation12_spill] sm:$0xff] }
 0x233   :  { %7726 = vmatmul.mubr.f32.gmra.mrb[126].mxu1 %v10887_v45  ;;  %8398 = vmatmul.mubr.f32.gmra.mrb[126].mxu0 %v10887_v45  ;;  %v12946_v45 = vld [vmem:[#allocation14_spill] sm:$0xff] }
 0x234   :  { %7760 = vmatprep.mubr.f32.mxu1 %v12941_v56  ;;  %8432 = vmatprep.mubr.f32.mxu0 %v9703_v17  ;;  %v12947_v17 = vld [vmem:[#allocation16_spill] sm:$0xff]  ;;  %v12955_v56 = vld [vmem:[#allocation31_spill] sm:$0xff] }
 0x237   :  { %7761 = vmatmul.mubr.f32.vlgmr.msra.gmra.mrb[0].mxu1 %v12942_v40  ;;  %8433 = vmatmul.mubr.f32.vlgmr.msra.gmra.mrb[0].mxu0 %v9774_v39  ;;  %v12948_v39 = vld [vmem:[#allocation18_spill] sm:$0xff] }
 0x238   :  { %7763 = vmatprep.mubr.f32.mxu1 %v12943_v46  ;;  %8435 = vmatprep.mubr.f32.mxu0 %v9780_v42  ;;  %v12949_v42 = vld [vmem:[#allocation19_spill] sm:$0xff]  ;;  %v12954_v46 = vld [vmem:[#allocation28_spill] sm:$0xff]  ;;  %v12959_v40 = vld [vmem:[#allocation38_spill] sm:$0xff] }
 0x23b   :  { %7764 = vmatmul.mubr.f32.gmra.mrb[2].mxu1 %v12944_v49  ;;  %8436 = vmatmul.mubr.f32.gmra.mrb[2].mxu0 %v9809_v53  ;;  %v12950_v53 = vld [vmem:[#allocation21_spill] sm:$0xff]  ;;  %v12960_v49 = vld [vmem:[#allocation39_spill] sm:$0xff] }
 0x23c   :  { %7766 = vmatprep.mubr.f32.mxu1 %v12945_v31  ;;  %8438 = vmatprep.mubr.f32.mxu0 %v9811_v54  ;;  %v12951_v54 = vld [vmem:[#allocation23_spill] sm:$0xff]  ;;  %v12958_v31 = vld [vmem:[#allocation36_spill] sm:$0xff] }
 0x23f   :  { %7767 = vmatmul.mubr.f32.gmra.mrb[4].mxu1 %v12946_v45  ;;  %8439 = vmatmul.mubr.f32.gmra.mrb[4].mxu0 %v9837_v3  ;;  %v12952_v3 = vld [vmem:[#allocation25_spill] sm:$0xff] }
 0x240   :  { %7769 = vmatprep.mubr.f32.mxu1 %v12947_v17  ;;  %8441 = vmatprep.mubr.f32.mxu0 %v9842_v16  ;;  %v12953_v16 = vld [vmem:[#allocation26_spill] sm:$0xff]  ;;  %v12961_v45 = vld [vmem:[#allocation41_spill] sm:$0xff] }
 0x241   :  { %v12997_v17 = vld [vmem:[#allocation101_spill] sm:$0xff] }
 0x243   :  { %7770 = vmatmul.mubr.f32.gmra.mrb[6].mxu1 %v12948_v39  ;;  %8442 = vmatmul.mubr.f32.gmra.mrb[6].mxu0 %v12830_v33  ;;  %v12962_v33 = vld [vmem:[#allocation43_spill] sm:$0xff]  ;;  %v12998_v39 = vld [vmem:[#allocation104_spill] sm:$0xff] }
 0x244   :  { %7772 = vmatprep.mubr.f32.mxu1 %v12949_v42  ;;  %8444 = vmatprep.mubr.f32.mxu0 %v12831_v0  ;;  %v12963_v0 = vld [vmem:[#allocation45_spill] sm:$0xff] }
 0x245   :  { %v12999_v42 = vld [vmem:[#allocation105_spill] sm:$0xff] }
 0x247   :  { %7773 = vmatmul.mubr.f32.gmra.mrb[8].mxu1 %v12950_v53  ;;  %8445 = vmatmul.mubr.f32.gmra.mrb[8].mxu0 %v9897_v51  ;;  %v12956_v51 = vld [vmem:[#allocation32_spill] sm:$0xff]  ;;  %v13000_v53 = vld [vmem:[#allocation102_spill] sm:$0xff] }
 0x248   :  { %7775 = vmatprep.mubr.f32.mxu1 %v12951_v54  ;;  %8447 = vmatprep.mubr.f32.mxu0 %v9906_v44  ;;  %v12957_v44 = vld [vmem:[#allocation33_spill] sm:$0xff]  ;;  %v13001_v54 = vld [vmem:[#allocation107_spill] sm:$0xff] }
 0x24b   :  { %7776 = vmatmul.mubr.f32.gmra.mrb[10].mxu1 %v12952_v3  ;;  %8448 = vmatmul.mubr.f32.gmra.mrb[10].mxu0 %v12834_v19  ;;  %v12964_v19 = vld [vmem:[#allocation49_spill] sm:$0xff]  ;;  %v13002_v3 = vld [vmem:[#allocation103_spill] sm:$0xff] }
 0x24c   :  { %7778 = vmatprep.mubr.f32.mxu1 %v12953_v16  ;;  %8450 = vmatprep.mubr.f32.mxu0 %v12835_v25  ;;  %v12965_v25 = vld [vmem:[#allocation50_spill] sm:$0xff]  ;;  %v13003_v16 = vld [vmem:[#allocation109_spill] sm:$0xff] }
 0x24f   :  { %7779 = vmatmul.mubr.f32.gmra.mrb[12].mxu1 %v12954_v46  ;;  %8451 = vmatmul.mubr.f32.gmra.mrb[12].mxu0 %v12837_v6  ;;  %v12966_v6 = vld [vmem:[#allocation51_spill] sm:$0xff]  ;;  %v13004_v46 = vld [vmem:[#allocation106_spill] sm:$0xff] }
 0x250   :  { %7781 = vmatprep.mubr.f32.mxu1 %v12955_v56  ;;  %8453 = vmatprep.mubr.f32.mxu0 %v12838_v7  ;;  %v12968_v7 = vld [vmem:[#allocation55_spill] sm:$0xff]  ;;  %v13005_v56 = vld [vmem:[#allocation112_spill] sm:$0xff] }
 0x253   :  { %7782 = vmatmul.mubr.f32.gmra.mrb[14].mxu1 %v12956_v51  ;;  %8454 = vmatmul.mubr.f32.gmra.mrb[14].mxu0 %v12840_v2  ;;  %v12969_v2 = vld [vmem:[#allocation58_spill] sm:$0xff]  ;;  %v13006_v51 = vld [vmem:[#allocation108_spill] sm:$0xff] }
 0x254   :  { %7784 = vmatprep.mubr.f32.mxu1 %v12957_v44  ;;  %8456 = vmatprep.mubr.f32.mxu0 %v12841_v28  ;;  %v12970_v28 = vld [vmem:[#allocation60_spill] sm:$0xff]  ;;  %v13008_v44 = vld [vmem:[#allocation110_spill] sm:$0xff] }
 0x257   :  { %7785 = vmatmul.mubr.f32.gmra.mrb[16].mxu1 %v12958_v31  ;;  %8457 = vmatmul.mubr.f32.gmra.mrb[16].mxu0 %v12842_v59  ;;  %v12971_v59 = vld [vmem:[#allocation61_spill] sm:$0xff]  ;;  %v13010_v31 = vld [vmem:[#allocation111_spill] sm:$0xff] }
 0x258   :  { %7787 = vmatprep.mubr.f32.mxu1 %v12959_v40  ;;  %8459 = vmatprep.mubr.f32.mxu0 %v12843_v48  ;;  %v12972_v48 = vld [vmem:[#allocation63_spill] sm:$0xff]  ;;  %v13011_v40 = vld [vmem:[#allocation117_spill] sm:$0xff] }
 0x25b   :  { %7788 = vmatmul.mubr.f32.gmra.mrb[18].mxu1 %v12960_v49  ;;  %8460 = vmatmul.mubr.f32.gmra.mrb[18].mxu0 %v12844_v11  ;;  %v12973_v11 = vld [vmem:[#allocation65_spill] sm:$0xff] }
 0x25c   :  { %7790 = vmatprep.mubr.f32.mxu1 %v12961_v45  ;;  %8462 = vmatprep.mubr.f32.mxu0 %v9997_v34  ;;  %v12967_v34 = vld [vmem:[#allocation52_spill] sm:$0xff]  ;;  %v13012_v49 = vld [vmem:[#allocation113_spill] sm:$0xff]  ;;  %v13013_v45 = vld [vmem:[#allocation119_spill] sm:$0xff] }
 0x25f   :  { %7791 = vmatmul.mubr.f32.gmra.mrb[20].mxu1 %v12962_v33  ;;  %8463 = vmatmul.mubr.f32.gmra.mrb[20].mxu0 %v12845_v57  ;;  %v12974_v57 = vld [vmem:[#allocation69_spill] sm:$0xff]  ;;  %v13014_v33 = vld [vmem:[#allocation115_spill] sm:$0xff] }
 0x260   :  { %7793 = vmatprep.mubr.f32.mxu1 %v12963_v0  ;;  %8465 = vmatprep.mubr.f32.mxu0 %v12846_v26  ;;  %v12975_v26 = vld [vmem:[#allocation70_spill] sm:$0xff]  ;;  %v13015_v0 = vld [vmem:[#allocation121_spill] sm:$0xff] }
 0x263   :  { %7794 = vmatmul.mubr.f32.gmra.mrb[22].mxu1 %v12964_v19  ;;  %8466 = vmatmul.mubr.f32.gmra.mrb[22].mxu0 %v12847_v36  ;;  %v12976_v36 = vld [vmem:[#allocation71_spill] sm:$0xff]  ;;  %v13016_v19 = vld [vmem:[#allocation118_spill] sm:$0xff] }
 0x264   :  { %7796 = vmatprep.mubr.f32.mxu1 %v12965_v25  ;;  %8468 = vmatprep.mubr.f32.mxu0 %v12848_v55  ;;  %v12977_v55 = vld [vmem:[#allocation72_spill] sm:$0xff]  ;;  %v13017_v25 = vld [vmem:[#allocation123_spill] sm:$0xff] }
 0x267   :  { %7797 = vmatmul.mubr.f32.gmra.mrb[24].mxu1 %v12966_v6  ;;  %8469 = vmatmul.mubr.f32.gmra.mrb[24].mxu0 %v12849_v50  ;;  %v12978_v50 = vld [vmem:[#allocation76_spill] sm:$0xff] }
 0x268   :  { %7799 = vmatprep.mubr.f32.mxu1 %v12967_v34  ;;  %8471 = vmatprep.mubr.f32.mxu0 %v12850_v37  ;;  %v12979_v37 = vld [vmem:[#allocation77_spill] sm:$0xff]  ;;  %v13018_v6 = vld [vmem:[#allocation120_spill] sm:$0xff] }
 0x269   :  { %v13019_v34 = vld [vmem:[#allocation125_spill] sm:$0xff] }
 0x26b   :  { %7800 = vmatmul.mubr.f32.gmra.mrb[26].mxu1 %v12968_v7  ;;  %8472 = vmatmul.mubr.f32.gmra.mrb[26].mxu0 %v12851_v14  ;;  %v12980_v14 = vld [vmem:[#allocation79_spill] sm:$0xff]  ;;  %v13020_v7 = vld [vmem:[#allocation122_spill] sm:$0xff] }
 0x26c   :  { %7802 = vmatprep.mubr.f32.mxu1 %v12969_v2  ;;  %8474 = vmatprep.mubr.f32.mxu0 %v12852_v15  ;;  %v12981_v15 = vld [vmem:[#allocation81_spill] sm:$0xff]  ;;  %v13021_v2 = vld [vmem:[#allocation127_spill] sm:$0xff] }
 0x26f   :  { %7803 = vmatmul.mubr.f32.gmra.mrb[28].mxu1 %v12970_v28  ;;  %8475 = vmatmul.mubr.f32.gmra.mrb[28].mxu0 %v12853_v21  ;;  %v12982_v21 = vld [vmem:[#allocation83_spill] sm:$0xff]  ;;  %v13022_v28 = vld [vmem:[#allocation124_spill] sm:$0xff] }
 0x270   :  { %7805 = vmatprep.mubr.f32.mxu1 %v12971_v59  ;;  %8477 = vmatprep.mubr.f32.mxu0 %v12854_v60  ;;  %v12983_v60 = vld [vmem:[#allocation86_spill] sm:$0xff] }
 0x271   :  { %v13023_v59 = vld [vmem:[#allocation130_spill] sm:$0xff] }
 0x273   :  { %7806 = vmatmul.mubr.f32.gmra.mrb[30].mxu1 %v12972_v48  ;;  %8478 = vmatmul.mubr.f32.gmra.mrb[30].mxu0 %v12855_v62  ;;  %v12984_v62 = vld [vmem:[#allocation87_spill] sm:$0xff]  ;;  %v13024_v48 = vld [vmem:[#allocation126_spill] sm:$0xff] }
 0x274   :  { %7808 = vmatprep.mubr.f32.mxu1 %v12973_v11  ;;  %8480 = vmatprep.mubr.f32.mxu0 %v12856_v63  ;;  %v12985_v63 = vld [vmem:[#allocation89_spill] sm:$0xff]  ;;  %v13025_v11 = vld [vmem:[#allocation132_spill] sm:$0xff] }
 0x277   :  { %7809 = vmatmul.mubr.f32.gmra.mrb[32].mxu1 %v12974_v57  ;;  %8481 = vmatmul.mubr.f32.gmra.mrb[32].mxu0 %v12857_v5  ;;  %v12986_v5 = vld [vmem:[#allocation85_spill] sm:$0xff] }
 0x278   :  { %7811 = vmatprep.mubr.f32.mxu1 %v12975_v26  ;;  %8483 = vmatprep.mubr.f32.mxu0 %v12859_v10  ;;  %v12987_v10 = vld [vmem:[#allocation93_spill] sm:$0xff]  ;;  %v13027_v26 = vld [vmem:[#allocation135_spill] sm:$0xff] }
 0x279   :  { %v13026_v57 = vld [vmem:[#allocation129_spill] sm:$0xff] }
 0x27b   :  { %7812 = vmatmul.mubr.f32.gmra.mrb[34].mxu1 %v12976_v36  ;;  %8484 = vmatmul.mubr.f32.gmra.mrb[34].mxu0 %v12860_v13  ;;  %v12988_v13 = vld [vmem:[#allocation88_spill] sm:$0xff]  ;;  %v13028_v36 = vld [vmem:[#allocation131_spill] sm:$0xff] }
 0x27c   :  { %7814 = vmatprep.mubr.f32.mxu1 %v12977_v55  ;;  %8486 = vmatprep.mubr.f32.mxu0 %v12861_v61  ;;  %v12989_v61 = vld [vmem:[#allocation94_spill] sm:$0xff] }
 0x27d   :  { %v13029_v55 = vld [vmem:[#allocation138_spill] sm:$0xff] }
 0x27f   :  { %7815 = vmatmul.mubr.f32.gmra.mrb[36].mxu1 %v12978_v50  ;;  %8487 = vmatmul.mubr.f32.gmra.mrb[36].mxu0 %v12862_v18  ;;  %v12990_v18 = vld [vmem:[#allocation90_spill] sm:$0xff]  ;;  %v13030_v50 = vld [vmem:[#allocation133_spill] sm:$0xff] }
 0x280   :  { %7817 = vmatprep.mubr.f32.mxu1 %v12979_v37  ;;  %8489 = vmatprep.mubr.f32.mxu0 %v12863_v43  ;;  %v12991_v43 = vld [vmem:[#allocation95_spill] sm:$0xff] }
 0x281   :  { %v13031_v37 = vld [vmem:[#allocation139_spill] sm:$0xff] }
 0x283   :  { %7818 = vmatmul.mubr.f32.gmra.mrb[38].mxu1 %v12980_v14  ;;  %8490 = vmatmul.mubr.f32.gmra.mrb[38].mxu0 %v12864_v30  ;;  %v12992_v30 = vld [vmem:[#allocation91_spill] sm:$0xff]  ;;  %v13032_v14 = vld [vmem:[#allocation134_spill] sm:$0xff] }
 0x284   :  { %7820 = vmatprep.mubr.f32.mxu1 %v12981_v15  ;;  %8492 = vmatprep.mubr.f32.mxu0 %v12865_v20  ;;  %v12993_v20 = vld [vmem:[#allocation96_spill] sm:$0xff] }
 0x285   :  { %v13033_v15 = vld [vmem:[#allocation140_spill] sm:$0xff] }
 0x287   :  { %7821 = vmatmul.mubr.f32.gmra.mrb[40].mxu1 %v12982_v21  ;;  %8493 = vmatmul.mubr.f32.gmra.mrb[40].mxu0 %v12866_v24  ;;  %v12994_v24 = vld [vmem:[#allocation92_spill] sm:$0xff] }
 0x288   :  { %7823 = vmatprep.mubr.f32.mxu1 %v12983_v60  ;;  %8495 = vmatprep.mubr.f32.mxu0 %v12867_v47  ;;  %v12995_v47 = vld [vmem:[#allocation99_spill] sm:$0xff]  ;;  %v13034_v21 = vld [vmem:[#allocation136_spill] sm:$0xff]  ;;  %v13035_v60 = vld [vmem:[#allocation142_spill] sm:$0xff] }
 0x28b   :  { %7824 = vmatmul.mubr.f32.gmra.mrb[42].mxu1 %v12984_v62  ;;  %8496 = vmatmul.mubr.f32.gmra.mrb[42].mxu0 %v12868_v8  ;;  %v12996_v8 = vld [vmem:[#allocation97_spill] sm:$0xff]  ;;  %v13036_v62 = vld [vmem:[#allocation144_spill] sm:$0xff] }
 0x28c   :  { %7826 = vmatprep.mubr.f32.mxu1 %v12985_v63  ;;  %8498 = vmatprep.mubr.f32.mxu0 %v12986_v5  ;;  %v13037_v63 = vld [vmem:[#allocation146_spill] sm:$0xff]  ;;  %v13038_v5 = vld [vmem:[#allocation149_spill] sm:$0xff] }
 0x28f   :  { %7827 = vmatmul.mubr.f32.gmra.mrb[44].mxu1 %v12987_v10  ;;  %8499 = vmatmul.mubr.f32.gmra.mrb[44].mxu0 %v12988_v13  ;;  %v13039_v10 = vld [vmem:[#allocation150_spill] sm:$0xff]  ;;  %v13040_v13 = vld [vmem:[#allocation152_spill] sm:$0xff] }
 0x290   :  { %7829 = vmatprep.mubr.f32.mxu1 %v12989_v61  ;;  %8501 = vmatprep.mubr.f32.mxu0 %v12990_v18  ;;  %v13042_v61 = vld [vmem:[#allocation151_spill] sm:$0xff]  ;;  %v13044_v18 = vld [vmem:[#allocation153_spill] sm:$0xff] }
 0x293   :  { %7830 = vmatmul.mubr.f32.gmra.mrb[46].mxu1 %v12991_v43  ;;  %8502 = vmatmul.mubr.f32.gmra.mrb[46].mxu0 %v12992_v30  ;;  %v13046_v43 = vld [vmem:[#allocation154_spill] sm:$0xff]  ;;  %v13048_v30 = vld [vmem:[#allocation157_spill] sm:$0xff] }
 0x294   :  { %7832 = vmatprep.mubr.f32.mxu1 %v12993_v20  ;;  %8504 = vmatprep.mubr.f32.mxu0 %v12994_v24  ;;  %v13050_v20 = vld [vmem:[#allocation159_spill] sm:$0xff]  ;;  %v13052_v24 = vld [vmem:[#allocation161_spill] sm:$0xff] }
 0x297   :  { %7833 = vmatmul.mubr.f32.gmra.mrb[48].mxu1 %v12995_v47  ;;  %8505 = vmatmul.mubr.f32.gmra.mrb[48].mxu0 %v12996_v8  ;;  %v13053_v47 = vld [vmem:[#allocation166_spill] sm:$0xff]  ;;  %v13054_v8 = vld [vmem:[#allocation163_spill] sm:$0xff] }
 0x298   :  { %7835 = vmatprep.mubr.f32.mxu1 %v12997_v17  ;;  %8507 = vmatprep.mubr.f32.mxu0 %v12875_v29  ;;  %v13007_v29 = vld [vmem:[#allocation114_spill] sm:$0xff]  ;;  %v13055_v17 = vld [vmem:[#allocation168_spill] sm:$0xff] }
 0x29b   :  { %7836 = vmatmul.mubr.f32.gmra.mrb[50].mxu1 %v12998_v39  ;;  %8508 = vmatmul.mubr.f32.gmra.mrb[50].mxu0 %v12876_v41  ;;  %v13009_v41 = vld [vmem:[#allocation116_spill] sm:$0xff]  ;;  %v13056_v39 = vld [vmem:[#allocation165_spill] sm:$0xff] }
 0x29c   :  { %7838 = vmatprep.mubr.f32.mxu1 %v12999_v42  ;;  %8510 = vmatprep.mubr.f32.mxu0 %v13000_v53  ;;  %v13057_v42 = vld [vmem:[#allocation170_spill] sm:$0xff]  ;;  %v13058_v53 = vld [vmem:[#allocation167_spill] sm:$0xff] }
 0x29f   :  { %7839 = vmatmul.mubr.f32.gmra.mrb[52].mxu1 %v13001_v54  ;;  %8511 = vmatmul.mubr.f32.gmra.mrb[52].mxu0 %v13002_v3  ;;  %v13059_v54 = vld [vmem:[#allocation173_spill] sm:$0xff] }
 0x2a0   :  { %7841 = vmatprep.mubr.f32.mxu1 %v13003_v16  ;;  %8513 = vmatprep.mubr.f32.mxu0 %v13004_v46  ;;  %v13060_v3 = vld [vmem:[#allocation169_spill] sm:$0xff]  ;;  %v13061_v16 = vld [vmem:[#allocation175_spill] sm:$0xff] }
 0x2a1   :  { %v13062_v46 = vld [vmem:[#allocation171_spill] sm:$0xff] }
 0x2a3   :  { %7842 = vmatmul.mubr.f32.gmra.mrb[54].mxu1 %v13005_v56  ;;  %8514 = vmatmul.mubr.f32.gmra.mrb[54].mxu0 %v13006_v51  ;;  %v13063_v56 = vld [vmem:[#allocation176_spill] sm:$0xff] }
 0x2a4   :  { %7844 = vmatprep.mubr.f32.mxu1 %v13007_v29  ;;  %8516 = vmatprep.mubr.f32.mxu0 %v13008_v44  ;;  %v13064_v51 = vld [vmem:[#allocation172_spill] sm:$0xff]  ;;  %v13065_v29 = vld [vmem:[#allocation178_spill] sm:$0xff] }
 0x2a5   :  { %v13066_v44 = vld [vmem:[#allocation174_spill] sm:$0xff] }
 0x2a7   :  { %7845 = vmatmul.mubr.f32.gmra.mrb[56].mxu1 %v13009_v41  ;;  %8517 = vmatmul.mubr.f32.gmra.mrb[56].mxu0 %v13010_v31  ;;  %v13067_v41 = vld [vmem:[#allocation180_spill] sm:$0xff]  ;;  %v13068_v31 = vld [vmem:[#allocation177_spill] sm:$0xff] }
 0x2a8   :  { %7847 = vmatprep.mubr.f32.mxu1 %v13011_v40  ;;  %8519 = vmatprep.mubr.f32.mxu0 %v13012_v49  ;;  %v13069_v40 = vld [vmem:[#allocation182_spill] sm:$0xff]  ;;  %v13070_v49 = vld [vmem:[#allocation179_spill] sm:$0xff] }
 0x2ab   :  { %7848 = vmatmul.mubr.f32.gmra.mrb[58].mxu1 %v13013_v45  ;;  %8520 = vmatmul.mubr.f32.gmra.mrb[58].mxu0 %v13014_v33  ;;  %v13071_v45 = vld [vmem:[#allocation184_spill] sm:$0xff]  ;;  %v13072_v33 = vld [vmem:[#allocation181_spill] sm:$0xff] }
 0x2ac   :  { %7850 = vmatprep.mubr.f32.mxu1 %v13015_v0  ;;  %8522 = vmatprep.mubr.f32.mxu0 %v13016_v19  ;;  %v13073_v0 = vld [vmem:[#allocation186_spill] sm:$0xff]  ;;  %v13074_v19 = vld [vmem:[#allocation183_spill] sm:$0xff] }
 0x2af   :  { %7851 = vmatmul.mubr.f32.gmra.mrb[60].mxu1 %v13017_v25  ;;  %8523 = vmatmul.mubr.f32.gmra.mrb[60].mxu0 %v13018_v6  ;;  %v13075_v25 = vld [vmem:[#allocation188_spill] sm:$0xff]  ;;  %v13076_v6 = vld [vmem:[#allocation185_spill] sm:$0xff] }
 0x2b0   :  { %7853 = vmatprep.mubr.f32.mxu1 %v13019_v34  ;;  %8525 = vmatprep.mubr.f32.mxu0 %v13020_v7  ;;  %v13077_v34 = vld [vmem:[#allocation190_spill] sm:$0xff]  ;;  %v13078_v7 = vld [vmem:[#allocation187_spill] sm:$0xff] }
 0x2b3   :  { %7854 = vmatmul.mubr.f32.gmra.mrb[62].mxu1 %v13021_v2  ;;  %8526 = vmatmul.mubr.f32.gmra.mrb[62].mxu0 %v13022_v28  ;;  %v13079_v2 = vld [vmem:[#allocation193_spill] sm:$0xff] }
 0x2b4   :  { %7856 = vmatprep.mubr.f32.mxu1 %v13023_v59  ;;  %8528 = vmatprep.mubr.f32.mxu0 %v13024_v48  ;;  %v13080_v28 = vld [vmem:[#allocation189_spill] sm:$0xff]  ;;  %v13081_v59 = vld [vmem:[#allocation195_spill] sm:$0xff] }
 0x2b5   :  { %v13082_v48 = vld [vmem:[#allocation191_spill] sm:$0xff] }
 0x2b7   :  { %7857 = vmatmul.mubr.f32.gmra.mrb[64].mxu1 %v13025_v11  ;;  %8529 = vmatmul.mubr.f32.gmra.mrb[64].mxu0 %v13026_v57  ;;  %v13083_v11 = vld [vmem:[#allocation196_spill] sm:$0xff] }
 0x2b8   :  { %7859 = vmatprep.mubr.f32.mxu1 %v13027_v26  ;;  %8531 = vmatprep.mubr.f32.mxu0 %v13028_v36  ;;  %v13084_v57 = vld [vmem:[#allocation192_spill] sm:$0xff]  ;;  %v13085_v26 = vld [vmem:[#allocation198_spill] sm:$0xff] }
 0x2b9   :  { %v13086_v36 = vld [vmem:[#allocation194_spill] sm:$0xff] }
 0x2bb   :  { %7860 = vmatmul.mubr.f32.gmra.mrb[66].mxu1 %v13029_v55  ;;  %8532 = vmatmul.mubr.f32.gmra.mrb[66].mxu0 %v13030_v50  ;;  %v13087_v55 = vld [vmem:[#allocation200_spill] sm:$0xff]  ;;  %v13088_v50 = vld [vmem:[#allocation197_spill] sm:$0xff] }
 0x2bc   :  { %7862 = vmatprep.mubr.f32.mxu1 %v13031_v37  ;;  %8534 = vmatprep.mubr.f32.mxu0 %v13032_v14  ;;  %v13089_v37 = vld [vmem:[#allocation202_spill] sm:$0xff]  ;;  %v13090_v14 = vld [vmem:[#allocation199_spill] sm:$0xff] }
 0x2bf   :  { %7863 = vmatmul.mubr.f32.gmra.mrb[68].mxu1 %v13033_v15  ;;  %8535 = vmatmul.mubr.f32.gmra.mrb[68].mxu0 %v13034_v21  ;;  %v13091_v15 = vld [vmem:[#allocation204_spill] sm:$0xff]  ;;  %v13092_v21 = vld [vmem:[#allocation201_spill] sm:$0xff] }
 0x2c0   :  { %7865 = vmatprep.mubr.f32.mxu1 %v13035_v60  ;;  %8537 = vmatprep.mubr.f32.mxu0 %v12895_v38  ;;  %v13041_v38 = vld [vmem:[#allocation155_spill] sm:$0xff]  ;;  %v13093_v60 = vld [vmem:[#allocation206_spill] sm:$0xff] }
 0x2c3   :  { %7866 = vmatmul.mubr.f32.gmra.mrb[70].mxu1 %v13036_v62  ;;  %8538 = vmatmul.mubr.f32.gmra.mrb[70].mxu0 %v12896_v58  ;;  %v13043_v58 = vld [vmem:[#allocation156_spill] sm:$0xff]  ;;  %v13094_v62 = vld [vmem:[#allocation203_spill] sm:$0xff] }
 0x2c4   :  { %7868 = vmatprep.mubr.f32.mxu1 %v13037_v63  ;;  %8540 = vmatprep.mubr.f32.mxu0 %v12897_v27  ;;  %v13045_v27 = vld [vmem:[#allocation158_spill] sm:$0xff]  ;;  %v13095_v63 = vld [vmem:[#allocation208_spill] sm:$0xff] }
 0x2c7   :  { %7869 = vmatmul.mubr.f32.gmra.mrb[72].mxu1 %v13038_v5  ;;  %8541 = vmatmul.mubr.f32.gmra.mrb[72].mxu0 %v12898_v32  ;;  %v13047_v32 = vld [vmem:[#allocation160_spill] sm:$0xff]  ;;  %v13096_v5 = vld [vmem:[#allocation205_spill] sm:$0xff] }
 0x2c8   :  { %7871 = vmatprep.mubr.f32.mxu1 %v13039_v10  ;;  %8543 = vmatprep.mubr.f32.mxu0 %v12899_v22  ;;  %v13049_v22 = vld [vmem:[#allocation162_spill] sm:$0xff] }
 0x2c9   :  { %v13097_v10 = vld [vmem:[#allocation210_spill] sm:$0xff] }
 0x2cb   :  { %7872 = vmatmul.mubr.f32.gmra.mrb[74].mxu1 %v13040_v13  ;;  %8544 = vmatmul.mubr.f32.gmra.mrb[74].mxu0 %v12900_v23  ;;  %v13051_v23 = vld [vmem:[#allocation164_spill] sm:$0xff]  ;;  %v13098_v13 = vld [vmem:[#allocation207_spill] sm:$0xff] }
 0x2cc   :  { %7874 = vmatprep.mubr.f32.mxu1 %v13041_v38  ;;  %8546 = vmatprep.mubr.f32.mxu0 %v13042_v61  ;;  %v13099_v38 = vld [vmem:[#allocation213_spill] sm:$0xff] }
 0x2cd   :  { %v13100_v61 = vld [vmem:[#allocation209_spill] sm:$0xff] }
 0x2cf   :  { %7875 = vmatmul.mubr.f32.gmra.mrb[76].mxu1 %v13043_v58  ;;  %8547 = vmatmul.mubr.f32.gmra.mrb[76].mxu0 %v13044_v18  ;;  %v11406_v58 = vld [vmem:[%s12099_s2] ss:$0 sm:$0xff]  ;;  %v13101_v18 = vld [vmem:[#allocation215_spill] sm:$0xff] }
 0x2d0   :  { %7877 = vmatprep.mubr.f32.mxu1 %v13045_v27  ;;  %8549 = vmatprep.mubr.f32.mxu0 %v13046_v43  ;;  %v13102_v27 = vld [vmem:[#allocation211_spill] sm:$0xff] }
 0x2d3   :  { %7878 = vmatmul.mubr.f32.gmra.mrb[78].mxu1 %v13047_v32  ;;  %8550 = vmatmul.mubr.f32.gmra.mrb[78].mxu0 %v13048_v30 }
 0x2d4   :  { %7880 = vmatprep.mubr.f32.mxu1 %v13049_v22  ;;  %8552 = vmatprep.mubr.f32.mxu0 %v13050_v20  ;;  %v13103_v20 = vld [vmem:[#allocation216_spill] sm:$0xff] }
 0x2d7   :  { %7881 = vmatmul.mubr.f32.gmra.mrb[80].mxu1 %v13051_v23  ;;  %8553 = vmatmul.mubr.f32.gmra.mrb[80].mxu0 %v13052_v24  ;;  %v13104_v24 = vld [vmem:[#allocation212_spill] sm:$0xff] }
 0x2d8   :  { %7883 = vmatprep.mubr.f32.mxu1 %v13053_v47  ;;  %8555 = vmatprep.mubr.f32.mxu0 %v13054_v8  ;;  %v13105_v8 = vld [vmem:[#allocation218_spill] sm:$0xff] }
 0x2db   :  { %7884 = vmatmul.mubr.f32.gmra.mrb[82].mxu1 %v13055_v17  ;;  %8556 = vmatmul.mubr.f32.gmra.mrb[82].mxu0 %v13056_v39  ;;  %v13106_v17 = vld [vmem:[#allocation214_spill] sm:$0xff] }
 0x2dc   :  { %7886 = vmatprep.mubr.f32.mxu1 %v13057_v42  ;;  %8558 = vmatprep.mubr.f32.mxu0 %v13058_v53 }
 0x2df   :  { %7887 = vmatmul.mubr.f32.gmra.mrb[84].mxu1 %v13059_v54  ;;  %8559 = vmatmul.mubr.f32.gmra.mrb[84].mxu0 %v13060_v3 }
 0x2e0   :  { %7889 = vmatprep.mubr.f32.mxu1 %v13061_v16  ;;  %8561 = vmatprep.mubr.f32.mxu0 %v13062_v46  ;;  %v13107_v46 = vld [vmem:[#allocation220_spill] sm:$0xff] }
 0x2e3   :  { %7890 = vmatmul.mubr.f32.gmra.mrb[86].mxu1 %v13063_v56  ;;  %8562 = vmatmul.mubr.f32.gmra.mrb[86].mxu0 %v13064_v51  ;;  %v13108_v51 = vld [vmem:[#allocation217_spill] sm:$0xff] }
 0x2e4   :  { %7892 = vmatprep.mubr.f32.mxu1 %v13065_v29  ;;  %8564 = vmatprep.mubr.f32.mxu0 %v13066_v44  ;;  %v13109_v44 = vld [vmem:[#allocation222_spill] sm:$0xff] }
 0x2e7   :  { %7893 = vmatmul.mubr.f32.gmra.mrb[88].mxu1 %v13067_v41  ;;  %8565 = vmatmul.mubr.f32.gmra.mrb[88].mxu0 %v13068_v31  ;;  %v13110_v41 = vld [vmem:[#allocation219_spill] sm:$0xff] }
 0x2e8   :  { %7895 = vmatprep.mubr.f32.mxu1 %v13069_v40  ;;  %8567 = vmatprep.mubr.f32.mxu0 %v13070_v49 }
 0x2eb   :  { %7896 = vmatmul.mubr.f32.gmra.mrb[90].mxu1 %v13071_v45  ;;  %8568 = vmatmul.mubr.f32.gmra.mrb[90].mxu0 %v13072_v33 }
 0x2ec   :  { %7898 = vmatprep.mubr.f32.mxu1 %v13073_v0  ;;  %8570 = vmatprep.mubr.f32.mxu0 %v13074_v19  ;;  %v13111_v19 = vld [vmem:[#allocation224_spill] sm:$0xff] }
 0x2ef   :  { %7899 = vmatmul.mubr.f32.gmra.mrb[92].mxu1 %v13075_v25  ;;  %8571 = vmatmul.mubr.f32.gmra.mrb[92].mxu0 %v13076_v6  ;;  %v13112_v6 = vld [vmem:[#allocation221_spill] sm:$0xff] }
 0x2f0   :  { %7901 = vmatprep.mubr.f32.mxu1 %v13077_v34  ;;  %8573 = vmatprep.mubr.f32.mxu0 %v13078_v7  ;;  %v13113_v7 = vld [vmem:[#allocation226_spill] sm:$0xff] }
 0x2f3   :  { %7902 = vmatmul.mubr.f32.gmra.mrb[94].mxu1 %v13079_v2  ;;  %8574 = vmatmul.mubr.f32.gmra.mrb[94].mxu0 %v13080_v28  ;;  %v13114_v2 = vld [vmem:[#allocation223_spill] sm:$0xff] }
 0x2f4   :  { %7904 = vmatprep.mubr.f32.mxu1 %v13081_v59  ;;  %8576 = vmatprep.mubr.f32.mxu0 %v13082_v48 }
 0x2f7   :  { %7905 = vmatmul.mubr.f32.gmra.mrb[96].mxu1 %v13083_v11  ;;  %8577 = vmatmul.mubr.f32.gmra.mrb[96].mxu0 %v13084_v57 }
 0x2f8   :  { %7907 = vmatprep.mubr.f32.mxu1 %v13085_v26  ;;  %8579 = vmatprep.mubr.f32.mxu0 %v13086_v36  ;;  %v13115_v36 = vld [vmem:[#allocation228_spill] sm:$0xff] }
 0x2fb   :  { %7908 = vmatmul.mubr.f32.gmra.mrb[98].mxu1 %v13087_v55  ;;  %8580 = vmatmul.mubr.f32.gmra.mrb[98].mxu0 %v13088_v50 }
 0x2fc   :  { %7910 = vmatprep.mubr.f32.mxu1 %v13089_v37  ;;  %8582 = vmatprep.mubr.f32.mxu0 %v13090_v14  ;;  %v13116_v37 = vld [vmem:[#allocation230_spill] sm:$0xff]  ;;  %v13117_v14 = vld [vmem:[#allocation227_spill] sm:$0xff] }
 0x2ff   :  { %7911 = vmatmul.mubr.f32.gmra.mrb[100].mxu1 %v13091_v15  ;;  %8583 = vmatmul.mubr.f32.gmra.mrb[100].mxu0 %v13092_v21 }
 0x300   :  { %7913 = vmatprep.mubr.f32.mxu1 %v13093_v60  ;;  %8585 = vmatprep.mubr.f32.mxu0 %v13094_v62 }
 0x303   :  { %7914 = vmatmul.mubr.f32.gmra.mrb[102].mxu1 %v13095_v63  ;;  %8586 = vmatmul.mubr.f32.gmra.mrb[102].mxu0 %v13096_v5  ;;  %v13118_v5 = vld [vmem:[#allocation233_spill] sm:$0xff] }
 0x304   :  { %7916 = vmatprep.mubr.f32.mxu1 %v13097_v10  ;;  %8588 = vmatprep.mubr.f32.mxu0 %v13098_v13  ;;  %v13119_v13 = vld [vmem:[#allocation229_spill] sm:$0xff] }
 0x307   :  { %7917 = vmatmul.mubr.f32.gmra.mrb[104].mxu1 %v13099_v38  ;;  %8589 = vmatmul.mubr.f32.gmra.mrb[104].mxu0 %v13100_v61  ;;  %v13120_v61 = vld [vmem:[#allocation235_spill] sm:$0xff] }
 0x308   :  { %7919 = vmatprep.mubr.f32.mxu1 %v13101_v18  ;;  %8591 = vmatprep.mubr.f32.mxu0 %v13102_v27 }
 0x30a   :  { %v7762_v43 = vpop.f32.mrb[0].mxu1  ;;  %v8434_v32 = vpop.f32.mrb[0].mxu0 }
 0x30b   :  { %v8816_v30 = vadd.f32 %v7762_v43, %v11406_v58  ;;  %v2553_v22 = vpop.f32.mrb[1].mxu1  ;;  %7920 = vmatmul.mubr.f32.gmra.mrb[106].mxu1 %v13103_v20  ;;  %v5515_v23 = vpop.f32.mrb[1].mxu0  ;;  %8592 = vmatmul.mubr.f32.gmra.mrb[106].mxu0 %v13104_v24  ;;  %v13121_v20 = vld [vmem:[#allocation236_spill] sm:$0xff]  ;;  %v13122_v24 = vld [vmem:[#allocation237_spill] sm:$0xff] }
 0x30c   :  { %v8818_v47 = vadd.f32 %v11406_v58, %v2553_v22  ;;  %7922 = vmatprep.mubr.f32.mxu1 %v13105_v8  ;;  %8594 = vmatprep.mubr.f32.mxu0 %v13106_v17 }
 0x30d   :  { %v8817_v39 = vadd.f32 %v8816_v30, %v8434_v32 }
 0x30e   :  { %v8819_v42 = vadd.f32 %v8818_v47, %v5515_v23  ;;  %v7765_v53 = vpop.f32.mrb[2].mxu1  ;;  %v8437_v54 = vpop.f32.mrb[2].mxu0  ;;  %v13123_v47 = vld [vmem:[#allocation234_spill] sm:$0xff] }
 0x30f   :  { %6283 = vst.msk [vmem:[%s12100_s3 + $0x8] sm:$0xff] %vm6281_vm0, %v8817_v39  ;;  %v8820_v3 = vadd.f32 %v7765_v53, %v11406_v58  ;;  %v2567_v16 = vpop.f32.mrb[3].mxu1  ;;  %7923 = vmatmul.mubr.f32.gmra.mrb[108].mxu1 %v13107_v46  ;;  %v5527_v56 = vpop.f32.mrb[3].mxu0  ;;  %8595 = vmatmul.mubr.f32.gmra.mrb[108].mxu0 %v13108_v51  ;;  %v13125_v46 = vld [vmem:[#allocation241_spill] sm:$0xff] }
 0x310   :  { %6282 = vst.msk [vmem:[%s12100_s3] sm:$0xff] %vm6281_vm0, %v8819_v42  ;;  %v8822_v29 = vadd.f32 %v11406_v58, %v2567_v16  ;;  %7925 = vmatprep.mubr.f32.mxu1 %v13109_v44  ;;  %8597 = vmatprep.mubr.f32.mxu0 %v13110_v41 }
 0x311   :  { %v8821_v31 = vadd.f32 %v8820_v3, %v8437_v54  ;;  %v13124_v54 = vld [vmem:[#allocation239_spill] sm:$0xff] }
 0x312   :  { %v8823_v40 = vadd.f32 %v8822_v29, %v5527_v56  ;;  %v7768_v49 = vpop.f32.mrb[4].mxu1  ;;  %v8440_v45 = vpop.f32.mrb[4].mxu0 }
 0x313   :  { %6285 = vst.msk [vmem:[%s12100_s3 + $0x18] sm:$0xff] %vm6281_vm0, %v8821_v31  ;;  %v8824_v33 = vadd.f32 %v7768_v49, %v11406_v58  ;;  %v2581_v0 = vpop.f32.mrb[5].mxu1  ;;  %7926 = vmatmul.mubr.f32.gmra.mrb[110].mxu1 %v13111_v19  ;;  %v5539_v25 = vpop.f32.mrb[5].mxu0  ;;  %8598 = vmatmul.mubr.f32.gmra.mrb[110].mxu0 %v13112_v6  ;;  %v13126_v31 = vld [vmem:[#allocation243_spill] sm:$0xff]  ;;  %v13127_v49 = vld [vmem:[#allocation245_spill] sm:$0xff] }
 0x314   :  { %6284 = vst.msk [vmem:[%s12100_s3 + $0x10] sm:$0xff] %vm6281_vm0, %v8823_v40  ;;  %v8826_v34 = vadd.f32 %v11406_v58, %v2581_v0  ;;  %7928 = vmatprep.mubr.f32.mxu1 %v13113_v7  ;;  %8600 = vmatprep.mubr.f32.mxu0 %v13114_v2  ;;  %v13130_v2 = vld [vmem:[#allocation244_spill] sm:$0xff] }
 0x315   :  { %v8825_v28 = vadd.f32 %v8824_v33, %v8440_v45  ;;  %v13128_v45 = vld [vmem:[#allocation242_spill] sm:$0xff] }
 0x316   :  { %v8827_v59 = vadd.f32 %v8826_v34, %v5539_v25  ;;  %v7771_v48 = vpop.f32.mrb[6].mxu1  ;;  %v8443_v11 = vpop.f32.mrb[6].mxu0  ;;  %v13129_v34 = vld [vmem:[#allocation247_spill] sm:$0xff] }
 0x317   :  { %6287 = vst.msk [vmem:[%s12100_s3 + $0x28] sm:$0xff] %vm6281_vm0, %v8825_v28  ;;  %v8828_v57 = vadd.f32 %v7771_v48, %v11406_v58  ;;  %v2595_v26 = vpop.f32.mrb[7].mxu1  ;;  %7929 = vmatmul.mubr.f32.gmra.mrb[112].mxu1 %v13115_v36  ;;  %v5551_v55 = vpop.f32.mrb[7].mxu0  ;;  %8601 = vmatmul.mubr.f32.gmra.mrb[112].mxu0 %v12932_v52  ;;  %v13132_v48 = vld [vmem:[#allocation246_spill] sm:$0xff] }
 0x318   :  { %6286 = vst.msk [vmem:[%s12100_s3 + $0x20] sm:$0xff] %vm6281_vm0, %v8827_v59  ;;  %v8830_v50 = vadd.f32 %v11406_v58, %v2595_v26  ;;  %7931 = vmatprep.mubr.f32.mxu1 %v13116_v37  ;;  %8603 = vmatprep.mubr.f32.mxu0 %v13117_v14  ;;  %v13131_v59 = vld [vmem:[#allocation249_spill] sm:$0xff]  ;;  %v13133_v37 = vld [vmem:[#allocation251_spill] sm:$0xff] }
 0x319   :  { %v8829_v15 = vadd.f32 %v8828_v57, %v8443_v11 }
 0x31a   :  { %v8831_v21 = vadd.f32 %v8830_v50, %v5551_v55  ;;  %v7774_v60 = vpop.f32.mrb[8].mxu1  ;;  %v8446_v62 = vpop.f32.mrb[8].mxu0 }
 0x31b   :  { %6289 = vst.msk [vmem:[%s12100_s3 + $0x38] sm:$0xff] %vm6281_vm0, %v8829_v15  ;;  %v8832_v52 = vadd.f32 %v7774_v60, %v11406_v58  ;;  %v2609_v63 = vpop.f32.mrb[9].mxu1  ;;  %7932 = vmatmul.mubr.f32.gmra.mrb[114].mxu1 %v13118_v5  ;;  %v5563_v10 = vpop.f32.mrb[9].mxu0  ;;  %8604 = vmatmul.mubr.f32.gmra.mrb[114].mxu0 %v13119_v13  ;;  %v13134_v15 = vld [vmem:[#allocation248_spill] sm:$0xff]  ;;  %v13135_v60 = vld [vmem:[#allocation253_spill] sm:$0xff] }
 0x31c   :  { %6288 = vst.msk [vmem:[%s12100_s3 + $0x30] sm:$0xff] %vm6281_vm0, %v8831_v21  ;;  %v8834_v38 = vadd.f32 %v11406_v58, %v2609_v63  ;;  %7934 = vmatprep.mubr.f32.mxu1 %v13120_v61  ;;  %8606 = vmatprep.mubr.f32.mxu0 %v12935_v9  ;;  %v13137_v61 = vld [vmem:[#allocation254_spill] sm:$0xff] }
 0x31d   :  { %v8833_v18 = vadd.f32 %v8832_v52, %v8446_v62  ;;  %v13136_v62 = vld [vmem:[#allocation250_spill] sm:$0xff] }
 0x31e   :  { %v8835_v27 = vadd.f32 %v8834_v38, %v5563_v10  ;;  %v7777_v43 = vpop.f32.mrb[10].mxu1  ;;  %v8449_v32 = vpop.f32.mrb[10].mxu0 }
 0x31f   :  { %6291 = vst.msk [vmem:[%s12100_s3 + $0x48] sm:$0xff] %vm6281_vm0, %v8833_v18  ;;  %v8836_v30 = vadd.f32 %v7777_v43, %v11406_v58  ;;  %v2623_v22 = vpop.f32.mrb[11].mxu1  ;;  %7935 = vmatmul.mubr.f32.gmra.mrb[116].mxu1 %v13121_v20  ;;  %v5575_v23 = vpop.f32.mrb[11].mxu0  ;;  %8607 = vmatmul.mubr.f32.gmra.mrb[116].mxu0 %v12936_v12 }
 0x320   :  { %6290 = vst.msk [vmem:[%s12100_s3 + $0x40] sm:$0xff] %vm6281_vm0, %v8835_v27  ;;  %v8838_v9 = vadd.f32 %v11406_v58, %v2623_v22  ;;  %7937 = vmatprep.mubr.f32.mxu1 %v13122_v24  ;;  %8609 = vmatprep.mubr.f32.mxu0 %v13123_v47  ;;  %v13138_v27 = vld [vmem:[#allocation252_spill] sm:$0xff] }
 0x321   :  { %v8837_v8 = vadd.f32 %v8836_v30, %v8449_v32 }
 0x322   :  { %v8839_v17 = vadd.f32 %v8838_v9, %v5575_v23  ;;  %v7780_v39 = vpop.f32.mrb[12].mxu1  ;;  %v8452_v42 = vpop.f32.mrb[12].mxu0 }
 0x323   :  { %6293 = vst.msk [vmem:[%s12100_s3 + $0x58] sm:$0xff] %vm6281_vm0, %v8837_v8  ;;  %v8840_v12 = vadd.f32 %v7780_v39, %v11406_v58  ;;  %v2637_v53 = vpop.f32.mrb[13].mxu1  ;;  %7938 = vmatmul.mubr.f32.gmra.mrb[118].mxu1 %v13124_v54  ;;  %v5587_v3 = vpop.f32.mrb[13].mxu0  ;;  %8610 = vmatmul.mubr.f32.gmra.mrb[118].mxu0 %v10829_v35 }
 0x324   :  { %6292 = vst.msk [vmem:[%s12100_s3 + $0x50] sm:$0xff] %vm6281_vm0, %v8839_v17  ;;  %v8842_v16 = vadd.f32 %v11406_v58, %v2637_v53  ;;  %7940 = vmatprep.mubr.f32.mxu1 %v13125_v46  ;;  %8612 = vmatprep.mubr.f32.mxu0 %v12938_v1 }
 0x325   :  { %v8841_v56 = vadd.f32 %v8840_v12, %v8452_v42 }
 0x326   :  { %v8843_v51 = vadd.f32 %v8842_v16, %v5587_v3  ;;  %v7783_v29 = vpop.f32.mrb[14].mxu1  ;;  %v8455_v44 = vpop.f32.mrb[14].mxu0 }
 0x327   :  { %6295 = vst.msk [vmem:[%s12100_s3 + $0x68] sm:$0xff] %vm6281_vm0, %v8841_v56  ;;  %v8844_v35 = vadd.f32 %v7783_v29, %v11406_v58  ;;  %v2651_v41 = vpop.f32.mrb[15].mxu1  ;;  %7941 = vmatmul.mubr.f32.gmra.mrb[120].mxu1 %v13126_v31  ;;  %v5599_v40 = vpop.f32.mrb[15].mxu0  ;;  %8613 = vmatmul.mubr.f32.gmra.mrb[120].mxu0 %v12939_v4 }
 0x328   :  { %6294 = vst.msk [vmem:[%s12100_s3 + $0x60] sm:$0xff] %vm6281_vm0, %v8843_v51  ;;  %v8846_v1 = vadd.f32 %v11406_v58, %v2651_v41  ;;  %7943 = vmatprep.mubr.f32.mxu1 %v13127_v49  ;;  %8615 = vmatprep.mubr.f32.mxu0 %v13128_v45 }
 0x329   :  { %v8845_v33 = vadd.f32 %v8844_v35, %v8455_v44 }
 0x32a   :  { %v8847_v0 = vadd.f32 %v8846_v1, %v5599_v40  ;;  %v7786_v19 = vpop.f32.mrb[16].mxu1  ;;  %v8458_v25 = vpop.f32.mrb[16].mxu0 }
 0x32b   :  { %6297 = vst.msk [vmem:[%s12100_s3 + $0x78] sm:$0xff] %vm6281_vm0, %v8845_v33  ;;  %v8848_v4 = vadd.f32 %v7786_v19, %v11406_v58  ;;  %v2665_v6 = vpop.f32.mrb[17].mxu1  ;;  %7944 = vmatmul.mubr.f32.gmra.mrb[122].mxu1 %v13129_v34  ;;  %v5611_v7 = vpop.f32.mrb[17].mxu0  ;;  %8616 = vmatmul.mubr.f32.gmra.mrb[122].mxu0 %v13130_v2 }
 0x32c   :  { %6296 = vst.msk [vmem:[%s12100_s3 + $0x70] sm:$0xff] %vm6281_vm0, %v8847_v0  ;;  %v8850_v28 = vadd.f32 %v11406_v58, %v2665_v6  ;;  %7946 = vmatprep.mubr.f32.mxu1 %v13131_v59  ;;  %8618 = vmatprep.mubr.f32.mxu0 %v13132_v48 }
 0x32d   :  { %v8849_v11 = vadd.f32 %v8848_v4, %v8458_v25 }
 0x32e   :  { %v8851_v57 = vadd.f32 %v8850_v28, %v5611_v7  ;;  %v7789_v26 = vpop.f32.mrb[18].mxu1  ;;  %v8461_v36 = vpop.f32.mrb[18].mxu0 }
 0x32f   :  { %6299 = vst.msk [vmem:[%s12100_s3 + $0x88] sm:$0xff] %vm6281_vm0, %v8849_v11  ;;  %v8852_v55 = vadd.f32 %v7789_v26, %v11406_v58  ;;  %v2679_v50 = vpop.f32.mrb[19].mxu1  ;;  %7947 = vmatmul.mubr.f32.gmra.mrb[124].mxu1 %v13133_v37  ;;  %v5623_v14 = vpop.f32.mrb[19].mxu0  ;;  %8619 = vmatmul.mubr.f32.gmra.mrb[124].mxu0 %v13134_v15 }
 0x330   :  { %6298 = vst.msk [vmem:[%s12100_s3 + $0x80] sm:$0xff] %vm6281_vm0, %v8851_v57  ;;  %v8854_v21 = vadd.f32 %v11406_v58, %v2679_v50  ;;  %7949 = vmatprep.mubr.f32.mxu1 %v13135_v60  ;;  %8621 = vmatprep.mubr.f32.mxu0 %v13136_v62 }
 0x331   :  { %v8853_v52 = vadd.f32 %v8852_v55, %v8461_v36 }
 0x332   :  { %v8855_v63 = vadd.f32 %v8854_v21, %v5623_v14  ;;  %v7792_v5 = vpop.f32.mrb[20].mxu1  ;;  %v8464_v10 = vpop.f32.mrb[20].mxu0 }
 0x333   :  { %6301 = vst.msk [vmem:[%s12100_s3 + $0x98] sm:$0xff] %vm6281_vm0, %v8853_v52  ;;  %v8856_v13 = vadd.f32 %v7792_v5, %v11406_v58  ;;  %v2693_v38 = vpop.f32.mrb[21].mxu1  ;;  %7950 = vmatmul.mubr.f32.gmra.mrb[126].mxu1 %v13137_v61  ;;  %v5635_v18 = vpop.f32.mrb[21].mxu0  ;;  %8622 = vmatmul.mubr.f32.gmra.mrb[126].mxu0 %v13138_v27 }
 0x334   :  { %6300 = vst.msk [vmem:[%s12100_s3 + $0x90] sm:$0xff] %vm6281_vm0, %v8855_v63  ;;  %v8858_v43 = vadd.f32 %v11406_v58, %v2693_v38 }
 0x335   :  { %v8857_v32 = vadd.f32 %v8856_v13, %v8464_v10 }
 0x336   :  { %v8859_v30 = vadd.f32 %v8858_v43, %v5635_v18  ;;  %v7795_v22 = vpop.f32.mrb[22].mxu1  ;;  %v8467_v20 = vpop.f32.mrb[22].mxu0 }
 0x337   :  { %6303 = vst.msk [vmem:[%s12100_s3 + $0xa8] sm:$0xff] %vm6281_vm0, %v8857_v32  ;;  %v8860_v23 = vadd.f32 %v7795_v22, %v11406_v58  ;;  %v2707_v9 = vpop.f32.mrb[23].mxu1  ;;  %v5647_v24 = vpop.f32.mrb[23].mxu0 }
 0x338   :  { %6302 = vst.msk [vmem:[%s12100_s3 + $0xa0] sm:$0xff] %vm6281_vm0, %v8859_v30  ;;  %v8862_v47 = vadd.f32 %v11406_v58, %v2707_v9 }
 0x339   :  { %v8861_v8 = vadd.f32 %v8860_v23, %v8467_v20 }
 0x33a   :  { %v8863_v17 = vadd.f32 %v8862_v47, %v5647_v24  ;;  %v7798_v39 = vpop.f32.mrb[24].mxu1  ;;  %v8470_v42 = vpop.f32.mrb[24].mxu0 }
 0x33b   :  { %6305 = vst.msk [vmem:[%s12100_s3 + $0xb8] sm:$0xff] %vm6281_vm0, %v8861_v8  ;;  %v8864_v12 = vadd.f32 %v7798_v39, %v11406_v58  ;;  %v2721_v53 = vpop.f32.mrb[25].mxu1  ;;  %v5659_v54 = vpop.f32.mrb[25].mxu0 }
 0x33c   :  { %6304 = vst.msk [vmem:[%s12100_s3 + $0xb0] sm:$0xff] %vm6281_vm0, %v8863_v17  ;;  %v8866_v3 = vadd.f32 %v11406_v58, %v2721_v53 }
 0x33d   :  { %v8865_v16 = vadd.f32 %v8864_v12, %v8470_v42 }
 0x33e   :  { %v8867_v46 = vadd.f32 %v8866_v3, %v5659_v54  ;;  %v7801_v56 = vpop.f32.mrb[26].mxu1  ;;  %v8473_v51 = vpop.f32.mrb[26].mxu0 }
 0x33f   :  { %6307 = vst.msk [vmem:[%s12100_s3 + $0xc8] sm:$0xff] %vm6281_vm0, %v8865_v16  ;;  %v8868_v29 = vadd.f32 %v7801_v56, %v11406_v58  ;;  %v2735_v44 = vpop.f32.mrb[27].mxu1  ;;  %v5671_v35 = vpop.f32.mrb[27].mxu0 }
 0x340   :  { %6306 = vst.msk [vmem:[%s12100_s3 + $0xc0] sm:$0xff] %vm6281_vm0, %v8867_v46  ;;  %v8870_v41 = vadd.f32 %v11406_v58, %v2735_v44 }
 0x341   :  { %v8869_v31 = vadd.f32 %v8868_v29, %v8473_v51 }
 0x342   :  { %v8871_v40 = vadd.f32 %v8870_v41, %v5671_v35  ;;  %v7804_v1 = vpop.f32.mrb[28].mxu1  ;;  %v8476_v49 = vpop.f32.mrb[28].mxu0 }
 0x343   :  { %6309 = vst.msk [vmem:[%s12100_s3 + $0xd8] sm:$0xff] %vm6281_vm0, %v8869_v31  ;;  %v8872_v45 = vadd.f32 %v7804_v1, %v11406_v58  ;;  %v2749_v33 = vpop.f32.mrb[29].mxu1  ;;  %v5683_v0 = vpop.f32.mrb[29].mxu0 }
 0x344   :  { %6308 = vst.msk [vmem:[%s12100_s3 + $0xd0] sm:$0xff] %vm6281_vm0, %v8871_v40  ;;  %v8874_v19 = vadd.f32 %v11406_v58, %v2749_v33 }
 0x345   :  { %v8873_v25 = vadd.f32 %v8872_v45, %v8476_v49 }
 0x346   :  { %v8875_v4 = vadd.f32 %v8874_v19, %v5683_v0  ;;  %v7807_v6 = vpop.f32.mrb[30].mxu1  ;;  %v8479_v34 = vpop.f32.mrb[30].mxu0 }
 0x347   :  { %6311 = vst.msk [vmem:[%s12100_s3 + $0xe8] sm:$0xff] %vm6281_vm0, %v8873_v25  ;;  %v8876_v7 = vadd.f32 %v7807_v6, %v11406_v58  ;;  %v2763_v2 = vpop.f32.mrb[31].mxu1  ;;  %v5695_v28 = vpop.f32.mrb[31].mxu0 }
 0x348   :  { %6310 = vst.msk [vmem:[%s12100_s3 + $0xe0] sm:$0xff] %vm6281_vm0, %v8875_v4  ;;  %v8878_v59 = vadd.f32 %v11406_v58, %v2763_v2 }
 0x349   :  { %v8877_v48 = vadd.f32 %v8876_v7, %v8479_v34 }
 0x34a   :  { %v8879_v11 = vadd.f32 %v8878_v59, %v5695_v28  ;;  %v7810_v57 = vpop.f32.mrb[32].mxu1  ;;  %v8482_v26 = vpop.f32.mrb[32].mxu0 }
 0x34b   :  { %6313 = vst.msk [vmem:[%s12100_s3 + $0xf8] sm:$0xff] %vm6281_vm0, %v8877_v48  ;;  %v8880_v36 = vadd.f32 %v7810_v57, %v11406_v58  ;;  %v2777_v55 = vpop.f32.mrb[33].mxu1  ;;  %v5707_v50 = vpop.f32.mrb[33].mxu0 }
 0x34c   :  { %6312 = vst.msk [vmem:[%s12100_s3 + $0xf0] sm:$0xff] %vm6281_vm0, %v8879_v11  ;;  %v8882_v37 = vadd.f32 %v11406_v58, %v2777_v55 }
 0x34d   :  { %v8881_v14 = vadd.f32 %v8880_v36, %v8482_v26 }
 0x34e   :  { %v8883_v15 = vadd.f32 %v8882_v37, %v5707_v50  ;;  %v7813_v21 = vpop.f32.mrb[34].mxu1  ;;  %v8485_v60 = vpop.f32.mrb[34].mxu0 }
 0x34f   :  { %6315 = vst.msk [vmem:[%s12100_s3 + $0x108] sm:$0xff] %vm6281_vm0, %v8881_v14  ;;  %v8884_v62 = vadd.f32 %v7813_v21, %v11406_v58  ;;  %v2791_v52 = vpop.f32.mrb[35].mxu1  ;;  %v5719_v63 = vpop.f32.mrb[35].mxu0 }
 0x350   :  { %6314 = vst.msk [vmem:[%s12100_s3 + $0x100] sm:$0xff] %vm6281_vm0, %v8883_v15  ;;  %v8886_v5 = vadd.f32 %v11406_v58, %v2791_v52 }
 0x351   :  { %v8885_v10 = vadd.f32 %v8884_v62, %v8485_v60 }
 0x352   :  { %v8887_v13 = vadd.f32 %v8886_v5, %v5719_v63  ;;  %v7816_v38 = vpop.f32.mrb[36].mxu1  ;;  %v8488_v61 = vpop.f32.mrb[36].mxu0 }
 0x353   :  { %6317 = vst.msk [vmem:[%s12100_s3 + $0x118] sm:$0xff] %vm6281_vm0, %v8885_v10  ;;  %v8888_v18 = vadd.f32 %v7816_v38, %v11406_v58  ;;  %v2805_v27 = vpop.f32.mrb[37].mxu1  ;;  %v5731_v43 = vpop.f32.mrb[37].mxu0 }
 0x354   :  { %6316 = vst.msk [vmem:[%s12100_s3 + $0x110] sm:$0xff] %vm6281_vm0, %v8887_v13  ;;  %v8890_v32 = vadd.f32 %v11406_v58, %v2805_v27 }
 0x355   :  { %v8889_v30 = vadd.f32 %v8888_v18, %v8488_v61 }
 0x356   :  { %v8891_v22 = vadd.f32 %v8890_v32, %v5731_v43  ;;  %v7819_v20 = vpop.f32.mrb[38].mxu1  ;;  %v8491_v23 = vpop.f32.mrb[38].mxu0 }
 0x357   :  { %6319 = vst.msk [vmem:[%s12100_s3 + $0x128] sm:$0xff] %vm6281_vm0, %v8889_v30  ;;  %v8892_v9 = vadd.f32 %v7819_v20, %v11406_v58  ;;  %v2819_v24 = vpop.f32.mrb[39].mxu1  ;;  %v5743_v47 = vpop.f32.mrb[39].mxu0 }
 0x358   :  { %6318 = vst.msk [vmem:[%s12100_s3 + $0x120] sm:$0xff] %vm6281_vm0, %v8891_v22  ;;  %v8894_v8 = vadd.f32 %v11406_v58, %v2819_v24 }
 0x359   :  { %v8893_v17 = vadd.f32 %v8892_v9, %v8491_v23 }
 0x35a   :  { %v8895_v39 = vadd.f32 %v8894_v8, %v5743_v47  ;;  %v7822_v42 = vpop.f32.mrb[40].mxu1  ;;  %v8494_v12 = vpop.f32.mrb[40].mxu0 }
 0x35b   :  { %6321 = vst.msk [vmem:[%s12100_s3 + $0x138] sm:$0xff] %vm6281_vm0, %v8893_v17  ;;  %v8896_v53 = vadd.f32 %v7822_v42, %v11406_v58  ;;  %v2833_v54 = vpop.f32.mrb[41].mxu1  ;;  %v5755_v3 = vpop.f32.mrb[41].mxu0 }
 0x35c   :  { %6320 = vst.msk [vmem:[%s12100_s3 + $0x130] sm:$0xff] %vm6281_vm0, %v8895_v39  ;;  %v8898_v16 = vadd.f32 %v11406_v58, %v2833_v54 }
 0x35d   :  { %v8897_v46 = vadd.f32 %v8896_v53, %v8494_v12 }
 0x35e   :  { %v8899_v56 = vadd.f32 %v8898_v16, %v5755_v3  ;;  %v7825_v51 = vpop.f32.mrb[42].mxu1  ;;  %v8497_v29 = vpop.f32.mrb[42].mxu0 }
 0x35f   :  { %6323 = vst.msk [vmem:[%s12100_s3 + $0x148] sm:$0xff] %vm6281_vm0, %v8897_v46  ;;  %v8900_v44 = vadd.f32 %v7825_v51, %v11406_v58  ;;  %v2847_v35 = vpop.f32.mrb[43].mxu1  ;;  %v5767_v41 = vpop.f32.mrb[43].mxu0 }
 0x360   :  { %6322 = vst.msk [vmem:[%s12100_s3 + $0x140] sm:$0xff] %vm6281_vm0, %v8899_v56  ;;  %v8902_v31 = vadd.f32 %v11406_v58, %v2847_v35 }
 0x361   :  { %v8901_v40 = vadd.f32 %v8900_v44, %v8497_v29 }
 0x362   :  { %v8903_v1 = vadd.f32 %v8902_v31, %v5767_v41  ;;  %v7828_v49 = vpop.f32.mrb[44].mxu1  ;;  %v8500_v45 = vpop.f32.mrb[44].mxu0 }
 0x363   :  { %6325 = vst.msk [vmem:[%s12100_s3 + $0x158] sm:$0xff] %vm6281_vm0, %v8901_v40  ;;  %v8904_v33 = vadd.f32 %v7828_v49, %v11406_v58  ;;  %v2861_v0 = vpop.f32.mrb[45].mxu1  ;;  %v5779_v19 = vpop.f32.mrb[45].mxu0 }
 0x364   :  { %6324 = vst.msk [vmem:[%s12100_s3 + $0x150] sm:$0xff] %vm6281_vm0, %v8903_v1  ;;  %v8906_v25 = vadd.f32 %v11406_v58, %v2861_v0 }
 0x365   :  { %v8905_v4 = vadd.f32 %v8904_v33, %v8500_v45 }
 0x366   :  { %v8907_v6 = vadd.f32 %v8906_v25, %v5779_v19  ;;  %v7831_v34 = vpop.f32.mrb[46].mxu1  ;;  %v8503_v7 = vpop.f32.mrb[46].mxu0 }
 0x367   :  { %6327 = vst.msk [vmem:[%s12100_s3 + $0x168] sm:$0xff] %vm6281_vm0, %v8905_v4  ;;  %v8908_v2 = vadd.f32 %v7831_v34, %v11406_v58  ;;  %v2875_v28 = vpop.f32.mrb[47].mxu1  ;;  %v5791_v59 = vpop.f32.mrb[47].mxu0 }
 0x368   :  { %6326 = vst.msk [vmem:[%s12100_s3 + $0x160] sm:$0xff] %vm6281_vm0, %v8907_v6  ;;  %v8910_v48 = vadd.f32 %v11406_v58, %v2875_v28 }
 0x369   :  { %v8909_v11 = vadd.f32 %v8908_v2, %v8503_v7 }
 0x36a   :  { %v8911_v57 = vadd.f32 %v8910_v48, %v5791_v59  ;;  %v7834_v26 = vpop.f32.mrb[48].mxu1  ;;  %v8506_v36 = vpop.f32.mrb[48].mxu0 }
 0x36b   :  { %6329 = vst.msk [vmem:[%s12100_s3 + $0x178] sm:$0xff] %vm6281_vm0, %v8909_v11  ;;  %v8912_v55 = vadd.f32 %v7834_v26, %v11406_v58  ;;  %v2889_v50 = vpop.f32.mrb[49].mxu1  ;;  %v5803_v37 = vpop.f32.mrb[49].mxu0 }
 0x36c   :  { %6328 = vst.msk [vmem:[%s12100_s3 + $0x170] sm:$0xff] %vm6281_vm0, %v8911_v57  ;;  %v8914_v14 = vadd.f32 %v11406_v58, %v2889_v50 }
 0x36d   :  { %v8913_v15 = vadd.f32 %v8912_v55, %v8506_v36 }
 0x36e   :  { %v8915_v21 = vadd.f32 %v8914_v14, %v5803_v37  ;;  %v7837_v60 = vpop.f32.mrb[50].mxu1  ;;  %v8509_v62 = vpop.f32.mrb[50].mxu0 }
 0x36f   :  { %6331 = vst.msk [vmem:[%s12100_s3 + $0x188] sm:$0xff] %vm6281_vm0, %v8913_v15  ;;  %v8916_v52 = vadd.f32 %v7837_v60, %v11406_v58  ;;  %v2903_v63 = vpop.f32.mrb[51].mxu1  ;;  %v5815_v5 = vpop.f32.mrb[51].mxu0 }
 0x370   :  { %6330 = vst.msk [vmem:[%s12100_s3 + $0x180] sm:$0xff] %vm6281_vm0, %v8915_v21  ;;  %v8918_v10 = vadd.f32 %v11406_v58, %v2903_v63 }
 0x371   :  { %v8917_v13 = vadd.f32 %v8916_v52, %v8509_v62 }
 0x372   :  { %v8919_v38 = vadd.f32 %v8918_v10, %v5815_v5  ;;  %v7840_v61 = vpop.f32.mrb[52].mxu1  ;;  %v8512_v18 = vpop.f32.mrb[52].mxu0 }
 0x373   :  { %6333 = vst.msk [vmem:[%s12100_s3 + $0x198] sm:$0xff] %vm6281_vm0, %v8917_v13  ;;  %v8920_v27 = vadd.f32 %v7840_v61, %v11406_v58  ;;  %v2917_v43 = vpop.f32.mrb[53].mxu1  ;;  %v5827_v32 = vpop.f32.mrb[53].mxu0 }
 0x374   :  { %6332 = vst.msk [vmem:[%s12100_s3 + $0x190] sm:$0xff] %vm6281_vm0, %v8919_v38  ;;  %v8922_v30 = vadd.f32 %v11406_v58, %v2917_v43 }
 0x375   :  { %v8921_v22 = vadd.f32 %v8920_v27, %v8512_v18 }
 0x376   :  { %v8923_v20 = vadd.f32 %v8922_v30, %v5827_v32  ;;  %v7843_v23 = vpop.f32.mrb[54].mxu1  ;;  %v8515_v9 = vpop.f32.mrb[54].mxu0 }
 0x377   :  { %6335 = vst.msk [vmem:[%s12100_s3 + $0x1a8] sm:$0xff] %vm6281_vm0, %v8921_v22  ;;  %v8924_v24 = vadd.f32 %v7843_v23, %v11406_v58  ;;  %v2931_v47 = vpop.f32.mrb[55].mxu1  ;;  %v5839_v8 = vpop.f32.mrb[55].mxu0 }
 0x378   :  { %6334 = vst.msk [vmem:[%s12100_s3 + $0x1a0] sm:$0xff] %vm6281_vm0, %v8923_v20  ;;  %v8926_v17 = vadd.f32 %v11406_v58, %v2931_v47 }
 0x379   :  { %v8925_v39 = vadd.f32 %v8924_v24, %v8515_v9 }
 0x37a   :  { %v8927_v42 = vadd.f32 %v8926_v17, %v5839_v8  ;;  %v7846_v12 = vpop.f32.mrb[56].mxu1  ;;  %v8518_v53 = vpop.f32.mrb[56].mxu0 }
 0x37b   :  { %6337 = vst.msk [vmem:[%s12100_s3 + $0x1b8] sm:$0xff] %vm6281_vm0, %v8925_v39  ;;  %v8928_v54 = vadd.f32 %v7846_v12, %v11406_v58  ;;  %v2945_v3 = vpop.f32.mrb[57].mxu1  ;;  %v5851_v16 = vpop.f32.mrb[57].mxu0 }
 0x37c   :  { %6336 = vst.msk [vmem:[%s12100_s3 + $0x1b0] sm:$0xff] %vm6281_vm0, %v8927_v42  ;;  %v8930_v46 = vadd.f32 %v11406_v58, %v2945_v3 }
 0x37d   :  { %v8929_v56 = vadd.f32 %v8928_v54, %v8518_v53 }
 0x37e   :  { %v8931_v51 = vadd.f32 %v8930_v46, %v5851_v16  ;;  %v7849_v29 = vpop.f32.mrb[58].mxu1  ;;  %v8521_v44 = vpop.f32.mrb[58].mxu0 }
 0x37f   :  { %6339 = vst.msk [vmem:[%s12100_s3 + $0x1c8] sm:$0xff] %vm6281_vm0, %v8929_v56  ;;  %v8932_v35 = vadd.f32 %v7849_v29, %v11406_v58  ;;  %v2959_v41 = vpop.f32.mrb[59].mxu1  ;;  %v5863_v31 = vpop.f32.mrb[59].mxu0 }
 0x380   :  { %6338 = vst.msk [vmem:[%s12100_s3 + $0x1c0] sm:$0xff] %vm6281_vm0, %v8931_v51  ;;  %v8934_v40 = vadd.f32 %v11406_v58, %v2959_v41 }
 0x381   :  { %v8933_v1 = vadd.f32 %v8932_v35, %v8521_v44 }
 0x382   :  { %v8935_v49 = vadd.f32 %v8934_v40, %v5863_v31  ;;  %v7852_v45 = vpop.f32.mrb[60].mxu1  ;;  %v8524_v33 = vpop.f32.mrb[60].mxu0 }
 0x383   :  { %6341 = vst.msk [vmem:[%s12100_s3 + $0x1d8] sm:$0xff] %vm6281_vm0, %v8933_v1  ;;  %v8936_v0 = vadd.f32 %v7852_v45, %v11406_v58  ;;  %v2973_v19 = vpop.f32.mrb[61].mxu1  ;;  %v5875_v25 = vpop.f32.mrb[61].mxu0 }
 0x384   :  { %6340 = vst.msk [vmem:[%s12100_s3 + $0x1d0] sm:$0xff] %vm6281_vm0, %v8935_v49  ;;  %v8938_v4 = vadd.f32 %v11406_v58, %v2973_v19 }
 0x385   :  { %v8937_v6 = vadd.f32 %v8936_v0, %v8524_v33 }
 0x386   :  { %v8939_v34 = vadd.f32 %v8938_v4, %v5875_v25  ;;  %v7855_v7 = vpop.f32.mrb[62].mxu1  ;;  %v8527_v2 = vpop.f32.mrb[62].mxu0 }
 0x387   :  { %6343 = vst.msk [vmem:[%s12100_s3 + $0x1e8] sm:$0xff] %vm6281_vm0, %v8937_v6  ;;  %v8940_v28 = vadd.f32 %v7855_v7, %v11406_v58  ;;  %v2987_v59 = vpop.f32.mrb[63].mxu1  ;;  %v5887_v48 = vpop.f32.mrb[63].mxu0 }
 0x388   :  { %6342 = vst.msk [vmem:[%s12100_s3 + $0x1e0] sm:$0xff] %vm6281_vm0, %v8939_v34  ;;  %v8942_v11 = vadd.f32 %v11406_v58, %v2987_v59 }
 0x389   :  { %v8941_v57 = vadd.f32 %v8940_v28, %v8527_v2 }
 0x38a   :  { %v8943_v26 = vadd.f32 %v8942_v11, %v5887_v48  ;;  %v7858_v36 = vpop.f32.mrb[64].mxu1  ;;  %v8530_v55 = vpop.f32.mrb[64].mxu0 }
 0x38b   :  { %6345 = vst.msk [vmem:[%s12100_s3 + $0x1f8] sm:$0xff] %vm6281_vm0, %v8941_v57  ;;  %v8944_v50 = vadd.f32 %v7858_v36, %v11406_v58  ;;  %v3001_v37 = vpop.f32.mrb[65].mxu1  ;;  %v5899_v14 = vpop.f32.mrb[65].mxu0 }
 0x38c   :  { %6344 = vst.msk [vmem:[%s12100_s3 + $0x1f0] sm:$0xff] %vm6281_vm0, %v8943_v26  ;;  %v8946_v15 = vadd.f32 %v11406_v58, %v3001_v37 }
 0x38d   :  { %v8945_v21 = vadd.f32 %v8944_v50, %v8530_v55 }
 0x38e   :  { %v8947_v60 = vadd.f32 %v8946_v15, %v5899_v14  ;;  %v7861_v62 = vpop.f32.mrb[66].mxu1  ;;  %v8533_v52 = vpop.f32.mrb[66].mxu0 }
 0x38f   :  { %6347 = vst.msk [vmem:[%s12100_s3 + $0x208] sm:$0xff] %vm6281_vm0, %v8945_v21  ;;  %v8948_v63 = vadd.f32 %v7861_v62, %v11406_v58  ;;  %v3015_v5 = vpop.f32.mrb[67].mxu1  ;;  %v5911_v10 = vpop.f32.mrb[67].mxu0 }
 0x390   :  { %6346 = vst.msk [vmem:[%s12100_s3 + $0x200] sm:$0xff] %vm6281_vm0, %v8947_v60  ;;  %v8950_v13 = vadd.f32 %v11406_v58, %v3015_v5 }
 0x391   :  { %v8949_v38 = vadd.f32 %v8948_v63, %v8533_v52 }
 0x392   :  { %v8951_v61 = vadd.f32 %v8950_v13, %v5911_v10  ;;  %v7864_v18 = vpop.f32.mrb[68].mxu1  ;;  %v8536_v27 = vpop.f32.mrb[68].mxu0 }
 0x393   :  { %6349 = vst.msk [vmem:[%s12100_s3 + $0x218] sm:$0xff] %vm6281_vm0, %v8949_v38  ;;  %v8952_v43 = vadd.f32 %v7864_v18, %v11406_v58  ;;  %v3029_v32 = vpop.f32.mrb[69].mxu1  ;;  %v5923_v30 = vpop.f32.mrb[69].mxu0 }
 0x394   :  { %6348 = vst.msk [vmem:[%s12100_s3 + $0x210] sm:$0xff] %vm6281_vm0, %v8951_v61  ;;  %v8954_v22 = vadd.f32 %v11406_v58, %v3029_v32 }
 0x395   :  { %v8953_v20 = vadd.f32 %v8952_v43, %v8536_v27 }
 0x396   :  { %v8955_v23 = vadd.f32 %v8954_v22, %v5923_v30  ;;  %v7867_v9 = vpop.f32.mrb[70].mxu1  ;;  %v8539_v24 = vpop.f32.mrb[70].mxu0 }
 0x397   :  { %6351 = vst.msk [vmem:[%s12100_s3 + $0x228] sm:$0xff] %vm6281_vm0, %v8953_v20  ;;  %v8956_v47 = vadd.f32 %v7867_v9, %v11406_v58  ;;  %v3043_v8 = vpop.f32.mrb[71].mxu1  ;;  %v5935_v17 = vpop.f32.mrb[71].mxu0 }
 0x398   :  { %6350 = vst.msk [vmem:[%s12100_s3 + $0x220] sm:$0xff] %vm6281_vm0, %v8955_v23  ;;  %v8958_v39 = vadd.f32 %v11406_v58, %v3043_v8 }
 0x399   :  { %v8957_v42 = vadd.f32 %v8956_v47, %v8539_v24 }
 0x39a   :  { %v8959_v12 = vadd.f32 %v8958_v39, %v5935_v17  ;;  %v7870_v53 = vpop.f32.mrb[72].mxu1  ;;  %v8542_v54 = vpop.f32.mrb[72].mxu0 }
 0x39b   :  { %6353 = vst.msk [vmem:[%s12100_s3 + $0x238] sm:$0xff] %vm6281_vm0, %v8957_v42  ;;  %v8960_v3 = vadd.f32 %v7870_v53, %v11406_v58  ;;  %v3057_v16 = vpop.f32.mrb[73].mxu1  ;;  %v5947_v46 = vpop.f32.mrb[73].mxu0 }
 0x39c   :  { %6352 = vst.msk [vmem:[%s12100_s3 + $0x230] sm:$0xff] %vm6281_vm0, %v8959_v12  ;;  %v8962_v56 = vadd.f32 %v11406_v58, %v3057_v16 }
 0x39d   :  { %v8961_v51 = vadd.f32 %v8960_v3, %v8542_v54 }
 0x39e   :  { %v8963_v29 = vadd.f32 %v8962_v56, %v5947_v46  ;;  %v7873_v44 = vpop.f32.mrb[74].mxu1  ;;  %v8545_v35 = vpop.f32.mrb[74].mxu0 }
 0x39f   :  { %6355 = vst.msk [vmem:[%s12100_s3 + $0x248] sm:$0xff] %vm6281_vm0, %v8961_v51  ;;  %v8964_v41 = vadd.f32 %v7873_v44, %v11406_v58  ;;  %v3071_v31 = vpop.f32.mrb[75].mxu1  ;;  %v5959_v40 = vpop.f32.mrb[75].mxu0 }
 0x3a0   :  { %6354 = vst.msk [vmem:[%s12100_s3 + $0x240] sm:$0xff] %vm6281_vm0, %v8963_v29  ;;  %v8966_v1 = vadd.f32 %v11406_v58, %v3071_v31 }
 0x3a1   :  { %v8965_v49 = vadd.f32 %v8964_v41, %v8545_v35 }
 0x3a2   :  { %v8967_v45 = vadd.f32 %v8966_v1, %v5959_v40  ;;  %v7876_v33 = vpop.f32.mrb[76].mxu1  ;;  %v8548_v0 = vpop.f32.mrb[76].mxu0 }
 0x3a3   :  { %6357 = vst.msk [vmem:[%s12100_s3 + $0x258] sm:$0xff] %vm6281_vm0, %v8965_v49  ;;  %v8968_v19 = vadd.f32 %v7876_v33, %v11406_v58  ;;  %v3085_v25 = vpop.f32.mrb[77].mxu1  ;;  %v5971_v4 = vpop.f32.mrb[77].mxu0 }
 0x3a4   :  { %6356 = vst.msk [vmem:[%s12100_s3 + $0x250] sm:$0xff] %vm6281_vm0, %v8967_v45  ;;  %v8970_v6 = vadd.f32 %v11406_v58, %v3085_v25 }
 0x3a5   :  { %v8969_v34 = vadd.f32 %v8968_v19, %v8548_v0 }
 0x3a6   :  { %v8971_v7 = vadd.f32 %v8970_v6, %v5971_v4  ;;  %v7879_v2 = vpop.f32.mrb[78].mxu1  ;;  %v8551_v28 = vpop.f32.mrb[78].mxu0 }
 0x3a7   :  { %6359 = vst.msk [vmem:[%s12100_s3 + $0x268] sm:$0xff] %vm6281_vm0, %v8969_v34  ;;  %v8972_v59 = vadd.f32 %v7879_v2, %v11406_v58  ;;  %v3099_v48 = vpop.f32.mrb[79].mxu1  ;;  %v5983_v11 = vpop.f32.mrb[79].mxu0 }
 0x3a8   :  { %6358 = vst.msk [vmem:[%s12100_s3 + $0x260] sm:$0xff] %vm6281_vm0, %v8971_v7  ;;  %v8974_v57 = vadd.f32 %v11406_v58, %v3099_v48  ;;  %v11921_v48 = vld [vmem:[%s12099_s2] ss:$0 sm:$0xff] }
 0x3a9   :  { %v8973_v26 = vadd.f32 %v8972_v59, %v8551_v28 }
 0x3aa   :  { %v8975_v36 = vadd.f32 %v8974_v57, %v5983_v11  ;;  %v7882_v55 = vpop.f32.mrb[80].mxu1  ;;  %v8554_v50 = vpop.f32.mrb[80].mxu0 }
 0x3ab   :  { %6361 = vst.msk [vmem:[%s12100_s3 + $0x278] sm:$0xff] %vm6281_vm0, %v8973_v26  ;;  %v8976_v37 = vadd.f32 %v7882_v55, %v11406_v58  ;;  %v3113_v14 = vpop.f32.mrb[81].mxu1  ;;  %v5995_v15 = vpop.f32.mrb[81].mxu0 }
 0x3ac   :  { %6360 = vst.msk [vmem:[%s12100_s3 + $0x270] sm:$0xff] %vm6281_vm0, %v8975_v36  ;;  %v8978_v21 = vadd.f32 %v11406_v58, %v3113_v14 }
 0x3ad   :  { %v8977_v60 = vadd.f32 %v8976_v37, %v8554_v50 }
 0x3ae   :  { %v8979_v62 = vadd.f32 %v8978_v21, %v5995_v15  ;;  %v7885_v52 = vpop.f32.mrb[82].mxu1  ;;  %v8557_v63 = vpop.f32.mrb[82].mxu0 }
 0x3af   :  { %6363 = vst.msk [vmem:[%s12100_s3 + $0x288] sm:$0xff] %vm6281_vm0, %v8977_v60  ;;  %v8980_v5 = vadd.f32 %v7885_v52, %v11406_v58  ;;  %v3127_v10 = vpop.f32.mrb[83].mxu1  ;;  %v6007_v13 = vpop.f32.mrb[83].mxu0 }
 0x3b0   :  { %6362 = vst.msk [vmem:[%s12100_s3 + $0x280] sm:$0xff] %vm6281_vm0, %v8979_v62  ;;  %v8982_v38 = vadd.f32 %v11406_v58, %v3127_v10 }
 0x3b1   :  { %v8981_v61 = vadd.f32 %v8980_v5, %v8557_v63 }
 0x3b2   :  { %v8983_v18 = vadd.f32 %v8982_v38, %v6007_v13  ;;  %v7888_v27 = vpop.f32.mrb[84].mxu1  ;;  %v8560_v43 = vpop.f32.mrb[84].mxu0 }
 0x3b3   :  { %6365 = vst.msk [vmem:[%s12100_s3 + $0x298] sm:$0xff] %vm6281_vm0, %v8981_v61  ;;  %v8984_v32 = vadd.f32 %v7888_v27, %v11406_v58  ;;  %v3141_v30 = vpop.f32.mrb[85].mxu1  ;;  %v6019_v22 = vpop.f32.mrb[85].mxu0 }
 0x3b4   :  { %6364 = vst.msk [vmem:[%s12100_s3 + $0x290] sm:$0xff] %vm6281_vm0, %v8983_v18  ;;  %v8986_v20 = vadd.f32 %v11406_v58, %v3141_v30 }
 0x3b5   :  { %v8985_v23 = vadd.f32 %v8984_v32, %v8560_v43 }
 0x3b6   :  { %v8987_v9 = vadd.f32 %v8986_v20, %v6019_v22  ;;  %v7891_v24 = vpop.f32.mrb[86].mxu1  ;;  %v8563_v47 = vpop.f32.mrb[86].mxu0 }
 0x3b7   :  { %6367 = vst.msk [vmem:[%s12100_s3 + $0x2a8] sm:$0xff] %vm6281_vm0, %v8985_v23  ;;  %v8988_v8 = vadd.f32 %v7891_v24, %v11406_v58  ;;  %v3155_v17 = vpop.f32.mrb[87].mxu1  ;;  %v6031_v39 = vpop.f32.mrb[87].mxu0 }
 0x3b8   :  { %6366 = vst.msk [vmem:[%s12100_s3 + $0x2a0] sm:$0xff] %vm6281_vm0, %v8987_v9  ;;  %v8990_v42 = vadd.f32 %v11406_v58, %v3155_v17 }
 0x3b9   :  { %v8989_v12 = vadd.f32 %v8988_v8, %v8563_v47 }
 0x3ba   :  { %v8991_v53 = vadd.f32 %v8990_v42, %v6031_v39  ;;  %v7894_v54 = vpop.f32.mrb[88].mxu1  ;;  %v8566_v3 = vpop.f32.mrb[88].mxu0 }
 0x3bb   :  { %6369 = vst.msk [vmem:[%s12100_s3 + $0x2b8] sm:$0xff] %vm6281_vm0, %v8989_v12  ;;  %v8992_v16 = vadd.f32 %v7894_v54, %v11406_v58  ;;  %v3169_v46 = vpop.f32.mrb[89].mxu1  ;;  %v6043_v56 = vpop.f32.mrb[89].mxu0 }
 0x3bc   :  { %6368 = vst.msk [vmem:[%s12100_s3 + $0x2b0] sm:$0xff] %vm6281_vm0, %v8991_v53  ;;  %v8994_v51 = vadd.f32 %v11406_v58, %v3169_v46 }
 0x3bd   :  { %v8993_v29 = vadd.f32 %v8992_v16, %v8566_v3 }
 0x3be   :  { %v8995_v44 = vadd.f32 %v8994_v51, %v6043_v56  ;;  %v7897_v35 = vpop.f32.mrb[90].mxu1  ;;  %v8569_v41 = vpop.f32.mrb[90].mxu0 }
 0x3bf   :  { %6371 = vst.msk [vmem:[%s12100_s3 + $0x2c8] sm:$0xff] %vm6281_vm0, %v8993_v29  ;;  %v8996_v31 = vadd.f32 %v7897_v35, %v11406_v58  ;;  %v3183_v40 = vpop.f32.mrb[91].mxu1  ;;  %v6055_v1 = vpop.f32.mrb[91].mxu0 }
 0x3c0   :  { %6370 = vst.msk [vmem:[%s12100_s3 + $0x2c0] sm:$0xff] %vm6281_vm0, %v8995_v44  ;;  %v8998_v49 = vadd.f32 %v11406_v58, %v3183_v40 }
 0x3c1   :  { %v8997_v45 = vadd.f32 %v8996_v31, %v8569_v41 }
 0x3c2   :  { %v8999_v33 = vadd.f32 %v8998_v49, %v6055_v1  ;;  %v7900_v0 = vpop.f32.mrb[92].mxu1  ;;  %v8572_v19 = vpop.f32.mrb[92].mxu0 }
 0x3c3   :  { %6373 = vst.msk [vmem:[%s12100_s3 + $0x2d8] sm:$0xff] %vm6281_vm0, %v8997_v45  ;;  %v9000_v25 = vadd.f32 %v7900_v0, %v11406_v58  ;;  %v3197_v4 = vpop.f32.mrb[93].mxu1  ;;  %v6067_v6 = vpop.f32.mrb[93].mxu0 }
 0x3c4   :  { %6372 = vst.msk [vmem:[%s12100_s3 + $0x2d0] sm:$0xff] %vm6281_vm0, %v8999_v33  ;;  %v9002_v34 = vadd.f32 %v11406_v58, %v3197_v4 }
 0x3c5   :  { %v9001_v7 = vadd.f32 %v9000_v25, %v8572_v19 }
 0x3c6   :  { %v9003_v2 = vadd.f32 %v9002_v34, %v6067_v6  ;;  %v7903_v28 = vpop.f32.mrb[94].mxu1  ;;  %v8575_v59 = vpop.f32.mrb[94].mxu0 }
 0x3c7   :  { %6375 = vst.msk [vmem:[%s12100_s3 + $0x2e8] sm:$0xff] %vm6281_vm0, %v9001_v7  ;;  %v9004_v11 = vadd.f32 %v11921_v48, %v7903_v28  ;;  %v3211_v57 = vpop.f32.mrb[95].mxu1  ;;  %v6079_v26 = vpop.f32.mrb[95].mxu0 }
 0x3c8   :  { %6374 = vst.msk [vmem:[%s12100_s3 + $0x2e0] sm:$0xff] %vm6281_vm0, %v9003_v2  ;;  %v9006_v58 = vadd.f32 %v11921_v48, %v3211_v57 }
 0x3c9   :  { %v9005_v36 = vadd.f32 %v9004_v11, %v8575_v59 }
 0x3ca   :  { %v9007_v55 = vadd.f32 %v9006_v58, %v6079_v26  ;;  %v7906_v50 = vpop.f32.mrb[96].mxu1  ;;  %v8578_v37 = vpop.f32.mrb[96].mxu0 }
 0x3cb   :  { %6377 = vst.msk [vmem:[%s12100_s3 + $0x2f8] sm:$0xff] %vm6281_vm0, %v9005_v36  ;;  %v9008_v14 = vadd.f32 %v11921_v48, %v7906_v50  ;;  %v3225_v15 = vpop.f32.mrb[97].mxu1  ;;  %v6091_v21 = vpop.f32.mrb[97].mxu0 }
 0x3cc   :  { %6376 = vst.msk [vmem:[%s12100_s3 + $0x2f0] sm:$0xff] %vm6281_vm0, %v9007_v55  ;;  %v9010_v60 = vadd.f32 %v11921_v48, %v3225_v15 }
 0x3cd   :  { %v9009_v62 = vadd.f32 %v9008_v14, %v8578_v37 }
 0x3ce   :  { %v9011_v52 = vadd.f32 %v9010_v60, %v6091_v21  ;;  %v7909_v63 = vpop.f32.mrb[98].mxu1  ;;  %v8581_v5 = vpop.f32.mrb[98].mxu0 }
 0x3cf   :  { %6379 = vst.msk [vmem:[%s12100_s3 + $0x308] sm:$0xff] %vm6281_vm0, %v9009_v62  ;;  %v9012_v10 = vadd.f32 %v11921_v48, %v7909_v63  ;;  %v3239_v13 = vpop.f32.mrb[99].mxu1  ;;  %v6103_v38 = vpop.f32.mrb[99].mxu0 }
 0x3d0   :  { %6378 = vst.msk [vmem:[%s12100_s3 + $0x300] sm:$0xff] %vm6281_vm0, %v9011_v52  ;;  %v9014_v61 = vadd.f32 %v11921_v48, %v3239_v13 }
 0x3d1   :  { %v9013_v18 = vadd.f32 %v9012_v10, %v8581_v5 }
 0x3d2   :  { %v9015_v27 = vadd.f32 %v9014_v61, %v6103_v38  ;;  %v7912_v43 = vpop.f32.mrb[100].mxu1  ;;  %v8584_v32 = vpop.f32.mrb[100].mxu0 }
 0x3d3   :  { %6381 = vst.msk [vmem:[%s12100_s3 + $0x318] sm:$0xff] %vm6281_vm0, %v9013_v18  ;;  %v9016_v30 = vadd.f32 %v11921_v48, %v7912_v43  ;;  %v3253_v22 = vpop.f32.mrb[101].mxu1  ;;  %v6115_v20 = vpop.f32.mrb[101].mxu0 }
 0x3d4   :  { %6380 = vst.msk [vmem:[%s12100_s3 + $0x310] sm:$0xff] %vm6281_vm0, %v9015_v27  ;;  %v9018_v23 = vadd.f32 %v11921_v48, %v3253_v22 }
 0x3d5   :  { %v9017_v9 = vadd.f32 %v9016_v30, %v8584_v32 }
 0x3d6   :  { %v9019_v24 = vadd.f32 %v9018_v23, %v6115_v20  ;;  %v7915_v47 = vpop.f32.mrb[102].mxu1  ;;  %v8587_v8 = vpop.f32.mrb[102].mxu0 }
 0x3d7   :  { %6383 = vst.msk [vmem:[%s12100_s3 + $0x328] sm:$0xff] %vm6281_vm0, %v9017_v9  ;;  %v9020_v17 = vadd.f32 %v11921_v48, %v7915_v47  ;;  %v3267_v39 = vpop.f32.mrb[103].mxu1  ;;  %v6127_v42 = vpop.f32.mrb[103].mxu0 }
 0x3d8   :  { %6382 = vst.msk [vmem:[%s12100_s3 + $0x320] sm:$0xff] %vm6281_vm0, %v9019_v24  ;;  %v9022_v12 = vadd.f32 %v11921_v48, %v3267_v39 }
 0x3d9   :  { %v9021_v53 = vadd.f32 %v9020_v17, %v8587_v8 }
 0x3da   :  { %v9023_v54 = vadd.f32 %v9022_v12, %v6127_v42  ;;  %v7918_v3 = vpop.f32.mrb[104].mxu1  ;;  %v8590_v16 = vpop.f32.mrb[104].mxu0 }
 0x3db   :  { %6385 = vst.msk [vmem:[%s12100_s3 + $0x338] sm:$0xff] %vm6281_vm0, %v9021_v53  ;;  %v9024_v46 = vadd.f32 %v11921_v48, %v7918_v3  ;;  %v3281_v56 = vpop.f32.mrb[105].mxu1  ;;  %v6139_v51 = vpop.f32.mrb[105].mxu0 }
 0x3dc   :  { %6384 = vst.msk [vmem:[%s12100_s3 + $0x330] sm:$0xff] %vm6281_vm0, %v9023_v54  ;;  %v9026_v29 = vadd.f32 %v11921_v48, %v3281_v56 }
 0x3dd   :  { %v9025_v44 = vadd.f32 %v9024_v46, %v8590_v16 }
 0x3de   :  { %v9027_v35 = vadd.f32 %v9026_v29, %v6139_v51  ;;  %v7921_v41 = vpop.f32.mrb[106].mxu1  ;;  %v8593_v31 = vpop.f32.mrb[106].mxu0 }
 0x3df   :  { %6387 = vst.msk [vmem:[%s12100_s3 + $0x348] sm:$0xff] %vm6281_vm0, %v9025_v44  ;;  %v9028_v40 = vadd.f32 %v11921_v48, %v7921_v41  ;;  %v3295_v1 = vpop.f32.mrb[107].mxu1  ;;  %v6151_v49 = vpop.f32.mrb[107].mxu0 }
 0x3e0   :  { %6386 = vst.msk [vmem:[%s12100_s3 + $0x340] sm:$0xff] %vm6281_vm0, %v9027_v35  ;;  %v9030_v45 = vadd.f32 %v11921_v48, %v3295_v1 }
 0x3e1   :  { %v9029_v33 = vadd.f32 %v9028_v40, %v8593_v31 }
 0x3e2   :  { %v9031_v0 = vadd.f32 %v9030_v45, %v6151_v49  ;;  %v7924_v19 = vpop.f32.mrb[108].mxu1  ;;  %v8596_v25 = vpop.f32.mrb[108].mxu0 }
 0x3e3   :  { %6389 = vst.msk [vmem:[%s12100_s3 + $0x358] sm:$0xff] %vm6281_vm0, %v9029_v33  ;;  %v9032_v4 = vadd.f32 %v11921_v48, %v7924_v19  ;;  %v3309_v6 = vpop.f32.mrb[109].mxu1  ;;  %v6163_v34 = vpop.f32.mrb[109].mxu0 }
 0x3e4   :  { %6388 = vst.msk [vmem:[%s12100_s3 + $0x350] sm:$0xff] %vm6281_vm0, %v9031_v0  ;;  %v9034_v7 = vadd.f32 %v11921_v48, %v3309_v6 }
 0x3e5   :  { %v9033_v2 = vadd.f32 %v9032_v4, %v8596_v25 }
 0x3e6   :  { %v9035_v28 = vadd.f32 %v9034_v7, %v6163_v34  ;;  %v7927_v59 = vpop.f32.mrb[110].mxu1  ;;  %v8599_v11 = vpop.f32.mrb[110].mxu0 }
 0x3e7   :  { %6391 = vst.msk [vmem:[%s12100_s3 + $0x368] sm:$0xff] %vm6281_vm0, %v9033_v2  ;;  %v9036_v57 = vadd.f32 %v11921_v48, %v7927_v59  ;;  %v3323_v26 = vpop.f32.mrb[111].mxu1  ;;  %v6175_v58 = vpop.f32.mrb[111].mxu0 }
 0x3e8   :  { %6390 = vst.msk [vmem:[%s12100_s3 + $0x360] sm:$0xff] %vm6281_vm0, %v9035_v28  ;;  %v9038_v36 = vadd.f32 %v11921_v48, %v3323_v26 }
 0x3e9   :  { %v9037_v55 = vadd.f32 %v9036_v57, %v8599_v11 }
 0x3ea   :  { %v9039_v50 = vadd.f32 %v9038_v36, %v6175_v58  ;;  %v7930_v37 = vpop.f32.mrb[112].mxu1  ;;  %v8602_v14 = vpop.f32.mrb[112].mxu0 }
 0x3eb   :  { %6393 = vst.msk [vmem:[%s12100_s3 + $0x378] sm:$0xff] %vm6281_vm0, %v9037_v55  ;;  %v9040_v15 = vadd.f32 %v11921_v48, %v7930_v37  ;;  %v3337_v21 = vpop.f32.mrb[113].mxu1  ;;  %v6187_v60 = vpop.f32.mrb[113].mxu0 }
 0x3ec   :  { %6392 = vst.msk [vmem:[%s12100_s3 + $0x370] sm:$0xff] %vm6281_vm0, %v9039_v50  ;;  %v9042_v62 = vadd.f32 %v11921_v48, %v3337_v21 }
 0x3ed   :  { %v9041_v52 = vadd.f32 %v9040_v15, %v8602_v14 }
 0x3ee   :  { %v9043_v63 = vadd.f32 %v9042_v62, %v6187_v60  ;;  %v7933_v5 = vpop.f32.mrb[114].mxu1  ;;  %v8605_v10 = vpop.f32.mrb[114].mxu0 }
 0x3ef   :  { %6395 = vst.msk [vmem:[%s12100_s3 + $0x388] sm:$0xff] %vm6281_vm0, %v9041_v52  ;;  %v9044_v13 = vadd.f32 %v11921_v48, %v7933_v5  ;;  %v3351_v38 = vpop.f32.mrb[115].mxu1  ;;  %v6199_v61 = vpop.f32.mrb[115].mxu0 }
 0x3f0   :  { %6394 = vst.msk [vmem:[%s12100_s3 + $0x380] sm:$0xff] %vm6281_vm0, %v9043_v63  ;;  %v9046_v18 = vadd.f32 %v11921_v48, %v3351_v38 }
 0x3f1   :  { %v9045_v27 = vadd.f32 %v9044_v13, %v8605_v10 }
 0x3f2   :  { %v9047_v43 = vadd.f32 %v9046_v18, %v6199_v61  ;;  %v7936_v32 = vpop.f32.mrb[116].mxu1  ;;  %v8608_v30 = vpop.f32.mrb[116].mxu0 }
 0x3f3   :  { %6397 = vst.msk [vmem:[%s12100_s3 + $0x398] sm:$0xff] %vm6281_vm0, %v9045_v27  ;;  %v9048_v22 = vadd.f32 %v11921_v48, %v7936_v32  ;;  %v3365_v20 = vpop.f32.mrb[117].mxu1  ;;  %v6211_v23 = vpop.f32.mrb[117].mxu0 }
 0x3f4   :  { %6396 = vst.msk [vmem:[%s12100_s3 + $0x390] sm:$0xff] %vm6281_vm0, %v9047_v43  ;;  %v9050_v9 = vadd.f32 %v11921_v48, %v3365_v20 }
 0x3f5   :  { %v9049_v24 = vadd.f32 %v9048_v22, %v8608_v30 }
 0x3f6   :  { %v9051_v47 = vadd.f32 %v9050_v9, %v6211_v23  ;;  %v7939_v8 = vpop.f32.mrb[118].mxu1  ;;  %v8611_v17 = vpop.f32.mrb[118].mxu0 }
 0x3f7   :  { %6399 = vst.msk [vmem:[%s12100_s3 + $0x3a8] sm:$0xff] %vm6281_vm0, %v9049_v24  ;;  %v9052_v39 = vadd.f32 %v11921_v48, %v7939_v8  ;;  %v3379_v42 = vpop.f32.mrb[119].mxu1  ;;  %v6223_v12 = vpop.f32.mrb[119].mxu0 }
 0x3f8   :  { %6398 = vst.msk [vmem:[%s12100_s3 + $0x3a0] sm:$0xff] %vm6281_vm0, %v9051_v47  ;;  %v9054_v53 = vadd.f32 %v11921_v48, %v3379_v42 }
 0x3f9   :  { %v9053_v54 = vadd.f32 %v9052_v39, %v8611_v17 }
 0x3fa   :  { %v9055_v3 = vadd.f32 %v9054_v53, %v6223_v12  ;;  %v7942_v16 = vpop.f32.mrb[120].mxu1  ;;  %v8614_v46 = vpop.f32.mrb[120].mxu0 }
 0x3fb   :  { %6401 = vst.msk [vmem:[%s12100_s3 + $0x3b8] sm:$0xff] %vm6281_vm0, %v9053_v54  ;;  %v9056_v56 = vadd.f32 %v11921_v48, %v7942_v16  ;;  %v3393_v51 = vpop.f32.mrb[121].mxu1  ;;  %v6235_v29 = vpop.f32.mrb[121].mxu0 }
 0x3fc   :  { %6400 = vst.msk [vmem:[%s12100_s3 + $0x3b0] sm:$0xff] %vm6281_vm0, %v9055_v3  ;;  %v9058_v44 = vadd.f32 %v11921_v48, %v3393_v51 }
 0x3fd   :  { %v9057_v35 = vadd.f32 %v9056_v56, %v8614_v46 }
 0x3fe   :  { %v9059_v41 = vadd.f32 %v9058_v44, %v6235_v29  ;;  %v7945_v31 = vpop.f32.mrb[122].mxu1  ;;  %v8617_v40 = vpop.f32.mrb[122].mxu0 }
 0x3ff   :  { %6403 = vst.msk [vmem:[%s12100_s3 + $0x3c8] sm:$0xff] %vm6281_vm0, %v9057_v35  ;;  %v9060_v1 = vadd.f32 %v11921_v48, %v7945_v31  ;;  %v3407_v49 = vpop.f32.mrb[123].mxu1  ;;  %v6247_v45 = vpop.f32.mrb[123].mxu0 }
 0x400   :  { %6402 = vst.msk [vmem:[%s12100_s3 + $0x3c0] sm:$0xff] %vm6281_vm0, %v9059_v41  ;;  %v9062_v33 = vadd.f32 %v11921_v48, %v3407_v49 }
 0x401   :  { %v9061_v0 = vadd.f32 %v9060_v1, %v8617_v40 }
 0x402   :  { %v9063_v19 = vadd.f32 %v9062_v33, %v6247_v45  ;;  %v7948_v25 = vpop.f32.mrb[124].mxu1  ;;  %v8620_v4 = vpop.f32.mrb[124].mxu0 }
 0x403   :  { %6405 = vst.msk [vmem:[%s12100_s3 + $0x3d8] sm:$0xff] %vm6281_vm0, %v9061_v0  ;;  %v9064_v6 = vadd.f32 %v11921_v48, %v7948_v25  ;;  %v3421_v34 = vpop.f32.mrb[125].mxu1  ;;  %v6259_v7 = vpop.f32.mrb[125].mxu0 }
 0x404   :  { %6404 = vst.msk [vmem:[%s12100_s3 + $0x3d0] sm:$0xff] %vm6281_vm0, %v9063_v19  ;;  %v9066_v2 = vadd.f32 %v11921_v48, %v3421_v34 }
 0x405   :  { %v9065_v28 = vadd.f32 %v9064_v6, %v8620_v4 }
 0x406   :  { %v9067_v59 = vadd.f32 %v9066_v2, %v6259_v7  ;;  %v7951_v11 = vpop.f32.mrb[126].mxu1  ;;  %v8623_v57 = vpop.f32.mrb[126].mxu0 }
 0x407   :  { %6407 = vst.msk [vmem:[%s12100_s3 + $0x3e8] sm:$0xff] %vm6281_vm0, %v9065_v28  ;;  %v9068_v26 = vadd.f32 %v11921_v48, %v7951_v11  ;;  %v3435_v58 = vpop.f32.mrb[127].mxu1  ;;  %v6271_v36 = vpop.f32.mrb[127].mxu0 }
 0x408   :  { %6406 = vst.msk [vmem:[%s12100_s3 + $0x3e0] sm:$0xff] %vm6281_vm0, %v9067_v59  ;;  %v9070_v55 = vadd.f32 %v11921_v48, %v3435_v58 }
 0x409   :  { %v9069_v50 = vadd.f32 %v9068_v26, %v8623_v57 }
 0x40a   :  { %v9071_v37 = vadd.f32 %v9070_v55, %v6271_v36 }
 0x40b   :  { %6409 = vst.msk [vmem:[%s12100_s3 + $0x3f8] sm:$0xff] %vm6281_vm0, %v9069_v50 }
 0x40c   :  { %6408 = vst.msk [vmem:[%s12100_s3 + $0x3f0] sm:$0xff] %vm6281_vm0, %v9071_v37 }
 0x40d   :  { %6414 = vsyncpa [#allocation3], 1 }

</bundles_post_ra>
